<compile_context>
chip_gen: v5e
topology: v5e:2x2
jax: 0.10.0
libtpu: 0.0.40
codegen_flags: <defaults>
</compile_context>

<pallas_src>
import functools

import jax
import jax.numpy as jnp
from jax.experimental import pallas as pl
from jax.experimental.pallas import tpu as pltpu

LN_EPS = 1e-5
HALTING_BIAS_INIT = -1.0


def _halting_kernel(x_ref, gw_ref, sc_ref, o_ref):
    """General path: one block of rows, feature dim on the lane axis.

    x_ref : (tr, D)     VMEM  activations
    gw_ref: (1, D)      VMEM  gamma * w (LayerNorm affine folded into Linear)
    sc_ref: (2,)        SMEM  [c, sum_gw] with c = sum(beta*w) + bias
    o_ref : (1, 1, tr)  VMEM  lane-dense output (rows on the lane axis)
    """
    x = x_ref[...].astype(jnp.float32)
    gw = gw_ref[...].astype(jnp.float32)
    inv_d = jnp.float32(1.0 / x_ref.shape[-1])

    # Single-pass moments (no centered / xhat tile-sized temporaries).
    s1 = jnp.sum(x, axis=-1, keepdims=True)
    s2 = jnp.sum(x * x, axis=-1, keepdims=True)
    sg = jnp.sum(x * gw, axis=-1, keepdims=True)

    mean = s1 * inv_d
    var = s2 * inv_d - mean * mean
    logit = jax.lax.rsqrt(var + LN_EPS) * (sg - mean * sc_ref[1]) + sc_ref[0]
    p = jax.nn.sigmoid(logit)                                   # (tr, 1)
    o_ref[...] = p.reshape(o_ref.shape).astype(o_ref.dtype)     # rows -> lanes


def _halting_kernel_packed(x_ref, ones_ref, gw_ref, sc_ref, o_ref, *, seg_dim):
    """Packed path for seg_dim < 128: k = 128 // seg_dim rows per vreg row.

    x_ref   : (tr, 128)   VMEM  k logical rows side by side on the lanes
    ones_ref: (128, k)    VMEM  segment selector (1 in the column's segment)
    gw_ref  : (128, k)    VMEM  selector * tiled(gamma * w)
    sc_ref  : (2,)        SMEM  [c, sum_gw]
    o_ref   : (1, tr, k)  VMEM
    The three per-segment lane reductions run on the otherwise-idle MXU.
    """
    xp = x_ref[...].astype(jnp.float32)
    prec = jax.lax.Precision.HIGHEST                 # keep ~f32 accuracy on MXU
    s1 = jnp.dot(xp, ones_ref[...], precision=prec,
                 preferred_element_type=jnp.float32)             # (tr, k)
    sg = jnp.dot(xp, gw_ref[...], precision=prec,
                 preferred_element_type=jnp.float32)             # (tr, k)
    s2 = jnp.dot(xp * xp, ones_ref[...], precision=prec,
                 preferred_element_type=jnp.float32)             # (tr, k)

    inv_d = jnp.float32(1.0 / seg_dim)
    mean = s1 * inv_d
    var = s2 * inv_d - mean * mean
    logit = jax.lax.rsqrt(var + LN_EPS) * (sg - mean * sc_ref[1]) + sc_ref[0]
    p = jax.nn.sigmoid(logit)                                    # (tr, k)
    o_ref[...] = p.reshape(o_ref.shape).astype(o_ref.dtype)


def _tile_rows_and_vmem(rows_eff, lane_width, itemsize, tile_rows,
                        vmem_limit_bytes):
    """Pick a 128-multiple row tile from a VMEM budget and a matching limit."""
    # Per-row VMEM footprint: double-buffered input tile + ~3 f32 tile-sized
    # in-kernel temporaries (x, x*x, x*gw) + a few lane-sparse (tr, 1)/(tr, k)
    # per-row vectors (~512 B/row each).
    per_row = 2 * lane_width * itemsize + 3 * lane_width * 4 + 4 * 512
    if tile_rows is None:
        budget = 24 << 20
        tr = max(128, (budget // per_row) // 128 * 128)
    else:
        tr = max(128, int(tile_rows) // 128 * 128)
    # >= 2 grid steps whenever rows permit so both v7x TensorCores get work.
    if rows_eff >= 2 * 128:
        tr = min(tr, pl.cdiv(pl.cdiv(rows_eff, 2), 128) * 128)
    # Don't exceed the (128-rounded-up) row count.
    tr = min(tr, pl.cdiv(rows_eff, 128) * 128)
    tr = max(128, tr)
    if vmem_limit_bytes is None:
        vmem_limit_bytes = int(min(max(tr * per_row + (4 << 20), 16 << 20),
                                   48 << 20))
    return int(tr), int(vmem_limit_bytes)


def halting_unit(x, gamma, beta, w, b, *, tile_rows=None, vmem_limit_bytes=None):
    """sigmoid(Linear(LayerNorm(x))). x: (batch, seq, dim) -> (batch, seq, 1)."""
    batch, seq, dim = x.shape
    rows = batch * seq
    f32 = jnp.float32
    in_dtype = x.dtype
    itemsize = jnp.dtype(in_dtype).itemsize

    # Fold the LayerNorm affine into the dim->1 projection.
    gw = gamma.astype(f32) * w.astype(f32)                            # (dim,)
    sum_gw = jnp.sum(gw)
    c = jnp.sum(beta.astype(f32) * w.astype(f32)) + jnp.asarray(b, f32)
    scalars = jnp.stack([c, sum_gw]).astype(f32)                      # (2,) SMEM

    # Small-dim packing: k logical rows per 128-lane vreg row (free reshape).
    k = 128 // dim if (dim < 128 and 128 % dim == 0) else 1
    if k > 1 and rows % k != 0:
        k = 1  # fall back rather than re-copying x in HBM with a pad
    packed = k > 1
    lane_width = k * dim
    rows_eff = rows // k
    x2 = x.reshape(rows_eff, lane_width)          # contiguous: no data movement

    tr, vmem_limit_bytes = _tile_rows_and_vmem(rows_eff, lane_width, itemsize,
                                               tile_rows, vmem_limit_bytes)
    num_tiles = pl.cdiv(rows_eff, tr)             # last block may be partial

    cparams = pltpu.CompilerParams(
        dimension_semantics=("parallel",),
        vmem_limit_bytes=vmem_limit_bytes,
    )

    if packed:
        seg = jnp.arange(lane_width, dtype=jnp.int32) // dim          # (128,)
        s_ones = (seg[:, None] == jnp.arange(k, dtype=jnp.int32)[None, :]
                  ).astype(f32)                                        # (128, k)
        s_gw = s_ones * jnp.tile(gw, k)[:, None]                       # (128, k)
        out = pl.pallas_call(
            functools.partial(_halting_kernel_packed, seg_dim=dim),
            out_shape=jax.ShapeDtypeStruct((num_tiles, tr, k), in_dtype),
            grid_spec=pltpu.PrefetchScalarGridSpec(
                num_scalar_prefetch=0,
                grid=(num_tiles,),
                in_specs=[
                    pl.BlockSpec((tr, lane_width), lambda i: (i, 0)),
                    pl.BlockSpec((lane_width, k), lambda i: (0, 0)),
                    pl.BlockSpec((lane_width, k), lambda i: (0, 0)),
                    pl.BlockSpec(memory_space=pltpu.MemorySpace.SMEM),
                ],
                out_specs=pl.BlockSpec((1, tr, k), lambda i: (i, 0, 0)),
            ),
            compiler_params=cparams,
        )(x2, s_ones, s_gw, scalars)
    else:
        out = pl.pallas_call(
            _halting_kernel,
            out_shape=jax.ShapeDtypeStruct((num_tiles, 1, tr), in_dtype),
            grid_spec=pltpu.PrefetchScalarGridSpec(
                num_scalar_prefetch=0,
                grid=(num_tiles,),
                in_specs=[
                    pl.BlockSpec((tr, lane_width), lambda i: (i, 0)),
                    pl.BlockSpec((1, lane_width), lambda i: (0, 0)),
                    pl.BlockSpec(memory_space=pltpu.MemorySpace.SMEM),
                ],
                out_specs=pl.BlockSpec((1, 1, tr), lambda i: (i, 0, 0)),
            ),
            compiler_params=cparams,
        )(x2, gw.reshape(1, lane_width), scalars)

    # Flatten (row-major matches logical row order for both layouts), drop the
    # boundary-block garbage tail, restore (batch, seq, 1).
    return out.reshape(-1)[:rows].reshape(batch, seq, 1)


def halting_unit_ref(x, gamma, beta, w, b):
    """Pure-JAX reference matching torch semantics (LayerNorm -> Linear -> sigmoid)."""
    xf = x.astype(jnp.float32)
    mean = jnp.mean(xf, axis=-1, keepdims=True)
    var = jnp.mean((xf - mean) ** 2, axis=-1, keepdims=True)
    xhat = (xf - mean) / jnp.sqrt(var + LN_EPS)
    y = xhat * gamma.astype(jnp.float32) + beta.astype(jnp.float32)
    logit = jnp.sum(y * w.astype(jnp.float32), axis=-1, keepdims=True) + b
    return jax.nn.sigmoid(logit).astype(x.dtype)


if __name__ == "__main__":
    dim_model = 32

    key = jax.random.PRNGKey(0)
    kx1, kx2, kx3, kx4, kw, kg, kb = jax.random.split(key, 7)

    # Parameters mirroring the module: LayerNorm weight~1 / bias~0 (perturbed
    # to exercise the affine folding); Linear(dim,1) weight ~ U(+-1/sqrt(dim)),
    # bias = -1.0 (halting_bias_init).
    gamma = jnp.ones((dim_model,), jnp.float32) + 0.01 * jax.random.normal(
        kg, (dim_model,), dtype=jnp.float32)
    beta = 0.01 * jax.random.normal(kb, (dim_model,), dtype=jnp.float32)
    bound = 1.0 / (float(dim_model) ** 0.5)
    w = jax.random.uniform(kw, (dim_model,), dtype=jnp.float32,
                           minval=-bound, maxval=bound)
    b = jnp.array(HALTING_BIAS_INIT, dtype=jnp.float32)

    def check(x, atol):
        out = jax.block_until_ready(halting_unit(x, gamma, beta, w, b))
        ref = halting_unit_ref(x, gamma, beta, w, b)
        assert out.shape == (x.shape[0], x.shape[1], 1)
        assert out.dtype == x.dtype
        assert jnp.allclose(out.astype(jnp.float32), ref.astype(jnp.float32),
                            atol=atol, rtol=atol)

    # 1) Packed path (dim=32 -> 4 rows per vreg row), single grid step.
    check(jax.random.normal(kx1, (2, 8, dim_model), jnp.float32), atol=2e-5)

    # 2) General path, single partial boundary block (rows=21 not % 4).
    check(jax.random.normal(kx2, (3, 7, dim_model), jnp.float32), atol=2e-5)

    # 3) General path, 2 grid steps with a partial last block (rows=321).
    check(jax.random.normal(kx3, (3, 107, dim_model), jnp.float32), atol=2e-5)

    # 4) Packed path, 2 grid steps (both v7x TCs) with a partial last block.
    x_big = jax.random.normal(kx4, (4, 384, dim_model), jnp.float32)
    check(x_big, atol=2e-5)

    # 5) bf16 pass-through (halves HBM read bytes; stats still in f32).
    check(x_big.astype(jnp.bfloat16), atol=1e-2)

    print("KERNEL_OK")
</pallas_src>

<mosaic_0001>
module attributes {stable_mosaic.version = 11 : i64} {
  func.func @_halting_kernel_packed(%arg0: i32, %arg1: memref<128x128xf32, #tpu.memory_space<vmem>>, %arg2: memref<128x4xf32, #tpu.memory_space<vmem>>, %arg3: memref<128x4xf32, #tpu.memory_space<vmem>>, %arg4: memref<2xf32, #tpu.memory_space<smem>>, %arg5: memref<1x128x4xf32, #tpu.memory_space<vmem>>) attributes {dimension_semantics = [#tpu.dimension_semantics<parallel>], iteration_bounds = array<i64: 1>, scalar_prefetch = 0 : i64, scratch_operands = 0 : i64, tpu.core_type = #tpu.core_type<tc>, window_params = [{transform_indices = @transform_0, window_bounds = array<i64: 128, 128>}, {pipeline_mode = #tpu.pipeline_mode<synchronous>, transform_indices = @transform_1, window_bounds = array<i64: 128, 4>}, {pipeline_mode = #tpu.pipeline_mode<synchronous>, transform_indices = @transform_2, window_bounds = array<i64: 128, 4>}, {transform_indices = @transform_3, window_bounds = array<i64: 2>}, {transform_indices = @transform_4, window_bounds = array<i64: 1, 128, 4>}]} {
    %c0 = arith.constant 0 : index
    %c0_0 = arith.constant 0 : index
    %0 = vector.load %arg1[%c0, %c0_0] : memref<128x128xf32, #tpu.memory_space<vmem>>, vector<128x128xf32>
    %c0_1 = arith.constant 0 : index
    %c0_2 = arith.constant 0 : index
    %1 = vector.load %arg2[%c0_1, %c0_2] : memref<128x4xf32, #tpu.memory_space<vmem>>, vector<128x4xf32>
    %cst = arith.constant dense<0.000000e+00> : vector<128x4xf32>
    %2 = tpu.matmul %0, %1, %cst {dimension_numbers = #tpu.dot_dimension_numbers<[1], [0], [0], [1], [0, 0, 1, 1], [], []>, precision = #tpu.contract_precision<fp32>} : vector<128x128xf32>, vector<128x4xf32>, vector<128x4xf32> -> vector<128x4xf32>
    %c0_3 = arith.constant 0 : index
    %c0_4 = arith.constant 0 : index
    %3 = vector.load %arg3[%c0_3, %c0_4] : memref<128x4xf32, #tpu.memory_space<vmem>>, vector<128x4xf32>
    %cst_5 = arith.constant dense<0.000000e+00> : vector<128x4xf32>
    %4 = tpu.matmul %0, %3, %cst_5 {dimension_numbers = #tpu.dot_dimension_numbers<[1], [0], [0], [1], [0, 0, 1, 1], [], []>, precision = #tpu.contract_precision<fp32>} : vector<128x128xf32>, vector<128x4xf32>, vector<128x4xf32> -> vector<128x4xf32>
    %5 = arith.mulf %0, %0 : vector<128x128xf32>
    %c0_6 = arith.constant 0 : index
    %c0_7 = arith.constant 0 : index
    %6 = vector.load %arg2[%c0_6, %c0_7] : memref<128x4xf32, #tpu.memory_space<vmem>>, vector<128x4xf32>
    %cst_8 = arith.constant dense<0.000000e+00> : vector<128x4xf32>
    %7 = tpu.matmul %5, %6, %cst_8 {dimension_numbers = #tpu.dot_dimension_numbers<[1], [0], [0], [1], [0, 0, 1, 1], [], []>, precision = #tpu.contract_precision<fp32>} : vector<128x128xf32>, vector<128x4xf32>, vector<128x4xf32> -> vector<128x4xf32>
    %cst_9 = arith.constant 3.125000e-02 : f32
    %8 = vector.broadcast %cst_9 : f32 to vector<128x4xf32>
    %9 = arith.mulf %2, %8 : vector<128x4xf32>
    %cst_10 = arith.constant 3.125000e-02 : f32
    %10 = vector.broadcast %cst_10 : f32 to vector<128x4xf32>
    %11 = arith.mulf %7, %10 : vector<128x4xf32>
    %12 = arith.mulf %9, %9 : vector<128x4xf32>
    %13 = arith.subf %11, %12 : vector<128x4xf32>
    %cst_11 = arith.constant 9.99999974E-6 : f32
    %14 = vector.broadcast %cst_11 : f32 to vector<128x4xf32>
    %15 = arith.addf %13, %14 : vector<128x4xf32>
    %16 = math.rsqrt %15 : vector<128x4xf32>
    %c1 = arith.constant 1 : index
    %17 = memref.load %arg4[%c1] : memref<2xf32, #tpu.memory_space<smem>>
    %18 = vector.broadcast %17 : f32 to vector<128x4xf32>
    %19 = arith.mulf %9, %18 : vector<128x4xf32>
    %20 = arith.subf %4, %19 : vector<128x4xf32>
    %21 = arith.mulf %16, %20 : vector<128x4xf32>
    %c0_12 = arith.constant 0 : index
    %22 = memref.load %arg4[%c0_12] : memref<2xf32, #tpu.memory_space<smem>>
    %23 = vector.broadcast %22 : f32 to vector<128x4xf32>
    %24 = arith.addf %21, %23 : vector<128x4xf32>
    %25 = arith.negf %24 : vector<128x4xf32>
    %26 = math.exp %25 : vector<128x4xf32>
    %cst_13 = arith.constant 1.000000e+00 : f32
    %27 = vector.broadcast %cst_13 : f32 to vector<128x4xf32>
    %28 = arith.addf %27, %26 : vector<128x4xf32>
    %29 = arith.divf %27, %28 : vector<128x4xf32>
    %30 = vector.shape_cast %29 : vector<128x4xf32> to vector<1x128x4xf32>
    %c0_14 = arith.constant 0 : index
    %c0_15 = arith.constant 0 : index
    %c0_16 = arith.constant 0 : index
    %31 = vector.load %arg5[%c0_14, %c0_15, %c0_16] : memref<1x128x4xf32, #tpu.memory_space<vmem>>, vector<1x128x4xf32>
    tpu.vector_store %arg5[%c0_14, %c0_15, %c0_16], %30 {strides = array<i32>} : memref<1x128x4xf32, #tpu.memory_space<vmem>>, vector<1x128x4xf32>,
    return
  }
  func.func @transform_0(%arg0: i32) -> (i32, i32) {
    %c0_i32 = arith.constant 0 : i32
    %c0_i32_0 = arith.constant 0 : i32
    return %arg0, %c0_i32 : i32, i32
  }
  func.func @transform_1(%arg0: i32) -> (i32, i32) {
    %c0_i32 = arith.constant 0 : i32
    %c0_i32_0 = arith.constant 0 : i32
    %c0_i32_1 = arith.constant 0 : i32
    return %c0_i32, %c0_i32_0 : i32, i32
  }
  func.func @transform_2(%arg0: i32) -> (i32, i32) {
    %c0_i32 = arith.constant 0 : i32
    %c0_i32_0 = arith.constant 0 : i32
    %c0_i32_1 = arith.constant 0 : i32
    return %c0_i32, %c0_i32_0 : i32, i32
  }
  func.func @transform_3(%arg0: i32) -> i32 {
    %c0_i32 = arith.constant 0 : i32
    %c0_i32_0 = arith.constant 0 : i32
    return %c0_i32 : i32
  }
  func.func @transform_4(%arg0: i32) -> (i32, i32, i32) {
    %c0_i32 = arith.constant 0 : i32
    %c0_i32_0 = arith.constant 0 : i32
    %c0_i32_1 = arith.constant 0 : i32
    return %arg0, %c0_i32, %c0_i32_0 : i32, i32, i32
  }
}

</mosaic_0001>

<bundles_post_ra>
// kernel: tpu_custom_call.1
= control target key start
LH: loop header
LB: loop body
LE: loop exit
PB: predicated region body
PF: predicated region fallthrough
CT: control target
= control target key end

     0   :  { %9 = vsyncpa [#allocation3], 0  ;;  %s3322_s18 = smov [#allocation2]   ;;  %s5701_s0 = inlined_call_operand.vmem [shape: f32[4,128], index: 0, kind: input, shape index: {}]   ;;  %s5702_s1 = inlined_call_operand.vmem [shape: f32[128,4], index: 1, kind: input, shape index: {}]   ;;  %s5703_s2 = inlined_call_operand.vmem [shape: f32[128,4], index: 2, kind: input, shape index: {}]   ;;  %s5704_s3 = inlined_call_operand.vmem [shape: f32[2], index: 3, kind: input, shape index: {}]   ;;  %s5705_s4 = inlined_call_operand.vmem [shape: f32[1,128,4], index: 4, kind: output, shape index: {}]  }
   0x1   :  { %s21_s17 = sshll.u32 %s5704_s3, 4  ;;  %s22_s17 = int_to_ptr.vmem [resolvable:$true] %s21_s17 }
   0x2   :  { %24 = dma.vmem_to_smem %s22_s17, 16, %s3322_s18, [#allocation3]  }
   0x3   :  { %3320 = dma.done.wait [#allocation3], 16  }
   0x4   :  { %3321 = vsyncadd [#allocation3], 4294967280 }
   0x5   :  { %29 = sfence }
   0x6   :  { %v61_v0 = vld [vmem:[%s5702_s1 + $0x78] sm:$0xff]  ;;  %v60_v1 = vld [vmem:[%s5702_s1 + $0x70] sm:$0xff]  ;;  %v59_v2 = vld [vmem:[%s5702_s1 + $0x68] sm:$0xff]  ;;  %s2802_s6 = sld [smem:[#allocation2]]  ;;  %vm3124_vm12 = vcmask 31744  }
   0x7   :  { %v3360_v3 = vand.u32 4294901760, %v61_v0  ;;  %v3362_v4 = vand.u32 4294901760, %v60_v1  ;;  %v3364_v5 = vand.u32 4294901760, %v59_v2  ;;  %v58_v6 = vld [vmem:[%s5702_s1 + $0x60] sm:$0xff]  ;;  %v57_v7 = vld [vmem:[%s5702_s1 + $0x58] sm:$0xff]  ;;  %v56_v8 = vld [vmem:[%s5702_s1 + $0x50] sm:$0xff] }
   0x8   :  { %v3375_v9 = vand.u32 4294901760, %v58_v6  ;;  %v3377_v10 = vand.u32 4294901760, %v57_v7  ;;  %v3379_v11 = vand.u32 4294901760, %v56_v8  ;;  %v55_v12 = vld [vmem:[%s5702_s1 + $0x48] sm:$0xff]  ;;  %v54_v13 = vld [vmem:[%s5702_s1 + $0x40] sm:$0xff]  ;;  %v53_v17 = vld [vmem:[%s5702_s1 + $0x38] sm:$0xff] }
   0x9   :  { %3163 = vmatpush.msra.mxu2 %v3360_v3  ;;  %v3389_v14 = vsub.f32 %v61_v0, %v3360_v3  ;;  %v3392_v15 = vsub.f32 %v60_v1, %v3362_v4  ;;  %v3395_v16 = vsub.f32 %v59_v2, %v3364_v5  ;;  %63 = vmatpush.msra.mxu0 %v3360_v3  ;;  %v3401_v18 = vand.u32 4294901760, %v55_v12  ;;  %v52_v25 = vld [vmem:[%s5702_s1 + $0x30] sm:$0xff]  ;;  %v51_v33 = vld [vmem:[%s5702_s1 + $0x28] sm:$0xff]  ;;  %v50_v42 = vld [vmem:[%s5702_s1 + $0x20] sm:$0xff] }
   0xa   :  { %v3404_v19 = vsub.f32 %v58_v6, %v3375_v9  ;;  %v3407_v20 = vsub.f32 %v57_v7, %v3377_v10  ;;  %v3419_v24 = vand.u32 4294901760, %v54_v13  ;;  %v3428_v27 = vand.u32 4294901760, %v53_v17  ;;  %v38_v47 = vld [vmem:[%s5701_s0 + $0x40] sm:$0xff]  ;;  %v49_v49 = vld [vmem:[%s5702_s1 + $0x18] sm:$0xff]  ;;  %v48_v55 = vld [vmem:[%s5702_s1 + $0x10] sm:$0xff] }
   0xb   :  { %5931 = vst [vmem:[#allocation5_spill] sm:$0xff] %v3389_v14  ;;  %3164 = vmatpush.msra.mxu2 %v3362_v4  ;;  %v3411_v21 = vand.u32 4294901760, %v3389_v14  ;;  %v3414_v22 = vand.u32 4294901760, %v3392_v15  ;;  %v3417_v23 = vand.u32 4294901760, %v3395_v16  ;;  %65 = vmatpush.msra.mxu0 %v3362_v4  ;;  %v3431_v28 = vsub.f32 %v56_v8, %v3379_v11  ;;  %v47_v62 = vld [vmem:[%s5702_s1 + $0x8] sm:$0xff]  ;;  %v46_v2 = vld [vmem:[%s5702_s1] sm:$0xff] }
   0xc   :  { %5932 = vst [vmem:[#allocation6_spill] sm:$0xff] %v3392_v15  ;;  %v3426_v26 = vand.u32 4294901760, %v3404_v19  ;;  %v3441_v32 = vand.u32 4294901760, %v3407_v20  ;;  %v3449_v35 = vand.u32 4294901760, %v52_v25  ;;  %v3452_v36 = vsub.f32 %v55_v12, %v3401_v18  ;;  %v30_v12 = vld [vmem:[%s5701_s0] sm:$0xff] }
   0xd   :  { %5933 = vst [vmem:[#allocation7_spill] sm:$0xff] %v3395_v16  ;;  %3165 = vmatpush.msra.mxu2 %v3364_v5  ;;  %v226_v29 = vsub.f32 %v3389_v14, %v3411_v21  ;;  %v232_v30 = vsub.f32 %v3392_v15, %v3414_v22  ;;  %v238_v31 = vsub.f32 %v3395_v16, %v3417_v23  ;;  %v3460_v39 = vand.u32 4294901760, %v3431_v28 }
   0xe   :  { %5934 = vst [vmem:[#allocation8_spill] sm:$0xff] %v3401_v18  ;;  %67 = vmatpush.msra.mxu0 %v3364_v5  ;;  %v244_v34 = vsub.f32 %v3404_v19, %v3426_v26  ;;  %v3464_v40 = vsub.f32 %v54_v13, %v3419_v24  ;;  %v3466_v41 = vand.u32 4294901760, %v51_v33  ;;  %v250_v44 = vsub.f32 %v3407_v20, %v3441_v32 }
   0xf   :  { %5935 = vst [vmem:[#allocation9_spill] sm:$0xff] %v3404_v19  ;;  %3166 = vmatpush.msra.mxu2 %v3375_v9  ;;  %v3455_v37 = vand.u32 4294901760, %v226_v29  ;;  %v3457_v38 = vand.u32 4294901760, %v232_v30  ;;  %v3473_v43 = vand.u32 4294901760, %v238_v31  ;;  %v3478_v45 = vand.u32 4294901760, %v3452_v36  ;;  %v39_v30 = vld [vmem:[%s5701_s0 + $0x48] sm:$0xff] }
  0x10   :  { %5936 = vst [vmem:[#allocation10_spill] sm:$0xff] %v3407_v20  ;;  %69 = vmatpush.msra.mxu0 %v3375_v9  ;;  %v3481_v46 = vsub.f32 %v53_v17, %v3428_v27  ;;  %v3488_v48 = vand.u32 4294901760, %v3464_v40  ;;  %v3496_v50 = vand.u32 4294901760, %v244_v34  ;;  %v256_v51 = vsub.f32 %v3431_v28, %v3460_v39 }
  0x11   :  { %5937 = vst [vmem:[#allocation11_spill] sm:$0xff] %v3411_v21  ;;  %3167 = vmatpush.msra.mxu2 %v3377_v10  ;;  %3179 = vmatpush.msra.mxu3 %v3455_v37  ;;  %v3500_v52 = vand.u32 4294901760, %v50_v42  ;;  %v3503_v53 = vsub.f32 %v52_v25, %v3449_v35  ;;  %v3513_v56 = vand.u32 4294901760, %v38_v47  ;;  %v3517_v57 = vand.u32 4294901760, %v250_v44 }
  0x12   :  { %5938 = vst [vmem:[#allocation12_spill] sm:$0xff] %v3414_v22  ;;  %228 = vmatpush.msra.mxu1 %v3455_v37  ;;  %71 = vmatpush.msra.mxu0 %v3377_v10  ;;  %v3507_v54 = vand.u32 4294901760, %v3481_v46  ;;  %v262_v58 = vsub.f32 %v3452_v36, %v3478_v45  ;;  %v3521_v59 = vand.u32 4294901760, %v49_v49  ;;  %v3524_v60 = vsub.f32 %v51_v33, %v3466_v41 }
  0x13   :  { %5939 = vst [vmem:[#allocation13_spill] sm:$0xff] %v3417_v23  ;;  %3168 = vmatpush.msra.mxu2 %v3379_v11  ;;  %3180 = vmatpush.msra.mxu3 %v3457_v38  ;;  %v268_v61 = vsub.f32 %v3464_v40, %v3488_v48  ;;  %v3535_v63 = vand.u32 4294901760, %v256_v51  ;;  %v3537_v0 = vand.u32 4294901760, %v48_v55  ;;  %v3540_v1 = vand.u32 4294901760, %v3503_v53 }
  0x14   :  { %5940 = vst [vmem:[#allocation14_spill] sm:$0xff] %v3419_v24  ;;  %234 = vmatpush.msra.mxu1 %v3457_v38  ;;  %73 = vmatpush.msra.mxu0 %v3379_v11  ;;  %v3546_v6 = vsub.f32 %v50_v42, %v3500_v52  ;;  %v274_v7 = vsub.f32 %v3481_v46, %v3507_v54  ;;  %v3560_v13 = vand.u32 4294901760, %v262_v58  ;;  %v3562_v17 = vand.u32 4294901760, %v47_v62 }
  0x15   :  { %5941 = vst [vmem:[#allocation15_spill] sm:$0xff] %v3426_v26  ;;  %3169 = vmatpush.msra.mxu2 %v3401_v18  ;;  %3181 = vmatpush.msra.mxu3 %v3473_v43  ;;  %v3553_v8 = vsub.f32 %v38_v47, %v3513_v56  ;;  %v3565_v25 = vand.u32 4294901760, %v3524_v60  ;;  %v3568_v29 = vsub.f32 %v49_v49, %v3521_v59  ;;  %v3573_v31 = vand.u32 4294901760, %v268_v61 }
  0x16   :  { %5942 = vst [vmem:[#allocation16_spill] sm:$0xff] %v3428_v27  ;;  %240 = vmatpush.msra.mxu1 %v3473_v43  ;;  %75 = vmatpush.msra.mxu0 %v3401_v18  ;;  %v3576_v33 = vand.u32 4294901760, %v46_v2  ;;  %v280_v34 = vsub.f32 %v3503_v53, %v3540_v1  ;;  %v3584_v42 = vand.u32 4294901760, %v3546_v6  ;;  %v3587_v44 = vsub.f32 %v48_v55, %v3537_v0 }
  0x17   :  { %5943 = vst [vmem:[#allocation17_spill] sm:$0xff] %v3431_v28  ;;  %3170 = vmatpush.msra.mxu2 %v3419_v24  ;;  %3182 = vmatpush.msra.mxu3 %v3496_v50  ;;  %v3589_v47 = vand.u32 4294901760, %v30_v12  ;;  %v3591_v49 = vand.u32 4294901760, %v274_v7  ;;  %v3595_v51 = vand.u32 4294901760, %v3553_v8  ;;  %v3598_v58 = vand.u32 4294901760, %v39_v30 }
  0x18   :  { %5944 = vst [vmem:[#allocation18_spill] sm:$0xff] %v3441_v32  ;;  %246 = vmatpush.msra.mxu1 %v3496_v50  ;;  %77 = vmatpush.msra.mxu0 %v3419_v24  ;;  %v286_v55 = vsub.f32 %v3524_v60, %v3565_v25  ;;  %v3605_v61 = vand.u32 4294901760, %v3568_v29  ;;  %v3608_v7 = vsub.f32 %v47_v62, %v3562_v17 }
  0x19   :  { %5945 = vst [vmem:[#allocation19_spill] sm:$0xff] %v3449_v35  ;;  %3171 = vmatpush.msra.mxu2 %v3428_v27  ;;  %3183 = vmatpush.msra.mxu3 %v3517_v57  ;;  %v292_v62 = vsub.f32 %v3546_v6, %v3584_v42 }
  0x1a   :  { %5946 = vst [vmem:[#allocation20_spill] sm:$0xff] %v3452_v36  ;;  %252 = vmatpush.msra.mxu1 %v3517_v57  ;;  %79 = vmatpush.msra.mxu0 %v3428_v27 }
  0x1b   :  { %5947 = vst [vmem:[#allocation21_spill] sm:$0xff] %v3455_v37  ;;  %3172 = vmatpush.msra.mxu2 %v3449_v35  ;;  %3184 = vmatpush.msra.mxu3 %v3535_v63  ;;  %v40_v37 = vld [vmem:[%s5701_s0 + $0x50] sm:$0xff] }
  0x1c   :  { %5948 = vst [vmem:[#allocation22_spill] sm:$0xff] %v3457_v38  ;;  %258 = vmatpush.msra.mxu1 %v3535_v63  ;;  %81 = vmatpush.msra.mxu0 %v3449_v35  ;;  %v3635_v38 = vsub.f32 %v39_v30, %v3598_v58  ;;  %v3652_v30 = vand.u32 4294901760, %v3608_v7 }
  0x1d   :  { %5949 = vst [vmem:[#allocation23_spill] sm:$0xff] %v3460_v39  ;;  %3173 = vmatpush.msra.mxu2 %v3466_v41  ;;  %3185 = vmatpush.msra.mxu3 %v3560_v13 }
  0x1e   :  { %5950 = vst [vmem:[#allocation24_spill] sm:$0xff] %v3464_v40  ;;  %264 = vmatpush.msra.mxu1 %v3560_v13  ;;  %83 = vmatpush.msra.mxu0 %v3466_v41 }
  0x1f   :  { %5951 = vst [vmem:[#allocation25_spill] sm:$0xff] %v3466_v41  ;;  %3174 = vmatpush.msra.mxu2 %v3500_v52  ;;  %3186 = vmatpush.msra.mxu3 %v3573_v31 }
  0x20   :  { %5952 = vst [vmem:[#allocation26_spill] sm:$0xff] %v3473_v43  ;;  %v3628_v43 = vsub.f32 %v46_v2, %v3576_v33  ;;  %270 = vmatpush.msra.mxu1 %v3573_v31  ;;  %85 = vmatpush.msra.mxu0 %v3500_v52  ;;  %v3647_v2 = vand.u32 4294901760, %v286_v55 }
  0x21   :  { %5953 = vst [vmem:[#allocation27_spill] sm:$0xff] %v3478_v45  ;;  %3175 = vmatpush.msra.mxu2 %v3521_v59  ;;  %3187 = vmatpush.msra.mxu3 %v3591_v49 }
  0x22   :  { %5954 = vst [vmem:[#allocation28_spill] sm:$0xff] %v3481_v46  ;;  %276 = vmatpush.msra.mxu1 %v3591_v49  ;;  %87 = vmatpush.msra.mxu0 %v3521_v59 }
  0x23   :  { %5955 = vst [vmem:[#allocation29_spill] sm:$0xff] %v3488_v48  ;;  %3176 = vmatpush.msra.mxu2 %v3537_v0 }
  0x24   :  { %5956 = vst [vmem:[#allocation30_spill] sm:$0xff] %v3496_v50  ;;  %v3620_v50 = vand.u32 4294901760, %v280_v34  ;;  %89 = vmatpush.msra.mxu0 %v3537_v0 }
  0x25   :  { %5957 = vst [vmem:[#allocation31_spill] sm:$0xff] %v3500_v52  ;;  %3177 = vmatpush.msra.mxu2 %v3562_v17 }
  0x26   :  { %5958 = vst [vmem:[#allocation32_spill] sm:$0xff] %v3503_v53  ;;  %3188 = vmatpush.msra.mxu3 %v3620_v50  ;;  %282 = vmatpush.msra.mxu1 %v3620_v50 }
  0x27   :  { %5959 = vst [vmem:[#allocation33_spill] sm:$0xff] %v3507_v54  ;;  %91 = vmatpush.msra.mxu0 %v3562_v17  ;;  %3178 = vmatpush.msra.mxu2 %v3576_v33 }
  0x28   :  { %5960 = vst [vmem:[#allocation34_spill] sm:$0xff] %v3513_v56  ;;  %3189 = vmatpush.msra.mxu3 %v3647_v2  ;;  %288 = vmatpush.msra.mxu1 %v3647_v2 }
  0x29   :  { %5961 = vst [vmem:[#allocation35_spill] sm:$0xff] %v3517_v57  ;;  %v31_v57 = vld [vmem:[%s5701_s0 + $0x8] sm:$0xff]  ;;  %386 = vmatpush.msrb.mxu2 %v3389_v14  ;;  %93 = vmatpush.msra.mxu0 %v3576_v33 }
  0x2a   :  { %5962 = vst [vmem:[#allocation36_spill] sm:$0xff] %v3521_v59 }
  0x2b   :  { %5963 = vst [vmem:[#allocation37_spill] sm:$0xff] %v3524_v60  ;;  %389 = vmatpush.msrb.mxu2 %v3392_v15  ;;  %645 = vmatpush.msrb.mxu0 %v3411_v21  ;;  %v42_v21 = vld [vmem:[%s5701_s0 + $0x60] sm:$0xff] }
  0x2c   :  { %5964 = vst [vmem:[#allocation38_spill] sm:$0xff] %v3535_v63  ;;  %v3611_v63 = vsub.f32 %v30_v12, %v3589_v47  ;;  %v3625_v12 = vand.u32 4294901760, %v3587_v44 }
  0x2d   :  { %5965 = vst [vmem:[#allocation39_spill] sm:$0xff] %v3537_v0  ;;  %392 = vmatpush.msrb.mxu2 %v3395_v16  ;;  %649 = vmatpush.msrb.mxu0 %v3414_v22 }
  0x2e   :  { %5966 = vst [vmem:[#allocation40_spill] sm:$0xff] %v3540_v1  ;;  %v3638_v34 = vand.u32 4294901760, %v3611_v63  ;;  %v304_v55 = vsub.f32 %v3587_v44, %v3625_v12 }
  0x2f   :  { %5967 = vst [vmem:[#allocation41_spill] sm:$0xff] %v3546_v6  ;;  %395 = vmatpush.msrb.mxu2 %v3404_v19  ;;  %653 = vmatpush.msrb.mxu0 %v3417_v23 }
  0x30   :  { %5968 = vst [vmem:[#allocation42_spill] sm:$0xff] %v3553_v8 }
  0x31   :  { %5969 = vst [vmem:[#allocation43_spill] sm:$0xff] %v3560_v13  ;;  %v161_v13 = vsub.f32 %v3553_v8, %v3595_v51  ;;  %v3663_v8 = vand.u32 4294901760, %v3628_v43  ;;  %398 = vmatpush.msrb.mxu2 %v3407_v20  ;;  %657 = vmatpush.msrb.mxu0 %v3426_v26 }
  0x32   :  { %5970 = vst [vmem:[#allocation44_spill] sm:$0xff] %v3562_v17 }
  0x33   :  { %5971 = vst [vmem:[#allocation45_spill] sm:$0xff] %v3565_v25  ;;  %v3667_v25 = vand.u32 4294901760, %v161_v13  ;;  %v310_v13 = vsub.f32 %v3608_v7, %v3652_v30  ;;  %401 = vmatpush.msrb.mxu2 %v3431_v28  ;;  %661 = vmatpush.msrb.mxu0 %v3441_v32 }
  0x34   :  { %5972 = vst [vmem:[#allocation46_spill] sm:$0xff] %v3568_v29 }
  0x35   :  { %5973 = vst [vmem:[#allocation47_spill] sm:$0xff] %v3573_v31  ;;  %v298_v31 = vsub.f32 %v3568_v29, %v3605_v61  ;;  %163 = vmatmul.f32.vlgmr.msra.gmra.mxu2 %v3667_v25  ;;  %665 = vmatpush.msrb.mxu0 %v3460_v39 }
  0x36   :  { %5974 = vst [vmem:[#allocation48_spill] sm:$0xff] %v3576_v33  ;;  %404 = vmatpush.msrb.mxu2 %v3452_v36 }
  0x37   :  { %5975 = vst [vmem:[#allocation49_spill] sm:$0xff] %v3584_v42  ;;  %v3643_v42 = vand.u32 4294901760, %v31_v57  ;;  %669 = vmatpush.msrb.mxu0 %v3478_v45 }
  0x38   :  { %5976 = vst [vmem:[#allocation50_spill] sm:$0xff] %v3587_v44  ;;  %407 = vmatpush.msrb.mxu2 %v3464_v40 }
  0x39   :  { %5977 = vst [vmem:[#allocation51_spill] sm:$0xff] %v3591_v49  ;;  %v3671_v49 = vand.u32 4294901760, %v3635_v38  ;;  %v3677_v59 = vsub.f32 %v31_v57, %v3643_v42  ;;  %v3692_v57 = vand.u32 4294901760, %v304_v55  ;;  %v41_v55 = vld [vmem:[%s5701_s0 + $0x58] sm:$0xff]  ;;  %673 = vmatpush.msrb.mxu0 %v3488_v48 }
  0x3a   :  { %5978 = vst [vmem:[#allocation52_spill] sm:$0xff] %v3595_v51  ;;  %v3658_v51 = vand.u32 4294901760, %v292_v62  ;;  %v97_v62 = vsub.f32 %v3611_v63, %v3638_v34  ;;  %410 = vmatpush.msrb.mxu2 %v3481_v46  ;;  %v44_v46 = vld [vmem:[%s5701_s0 + $0x70] sm:$0xff] }
  0x3b   :  { %5979 = vst [vmem:[#allocation53_spill] sm:$0xff] %v3598_v58  ;;  %677 = vmatpush.msrb.mxu0 %v3507_v54 }
  0x3c   :  { %5980 = vst [vmem:[#allocation54_spill] sm:$0xff] %v3605_v61  ;;  %v3665_v61 = vand.u32 4294901760, %v40_v37  ;;  %3190 = vmatpush.msra.mxu3 %v3658_v51  ;;  %294 = vmatpush.msra.mxu1 %v3658_v51 }
  0x3d   :  { %5981 = vst [vmem:[#allocation55_spill] sm:$0xff] %v3608_v7  ;;  %413 = vmatpush.msrb.mxu2 %v3503_v53  ;;  %681 = vmatpush.msrb.mxu0 %v3540_v1 }
  0x3e   :  { %5982 = vst [vmem:[#allocation56_spill] sm:$0xff] %v3611_v63  ;;  %v3703_v63 = vand.u32 4294901760, %v97_v62 }
  0x3f   :  { %5983 = vst [vmem:[#allocation57_spill] sm:$0xff] %v3620_v50  ;;  %v32_v50 = vld [vmem:[%s5701_s0 + $0x10] sm:$0xff]  ;;  %416 = vmatpush.msrb.mxu2 %v3524_v60 }
  0x40   :  { %5984 = vst [vmem:[#allocation58_spill] sm:$0xff] %v3625_v12  ;;  %v3681_v12 = vand.u32 4294901760, %v298_v31  ;;  %v316_v31 = vsub.f32 %v3628_v43, %v3663_v8  ;;  %99 = vmatmul.f32.vlgmr.msra.gmra.mxu0 %v3703_v63 }
  0x41   :  { %5985 = vst [vmem:[#allocation59_spill] sm:$0xff] %v3628_v43  ;;  %419 = vmatpush.msrb.mxu2 %v3546_v6 }
  0x42   :  { %5986 = vst [vmem:[#allocation60_spill] sm:$0xff] %v3635_v38  ;;  %3191 = vmatpush.msra.mxu3 %v3681_v12  ;;  %300 = vmatpush.msra.mxu1 %v3681_v12  ;;  %v3720_v62 = vand.u32 4294901760, %v316_v31 }
  0x43   :  { %5987 = vst [vmem:[#allocation61_spill] sm:$0xff] %v3638_v34  ;;  %v3697_v34 = vsub.f32 %v40_v37, %v3665_v61  ;;  %v3714_v37 = vand.u32 4294901760, %v310_v13  ;;  %422 = vmatpush.msrb.mxu2 %v3568_v29  ;;  %v6034_v29 = vld [vmem:[#allocation45_spill] sm:$0xff] }
  0x44   :  { %5988 = vst [vmem:[#allocation62_spill] sm:$0xff] %v3647_v2  ;;  %v169_v2 = vsub.f32 %v3635_v38, %v3671_v49  ;;  %3192 = vmatpush.msra.mxu3 %v3692_v57  ;;  %306 = vmatpush.msra.mxu1 %v3692_v57 }
  0x45   :  { %5989 = vst [vmem:[#allocation63_spill] sm:$0xff] %v3652_v30  ;;  %v3706_v30 = vand.u32 4294901760, %v3677_v59  ;;  %v3730_v13 = vand.u32 4294901760, %v3697_v34  ;;  %685 = vmatpush.msrb.mxu0 %v6034_v29  ;;  %425 = vmatpush.msrb.mxu2 %v3587_v44 }
  0x46   :  { %5990 = vst [vmem:[#allocation64_spill] sm:$0xff] %v3658_v51  ;;  %v3725_v51 = vand.u32 4294901760, %v169_v2  ;;  %3193 = vmatpush.msra.mxu3 %v3714_v37  ;;  %v33_v2 = vld [vmem:[%s5701_s0 + $0x18] sm:$0xff]  ;;  %312 = vmatpush.msra.mxu1 %v3714_v37 }
  0x47   :  { %5991 = vst [vmem:[#allocation65_spill] sm:$0xff] %v3663_v8  ;;  %v3711_v8 = vand.u32 4294901760, %v32_v50  ;;  %v105_v14 = vsub.f32 %v3677_v59, %v3706_v30  ;;  %v3761_v19 = vand.u32 4294901760, %v33_v2  ;;  %428 = vmatpush.msrb.mxu2 %v3608_v7 }
  0x48   :  { %5992 = vst [vmem:[#allocation66_spill] sm:$0xff] %v3665_v61  ;;  %3194 = vmatpush.msra.mxu3 %v3720_v62  ;;  %171 = vmatmul.f32.gmra.mxu2 %v3725_v51 }
  0x49   :  { %5993 = vst [vmem:[#allocation67_spill] sm:$0xff] %v3667_v25  ;;  %v3723_v25 = vand.u32 4294901760, %v41_v55  ;;  %352 = vmatmul.f32.vlgmr.msra.gmra.mxu3 %v3513_v56  ;;  %v3753_v16 = vand.u32 4294901760, %v105_v14  ;;  %318 = vmatpush.msra.mxu1 %v3720_v62  ;;  %v3769_v14 = vand.u32 4294901760, %v42_v21  ;;  %v3781_v22 = vsub.f32 %v33_v2, %v3761_v19 }
  0x4a   :  { %5994 = vst [vmem:[#allocation68_spill] sm:$0xff] %v3671_v49  ;;  %514 = vmatpush.msrb.mxu3 %v3360_v3  ;;  %320 = vmatmul.f32.vlgmr.msra.gmra.mxu1 %v3589_v47 }
  0x4b   :  { %5995 = vst [vmem:[#allocation69_spill] sm:$0xff] %v3677_v59  ;;  %v3747_v31 = vsub.f32 %v41_v55, %v3723_v25  ;;  %772 = vmatpush.msrb.mxu1 %v3360_v3  ;;  %107 = vmatmul.f32.gmra.mxu0 %v3753_v16  ;;  %v3793_v20 = vsub.f32 %v42_v21, %v3769_v14  ;;  %v3802_v23 = vand.u32 4294901760, %v3781_v22  ;;  %v43_v21 = vld [vmem:[%s5701_s0 + $0x68] sm:$0xff] }
  0x4c   :  { %5996 = vst [vmem:[#allocation70_spill] sm:$0xff] %v3681_v12  ;;  %v3735_v12 = vsub.f32 %v32_v50, %v3711_v8  ;;  %v177_v50 = vsub.f32 %v3697_v34, %v3730_v13  ;;  %516 = vmatpush.msrb.mxu3 %v3362_v4  ;;  %431 = vmatpush.msrb.mxu2 %v3628_v43 }
  0x4d   :  { %5997 = vst [vmem:[#allocation71_spill] sm:$0xff] %v3692_v57  ;;  %774 = vmatpush.msrb.mxu1 %v3362_v4  ;;  %v121_v26 = vsub.f32 %v3781_v22, %v3802_v23  ;;  %v3824_v57 = vand.u32 4294901760, %v43_v21 }
  0x4e   :  { %5998 = vst [vmem:[#allocation72_spill] sm:$0xff] %v3697_v34  ;;  %v3756_v15 = vand.u32 4294901760, %v3735_v12  ;;  %v3771_v55 = vand.u32 4294901760, %v177_v50  ;;  %518 = vmatpush.msrb.mxu3 %v3364_v5  ;;  %v34_v50 = vld [vmem:[%s5701_s0 + $0x20] sm:$0xff] }
  0x4f   :  { %5999 = vst [vmem:[#allocation73_spill] sm:$0xff] %v3703_v63  ;;  %776 = vmatpush.msrb.mxu1 %v3364_v5  ;;  %v3804_v28 = vand.u32 4294901760, %v34_v50  ;;  %v3845_v32 = vsub.f32 %v43_v21, %v3824_v57 }
  0x50   :  { %6000 = vst [vmem:[#allocation74_spill] sm:$0xff] %v3706_v30  ;;  %520 = vmatpush.msrb.mxu3 %v3375_v9  ;;  %179 = vmatmul.f32.gmra.mxu2 %v3771_v55 }
  0x51   :  { %6001 = vst [vmem:[#allocation75_spill] sm:$0xff] %v3711_v8  ;;  %356 = vmatmul.f32.gmra.mxu3 %v3598_v58  ;;  %778 = vmatpush.msrb.mxu1 %v3375_v9  ;;  %v3827_v36 = vsub.f32 %v34_v50, %v3804_v28  ;;  %v3842_v50 = vand.u32 4294901760, %v121_v26  ;;  %v3861_v26 = vand.u32 4294901760, %v44_v46 }
  0x52   :  { %6002 = vst [vmem:[#allocation76_spill] sm:$0xff] %v3714_v37  ;;  %522 = vmatpush.msrb.mxu3 %v3377_v10  ;;  %324 = vmatmul.f32.gmra.mxu1 %v3643_v42 }
  0x53   :  { %6003 = vst [vmem:[#allocation77_spill] sm:$0xff] %v3720_v62  ;;  %v113_v62 = vsub.f32 %v3735_v12, %v3756_v15  ;;  %780 = vmatpush.msrb.mxu1 %v3377_v10  ;;  %v3883_v53 = vsub.f32 %v44_v46, %v3861_v26  ;;  %v45_v46 = vld [vmem:[%s5701_s0 + $0x78] sm:$0xff] }
  0x54   :  { %6004 = vst [vmem:[#allocation78_spill] sm:$0xff] %v3723_v25  ;;  %524 = vmatpush.msrb.mxu3 %v3379_v11  ;;  %v3915_v54 = vand.u32 4294901760, %v45_v46 }
  0x55   :  { %6005 = vst [vmem:[#allocation79_spill] sm:$0xff] %v3725_v51  ;;  %v3776_v51 = vand.u32 4294901760, %v3747_v31  ;;  %v3799_v37 = vand.u32 4294901760, %v113_v62  ;;  %v3816_v62 = vand.u32 4294901760, %v3793_v20  ;;  %782 = vmatpush.msrb.mxu1 %v3379_v11 }
  0x56   :  { %6006 = vst [vmem:[#allocation80_spill] sm:$0xff] %v3730_v13  ;;  %526 = vmatpush.msrb.mxu3 %v3401_v18 }
  0x57   :  { %6007 = vst [vmem:[#allocation81_spill] sm:$0xff] %v3735_v12  ;;  %v185_v2 = vsub.f32 %v3747_v31, %v3776_v51  ;;  %115 = vmatmul.f32.gmra.mxu0 %v3799_v37  ;;  %v193_v40 = vsub.f32 %v3793_v20, %v3816_v62  ;;  %784 = vmatpush.msrb.mxu1 %v3401_v18 }
  0x58   :  { %6008 = vst [vmem:[#allocation82_spill] sm:$0xff] %v3747_v31  ;;  %528 = vmatpush.msrb.mxu3 %v3419_v24 }
  0x59   :  { %6009 = vst [vmem:[#allocation83_spill] sm:$0xff] %v3753_v16  ;;  %360 = vmatmul.f32.gmra.mxu3 %v3665_v61  ;;  %v3863_v21 = vand.u32 4294901760, %v193_v40  ;;  %v36_v40 = vld [vmem:[%s5701_s0 + $0x30] sm:$0xff]  ;;  %786 = vmatpush.msrb.mxu1 %v3419_v24  ;;  %v6032_v24 = vld [vmem:[#allocation36_spill] sm:$0xff] }
  0x5a   :  { %6010 = vst [vmem:[#allocation84_spill] sm:$0xff] %v3756_v15  ;;  %530 = vmatpush.msrb.mxu3 %v3428_v27  ;;  %328 = vmatmul.f32.gmra.mxu1 %v3711_v8 }
  0x5b   :  { %6011 = vst [vmem:[#allocation85_spill] sm:$0xff] %v3761_v19  ;;  %788 = vmatpush.msrb.mxu1 %v3428_v27 }
  0x5c   :  { %6012 = vst [vmem:[#allocation86_spill] sm:$0xff] %v3771_v55  ;;  %v3818_v55 = vand.u32 4294901760, %v185_v2  ;;  %v35_v2 = vld [vmem:[%s5701_s0 + $0x28] sm:$0xff]  ;;  %532 = vmatpush.msrb.mxu3 %v3449_v35 }
  0x5d   :  { %6013 = vst [vmem:[#allocation87_spill] sm:$0xff] %v3776_v51  ;;  %v3853_v16 = vand.u32 4294901760, %v35_v2  ;;  %790 = vmatpush.msrb.mxu1 %v3449_v35 }
  0x5e   :  { %6014 = vst [vmem:[#allocation88_spill] sm:$0xff] %v3781_v22  ;;  %187 = vmatmul.f32.gmra.mxu2 %v3818_v55  ;;  %534 = vmatpush.msrb.mxu3 %v3466_v41 }
  0x5f   :  { %6015 = vst [vmem:[#allocation89_spill] sm:$0xff] %v3793_v20  ;;  %123 = vmatmul.f32.gmra.mxu0 %v3842_v50  ;;  %v3873_v45 = vsub.f32 %v35_v2, %v3853_v16  ;;  %792 = vmatpush.msrb.mxu1 %v3466_v41 }
  0x60   :  { %6016 = vst [vmem:[#allocation90_spill] sm:$0xff] %v3799_v37  ;;  %v3848_v37 = vand.u32 4294901760, %v3827_v36  ;;  %536 = vmatpush.msrb.mxu3 %v3500_v52 }
  0x61   :  { %6017 = vst [vmem:[#allocation91_spill] sm:$0xff] %v3802_v23  ;;  %364 = vmatmul.f32.gmra.mxu3 %v3723_v25  ;;  %v3894_v48 = vand.u32 4294901760, %v3873_v45  ;;  %794 = vmatpush.msrb.mxu1 %v3500_v52 }
  0x62   :  { %6018 = vst [vmem:[#allocation92_spill] sm:$0xff] %v3804_v28  ;;  %v129_v39 = vsub.f32 %v3827_v36, %v3848_v37  ;;  %332 = vmatmul.f32.gmra.mxu1 %v3761_v19  ;;  %538 = vmatpush.msrb.mxu3 %v6032_v24 }
  0x63   :  { %6019 = vst [vmem:[#allocation93_spill] sm:$0xff] %v3818_v55  ;;  %v3867_v55 = vand.u32 4294901760, %v3845_v32  ;;  %v137_v27 = vsub.f32 %v3873_v45, %v3894_v48  ;;  %796 = vmatpush.msrb.mxu1 %v6032_v24  ;;  %v879_v24 = vld [vmem:[%s5703_s2 + $0x58] sm:$0xff] }
  0x64   :  { %6020 = vst [vmem:[#allocation94_spill] sm:$0xff] %v3827_v36  ;;  %v3891_v60 = vand.u32 4294901760, %v129_v39  ;;  %v3911_v39 = vand.u32 4294901760, %v3883_v53  ;;  %540 = vmatpush.msrb.mxu3 %v3537_v0 }
  0x65   :  { %6021 = vst [vmem:[#allocation95_spill] sm:$0xff] %v3842_v50  ;;  %v201_v2 = vsub.f32 %v3845_v32, %v3867_v55  ;;  %v3899_v50 = vand.u32 4294901760, %v36_v40  ;;  %v3945_v44 = vand.u32 4294901760, %v137_v27  ;;  %798 = vmatpush.msrb.mxu1 %v3537_v0 }
  0x66   :  { %6022 = vst [vmem:[#allocation96_spill] sm:$0xff] %v3848_v37  ;;  %195 = vmatmul.f32.gmra.mxu2 %v3863_v21  ;;  %542 = vmatpush.msrb.mxu3 %v3562_v17 }
  0x67   :  { %6023 = vst [vmem:[#allocation97_spill] sm:$0xff] %v3853_v16  ;;  %v3917_v63 = vand.u32 4294901760, %v201_v2  ;;  %131 = vmatmul.f32.gmra.mxu0 %v3891_v60  ;;  %v3924_v1 = vsub.f32 %v36_v40, %v3899_v50  ;;  %v37_v2 = vld [vmem:[%s5701_s0 + $0x38] sm:$0xff]  ;;  %v3939_v40 = vsub.f32 %v45_v46, %v3915_v54  ;;  %v882_v46 = vld [vmem:[%s5703_s2 + $0x70] sm:$0xff]  ;;  %800 = vmatpush.msrb.mxu1 %v3562_v17 }
  0x68   :  { %6024 = vst [vmem:[#allocation98_spill] sm:$0xff] %v3863_v21  ;;  %v883_v21 = vld [vmem:[%s5703_s2 + $0x78] sm:$0xff]  ;;  %v3950_v41 = vand.u32 4294901760, %v37_v2  ;;  %544 = vmatpush.msrb.mxu3 %v3576_v33 }
  0x69   :  { %6025 = vst [vmem:[#allocation99_spill] sm:$0xff] %v3873_v45  ;;  %v3906_v6 = vand.u32 4294901760, %v883_v21  ;;  %368 = vmatmul.f32.gmra.mxu3 %v3769_v14  ;;  %v3948_v29 = vand.u32 4294901760, %v3924_v1  ;;  %v3966_v7 = vand.u32 4294901760, %v3939_v40  ;;  %802 = vmatpush.msrb.mxu1 %v3576_v33 }
  0x6a   :  { %6026 = vst [vmem:[#allocation100_spill] sm:$0xff] %v3891_v60  ;;  %v209_v60 = vsub.f32 %v3883_v53, %v3911_v39  ;;  %336 = vmatmul.f32.gmra.mxu1 %v3804_v28  ;;  %v3975_v52 = vsub.f32 %v37_v2, %v3950_v41 }
  0x6b   :  { %6027 = vst [vmem:[#allocation101_spill] sm:$0xff] %v3894_v48  ;;  %v3927_v18 = vsub.f32 %v883_v21, %v3906_v6  ;;  %v6036_v21 = vld [vmem:[#allocation49_spill] sm:$0xff]  ;;  %v145_v43 = vsub.f32 %v3924_v1, %v3948_v29  ;;  %885 = vmatpush.msra.mxu2 %v3906_v6  ;;  %v217_v2 = vsub.f32 %v3939_v40, %v3966_v7 }
  0x6c   :  { %6028 = vst [vmem:[#allocation102_spill] sm:$0xff] %v3899_v50  ;;  %689 = vmatpush.msrb.mxu0 %v6036_v21  ;;  %v6042_v21 = vld [vmem:[#allocation54_spill] sm:$0xff]  ;;  %1336 = vmatpush.msra.mxu1 %v3906_v6 }
  0x6d   :  { %6029 = vst [vmem:[#allocation103_spill] sm:$0xff] %v3911_v39  ;;  %v5793_v35 = vand.u32 4294901760, %v3927_v18  ;;  %v6044_v39 = vld [vmem:[#allocation58_spill] sm:$0xff] }
  0x6e   :  { %6030 = vst [vmem:[#allocation104_spill] sm:$0xff] %v3915_v54  ;;  %203 = vmatmul.f32.gmra.mxu2 %v3917_v63  ;;  %693 = vmatpush.msrb.mxu0 %v6042_v21  ;;  %v6045_v21 = vld [vmem:[#allocation63_spill] sm:$0xff] }
  0x6f   :  { %6031 = vst [vmem:[#allocation105_spill] sm:$0xff] %v3917_v63  ;;  %v1048_v27 = vsub.f32 %v3927_v18, %v5793_v35  ;;  %v3963_v63 = vand.u32 4294901760, %v209_v60  ;;  %139 = vmatmul.f32.gmra.mxu0 %v3945_v44  ;;  %v3977_v60 = vand.u32 4294901760, %v882_v46 }
  0x70   :  { %6033 = vst [vmem:[#allocation106_spill] sm:$0xff] %v3924_v1  ;;  %697 = vmatpush.msrb.mxu0 %v6044_v39  ;;  %v3991_v39 = vand.u32 4294901760, %v3975_v52 }
  0x71   :  { %6035 = vst [vmem:[#allocation107_spill] sm:$0xff] %v3939_v40  ;;  %v1049_v35 = vand.u32 4294901760, %v1048_v27  ;;  %372 = vmatmul.f32.gmra.mxu3 %v3824_v57  ;;  %v3988_v27 = vand.u32 4294901760, %v145_v43  ;;  %887 = vmatpush.msra.mxu2 %v3977_v60 }
  0x72   :  { %6037 = vst [vmem:[#allocation108_spill] sm:$0xff] %v3945_v44  ;;  %701 = vmatpush.msrb.mxu0 %v6045_v21  ;;  %v3994_v44 = vsub.f32 %v882_v46, %v3977_v60  ;;  %v6048_v21 = vld [vmem:[#allocation65_spill] sm:$0xff]  ;;  %340 = vmatmul.f32.gmra.mxu1 %v3853_v16  ;;  %v4008_v46 = vand.u32 4294901760, %v217_v2 }
  0x73   :  { %6038 = vst [vmem:[#allocation109_spill] sm:$0xff] %v3948_v29  ;;  %1050 = vmatpush.msra.mxu3 %v1049_v35  ;;  %v881_v35 = vld [vmem:[%s5703_s2 + $0x68] sm:$0xff]  ;;  %1338 = vmatpush.msra.mxu1 %v3977_v60 }
  0x74   :  { %6039 = vst [vmem:[#allocation110_spill] sm:$0xff] %v3950_v41  ;;  %705 = vmatpush.msrb.mxu0 %v6048_v21  ;;  %v5803_v43 = vand.u32 4294901760, %v3994_v44  ;;  %v153_v21 = vsub.f32 %v3975_v52, %v3991_v39 }
  0x75   :  { %6040 = vst [vmem:[#allocation111_spill] sm:$0xff] %v3963_v63 }
  0x76   :  { %6041 = vst [vmem:[#allocation112_spill] sm:$0xff] %v3966_v7  ;;  %211 = vmatmul.f32.gmra.mxu2 %v3963_v63  ;;  %v4001_v63 = vand.u32 4294901760, %v881_v35  ;;  %1208 = vmatpush.msra.mxu0 %v3927_v18  ;;  %v1054_v33 = vsub.f32 %v3994_v44, %v5803_v43  ;;  %v4022_v2 = vand.u32 4294901760, %v153_v21  ;;  %v880_v43 = vld [vmem:[%s5703_s2 + $0x60] sm:$0xff]  ;;  %v4049_v7 = vand.u32 4294901760, %v879_v24 }
  0x77   :  { %6043 = vst [vmem:[#allocation113_spill] sm:$0xff] %v3975_v52  ;;  %147 = vmatmul.f32.gmra.mxu0 %v3988_v27  ;;  %v4030_v0 = vand.u32 4294901760, %v880_v43 }
  0x78   :  { %6046 = vst [vmem:[#allocation114_spill] sm:$0xff] %v3988_v27  ;;  %889 = vmatpush.msra.mxu2 %v4001_v63  ;;  %1211 = vmatpush.msra.mxu0 %v3994_v44  ;;  %v1055_v17 = vand.u32 4294901760, %v1054_v33  ;;  %v4025_v27 = vsub.f32 %v881_v35, %v4001_v63 }
  0x79   :  { %6047 = vst [vmem:[#allocation115_spill] sm:$0xff] %v3991_v39  ;;  %1340 = vmatpush.msra.mxu1 %v4001_v63  ;;  %376 = vmatmul.f32.gmra.mxu3 %v3861_v26 }
  0x7a   :  { %6049 = vst [vmem:[#allocation116_spill] sm:$0xff] %v4008_v46  ;;  %1056 = vmatpush.msra.mxu3 %v1055_v17  ;;  %344 = vmatmul.f32.gmra.mxu1 %v3899_v50  ;;  %v5811_v33 = vand.u32 4294901760, %v4025_v27  ;;  %v6051_v17 = vld [vmem:[#allocation56_spill] sm:$0xff] }
  0x7b   :  { %6050 = vst [vmem:[#allocation117_spill] sm:$0xff] %v4022_v2  ;;  %1214 = vmatpush.msra.mxu0 %v4025_v27  ;;  %891 = vmatpush.msra.mxu2 %v4030_v0 }
  0x7c   :  { %1342 = vmatpush.msra.mxu1 %v4030_v0  ;;  %v1060_v21 = vsub.f32 %v4025_v27, %v5811_v33  ;;  %v4063_v33 = vsub.f32 %v879_v24, %v4049_v7 }
  0x7d   :  { %893 = vmatpush.msra.mxu2 %v4049_v7 }
  0x7e   :  { %219 = vmatmul.f32.gmra.mxu2 %v4008_v46  ;;  %v1061_v35 = vand.u32 4294901760, %v1060_v21  ;;  %v4044_v46 = vsub.f32 %v880_v43, %v4030_v0  ;;  %1344 = vmatpush.msra.mxu1 %v4049_v7  ;;  %v5818_v40 = vand.u32 4294901760, %v4063_v33 }
  0x7f   :  { %155 = vmatmul.f32.gmra.mxu0 %v4022_v2 }
  0x80   :  { %1062 = vmatpush.msra.mxu3 %v1061_v35  ;;  %v5816_v2 = vand.u32 4294901760, %v4044_v46  ;;  %1217 = vmatpush.msra.mxu0 %v4044_v46  ;;  %v6052_v35 = vld [vmem:[#allocation61_spill] sm:$0xff]  ;;  %v1072_v24 = vsub.f32 %v4063_v33, %v5818_v40 }
  0x81   :  { %380 = vmatmul.f32.gmra.mxu3 %v3915_v54  ;;  %v876_v40 = vld [vmem:[%s5703_s2 + $0x40] sm:$0xff] }
  0x82   :  { %348 = vmatmul.f32.gmra.mxu1 %v3950_v41  ;;  %v1066_v43 = vsub.f32 %v4044_v46, %v5816_v2  ;;  %1220 = vmatpush.msra.mxu0 %v4063_v33  ;;  %v877_v2 = vld [vmem:[%s5703_s2 + $0x48] sm:$0xff] }
  0x84   :  { %v1067_v21 = vand.u32 4294901760, %v1066_v43  ;;  %v1073_v43 = vand.u32 4294901760, %v1072_v24 }
  0x86   :  { %434 = vmatmul.f32.vlgmr.msrb.gmra.mxu2 %v6051_v17  ;;  %v878_v17 = vld [vmem:[%s5703_s2 + $0x50] sm:$0xff]  ;;  %1068 = vmatpush.msra.mxu3 %v1067_v21 }
  0x87   :  { %707 = vmatmul.f32.vlgmr.msrb.gmra.mxu0 %v3589_v47  ;;  %v4068_v54 = vand.u32 4294901760, %v878_v17 }
  0x88   :  { %1074 = vmatpush.msra.mxu3 %v1073_v43 }
  0x89   :  { %548 = vmatmul.f32.vlgmr.msrb.gmra.mxu3 %v6052_v35  ;;  %895 = vmatpush.msra.mxu2 %v4068_v54  ;;  %v4082_v21 = vsub.f32 %v878_v17, %v4068_v54 }
  0x8a   :  { %804 = vmatmul.f32.vlgmr.msrb.gmra.mxu1 %v3589_v47 }
  0x8b   :  { %1346 = vmatpush.msra.mxu1 %v4068_v54  ;;  %v5821_v35 = vand.u32 4294901760, %v4082_v21  ;;  %1223 = vmatpush.msra.mxu0 %v4082_v21 }
  0x8d   :  { %v1078_v17 = vsub.f32 %v4082_v21, %v5821_v35 }
  0x8e   :  { %439 = vmatmul.f32.gmra.mxu2 %v3677_v59  ;;  %v4087_v59 = vand.u32 4294901760, %v877_v2 }
  0x8f   :  { %711 = vmatmul.f32.gmra.mxu0 %v3643_v42  ;;  %v1079_v24 = vand.u32 4294901760, %v1078_v17 }
  0x90   :  { %897 = vmatpush.msra.mxu2 %v4087_v59  ;;  %1348 = vmatpush.msra.mxu1 %v4087_v59  ;;  %v4101_v43 = vsub.f32 %v877_v2, %v4087_v59 }
  0x91   :  { %554 = vmatmul.f32.gmra.mxu3 %v3706_v30 }
  0x92   :  { %808 = vmatmul.f32.gmra.mxu1 %v3643_v42  ;;  %1080 = vmatpush.msra.mxu3 %v1079_v24  ;;  %v5823_v30 = vand.u32 4294901760, %v4101_v43 }
  0x93   :  { %1226 = vmatpush.msra.mxu0 %v4101_v43 }
  0x94   :  { %v1084_v2 = vsub.f32 %v4101_v43, %v5823_v30 }
  0x96   :  { %444 = vmatmul.f32.gmra.mxu2 %v3735_v12  ;;  %v4106_v12 = vand.u32 4294901760, %v876_v40  ;;  %v1085_v17 = vand.u32 4294901760, %v1084_v2 }
  0x97   :  { %715 = vmatmul.f32.gmra.mxu0 %v3711_v8 }
  0x98   :  { %899 = vmatpush.msra.mxu2 %v4106_v12  ;;  %1350 = vmatpush.msra.mxu1 %v4106_v12  ;;  %v4120_v24 = vsub.f32 %v876_v40, %v4106_v12 }
  0x99   :  { %560 = vmatmul.f32.gmra.mxu3 %v3756_v15 }
  0x9a   :  { %812 = vmatmul.f32.gmra.mxu1 %v3711_v8  ;;  %1086 = vmatpush.msra.mxu3 %v1085_v17  ;;  %v5825_v35 = vand.u32 4294901760, %v4120_v24 }
  0x9b   :  { %1229 = vmatpush.msra.mxu0 %v4120_v24 }
  0x9c   :  { %v1090_v2 = vsub.f32 %v4120_v24, %v5825_v35  ;;  %v874_v35 = vld [vmem:[%s5703_s2 + $0x30] sm:$0xff] }
  0x9e   :  { %449 = vmatmul.f32.gmra.mxu2 %v3781_v22  ;;  %v875_v22 = vld [vmem:[%s5703_s2 + $0x38] sm:$0xff]  ;;  %v1091_v40 = vand.u32 4294901760, %v1090_v2 }
  0x9f   :  { %719 = vmatmul.f32.gmra.mxu0 %v3761_v19  ;;  %v4132_v30 = vand.u32 4294901760, %v875_v22 }
  0xa0   :  { %1092 = vmatpush.msra.mxu3 %v1091_v40 }
  0xa1   :  { %566 = vmatmul.f32.gmra.mxu3 %v3802_v23  ;;  %901 = vmatpush.msra.mxu2 %v4132_v30  ;;  %v4139_v17 = vsub.f32 %v875_v22, %v4132_v30 }
  0xa2   :  { %816 = vmatmul.f32.gmra.mxu1 %v3761_v19 }
  0xa3   :  { %1352 = vmatpush.msra.mxu1 %v4132_v30  ;;  %1232 = vmatpush.msra.mxu0 %v4139_v17 }
  0xa6   :  { %454 = vmatmul.f32.gmra.mxu2 %v3827_v36  ;;  %v5827_v36 = vand.u32 4294901760, %v4139_v17 }
  0xa7   :  { %723 = vmatmul.f32.gmra.mxu0 %v3804_v28 }
  0xa8   :  { %v1096_v2 = vsub.f32 %v4139_v17, %v5827_v36 }
  0xa9   :  { %572 = vmatmul.f32.gmra.mxu3 %v3848_v37 }
  0xaa   :  { %820 = vmatmul.f32.gmra.mxu1 %v3804_v28  ;;  %v1097_v22 = vand.u32 4294901760, %v1096_v2 }
  0xac   :  { %1098 = vmatpush.msra.mxu3 %v1097_v22 }
  0xae   :  { %459 = vmatmul.f32.gmra.mxu2 %v3873_v45  ;;  %v4151_v45 = vand.u32 4294901760, %v874_v35 }
  0xaf   :  { %727 = vmatmul.f32.gmra.mxu0 %v3853_v16 }
  0xb0   :  { %903 = vmatpush.msra.mxu2 %v4151_v45  ;;  %1354 = vmatpush.msra.mxu1 %v4151_v45  ;;  %v4158_v40 = vsub.f32 %v874_v35, %v4151_v45 }
  0xb1   :  { %578 = vmatmul.f32.gmra.mxu3 %v3894_v48 }
  0xb2   :  { %824 = vmatmul.f32.gmra.mxu1 %v3853_v16  ;;  %v5830_v36 = vand.u32 4294901760, %v4158_v40  ;;  %1235 = vmatpush.msra.mxu0 %v4158_v40 }
  0xb4   :  { %v1102_v2 = vsub.f32 %v4158_v40, %v5830_v36 }
  0xb6   :  { %464 = vmatmul.f32.gmra.mxu2 %v3924_v1  ;;  %v873_v1 = vld [vmem:[%s5703_s2 + $0x28] sm:$0xff]  ;;  %v1103_v35 = vand.u32 4294901760, %v1102_v2 }
  0xb7   :  { %731 = vmatmul.f32.gmra.mxu0 %v3899_v50  ;;  %v4170_v48 = vand.u32 4294901760, %v873_v1 }
  0xb8   :  { %1104 = vmatpush.msra.mxu3 %v1103_v35  ;;  %v6053_v35 = vld [vmem:[#allocation42_spill] sm:$0xff] }
  0xb9   :  { %905 = vmatpush.msra.mxu2 %v4170_v48  ;;  %1356 = vmatpush.msra.mxu1 %v4170_v48  ;;  %v4177_v22 = vsub.f32 %v873_v1, %v4170_v48 }
  0xba   :  { %584 = vmatmul.f32.gmra.mxu3 %v3948_v29  ;;  %828 = vmatmul.f32.gmra.mxu1 %v3899_v50 }
  0xbb   :  { %v5837_v36 = vand.u32 4294901760, %v4177_v22  ;;  %1238 = vmatpush.msra.mxu0 %v4177_v22 }
  0xbd   :  { %v1108_v2 = vsub.f32 %v4177_v22, %v5837_v36  ;;  %v4198_v16 = vpop.f32.mrf.mxu0 }
  0xbe   :  { %469 = vmatmul.f32.gmra.mxu2 %v3975_v52  ;;  %v872_v52 = vld [vmem:[%s5703_s2 + $0x20] sm:$0xff] }
  0xbf   :  { %735 = vmatmul.f32.gmra.mxu0 %v3950_v41  ;;  %v4189_v29 = vand.u32 4294901760, %v872_v52  ;;  %v1109_v1 = vand.u32 4294901760, %v1108_v2  ;;  %v164_v2 = vpop.f32.mrf.mxu2 }
  0xc1   :  { %907 = vmatpush.msra.mxu2 %v4189_v29  ;;  %1358 = vmatpush.msra.mxu1 %v4189_v29  ;;  %v4196_v50 = vsub.f32 %v872_v52, %v4189_v29  ;;  %v871_v52 = vld [vmem:[%s5703_s2 + $0x18] sm:$0xff] }
  0xc2   :  { %590 = vmatmul.f32.gmra.mxu3 %v3991_v39  ;;  %832 = vmatmul.f32.gmra.mxu1 %v3950_v41  ;;  %v4210_v39 = vand.u32 4294901760, %v871_v52  ;;  %v6054_v41 = vld [vmem:[#allocation52_spill] sm:$0xff] }
  0xc3   :  { %1110 = vmatpush.msra.mxu3 %v1109_v1  ;;  %v5844_v36 = vand.u32 4294901760, %v4196_v50  ;;  %1241 = vmatpush.msra.mxu0 %v4196_v50 }
  0xc4   :  { %909 = vmatpush.msra.mxu2 %v4210_v39  ;;  %1360 = vmatpush.msra.mxu1 %v4210_v39  ;;  %v4219_v28 = vsub.f32 %v871_v52, %v4210_v39 }
  0xc6   :  { %474 = vmatmul.f32.gmra.mxu2 %v6053_v35  ;;  %v1114_v35 = vsub.f32 %v4196_v50, %v5844_v36  ;;  %1244 = vmatpush.msra.mxu0 %v4219_v28 }
  0xc7   :  { %739 = vmatmul.f32.gmra.mxu0 %v3513_v56  ;;  %v4212_v37 = vpop.f32.mrf.mxu1 }
  0xc8   :  { %v1115_v1 = vand.u32 4294901760, %v1114_v35  ;;  %v4221_v36 = vpop.f32.mrf.mxu0  ;;  %v5852_v35 = vand.u32 4294901760, %v4219_v28 }
  0xca   :  { %596 = vmatmul.f32.gmra.mxu3 %v6054_v41  ;;  %836 = vmatmul.f32.gmra.mxu1 %v3513_v56  ;;  %v1120_v52 = vsub.f32 %v4219_v28, %v5852_v35 }
  0xcb   :  { %1116 = vmatpush.msra.mxu3 %v1115_v1  ;;  %v172_v23 = vpop.f32.mrf.mxu2  ;;  %v870_v1 = vld [vmem:[%s5703_s2 + $0x10] sm:$0xff] }
  0xcc   :  { %v353_v19 = vpop.f32.mrf.mxu3  ;;  %v1121_v41 = vand.u32 4294901760, %v1120_v52 }
  0xcd   :  { %v4226_v15 = vadd.f32 %v353_v19, %v164_v2 }
  0xce   :  { %479 = vmatmul.f32.gmra.mxu2 %v3635_v38  ;;  %v4235_v38 = vand.u32 4294901760, %v870_v1  ;;  %1122 = vmatpush.msra.mxu3 %v1121_v41  ;;  %v869_v41 = vld [vmem:[%s5703_s2 + $0x8] sm:$0xff] }
  0xcf   :  { %6055 = vst [vmem:[#allocation118_spill] sm:$0xff] %v4226_v15  ;;  %743 = vmatmul.f32.gmra.mxu0 %v3598_v58  ;;  %v4237_v56 = vpop.f32.mrf.mxu1 }
  0xd0   :  { %911 = vmatpush.msra.mxu2 %v4235_v38  ;;  %1362 = vmatpush.msra.mxu1 %v4235_v38  ;;  %v4244_v19 = vsub.f32 %v870_v1, %v4235_v38 }
  0xd2   :  { %602 = vmatmul.f32.gmra.mxu3 %v3671_v49  ;;  %840 = vmatmul.f32.gmra.mxu1 %v3598_v58  ;;  %v5859_v52 = vand.u32 4294901760, %v4244_v19 }
  0xd3   :  { %1247 = vmatpush.msra.mxu0 %v4244_v19  ;;  %v180_v35 = vpop.f32.mrf.mxu2 }
  0xd4   :  { %v4246_v2 = vpop.f32.mrf.mxu0  ;;  %v357_v15 = vpop.f32.mrf.mxu3  ;;  %v1126_v1 = vsub.f32 %v4244_v19, %v5859_v52 }
  0xd5   :  { %v4251_v8 = vadd.f32 %v357_v15, %v172_v23 }
  0xd6   :  { %484 = vmatmul.f32.gmra.mxu2 %v3697_v34  ;;  %v4260_v34 = vand.u32 4294901760, %v869_v41  ;;  %v1127_v49 = vand.u32 4294901760, %v1126_v1 }
  0xd7   :  { %6056 = vst [vmem:[#allocation119_spill] sm:$0xff] %v4251_v8  ;;  %747 = vmatmul.f32.gmra.mxu0 %v3665_v61  ;;  %v4262_v58 = vpop.f32.mrf.mxu1 }
  0xd8   :  { %6057 = vst [vmem:[#allocation120_spill] sm:$0xff] %v4262_v58  ;;  %913 = vmatpush.msra.mxu2 %v4260_v34  ;;  %1364 = vmatpush.msra.mxu1 %v4260_v34  ;;  %v4269_v15 = vsub.f32 %v869_v41, %v4260_v34 }
  0xd9   :  { %1128 = vmatpush.msra.mxu3 %v1127_v49  ;;  %v868_v49 = vld [vmem:[%s5703_s2] sm:$0xff] }
  0xda   :  { %608 = vmatmul.f32.gmra.mxu3 %v3730_v13  ;;  %844 = vmatmul.f32.gmra.mxu1 %v3665_v61  ;;  %v5864_v1 = vand.u32 4294901760, %v4269_v15 }
  0xdb   :  { %1250 = vmatpush.msra.mxu0 %v4269_v15 }
  0xdc   :  { %v4271_v23 = vpop.f32.mrf.mxu0  ;;  %v361_v8 = vpop.f32.mrf.mxu3  ;;  %v1132_v41 = vsub.f32 %v4269_v15, %v5864_v1 }
  0xdd   :  { %v4276_v58 = vadd.f32 %v361_v8, %v180_v35 }
  0xde   :  { %489 = vmatmul.f32.gmra.mxu2 %v3747_v31  ;;  %v4285_v31 = vand.u32 4294901760, %v868_v49  ;;  %v1133_v13 = vand.u32 4294901760, %v1132_v41  ;;  %v6060_v41 = vand.u32 4294901760, %v3927_v18  ;;  %v6062_v18 = vld [vmem:[#allocation21_spill] sm:$0xff] }
  0xdf   :  { %6058 = vst [vmem:[#allocation121_spill] sm:$0xff] %v4276_v58  ;;  %751 = vmatmul.f32.gmra.mxu0 %v3723_v25  ;;  %v4287_v61 = vpop.f32.mrf.mxu1 }
  0xe0   :  { %915 = vmatpush.msra.mxu2 %v4285_v31  ;;  %v4291_v8 = vsub.f32 %v868_v49, %v4285_v31  ;;  %1366 = vmatpush.msra.mxu1 %v4285_v31 }
  0xe1   :  { %v188_v52 = vpop.f32.mrf.mxu2  ;;  %1134 = vmatpush.msra.mxu3 %v1133_v13 }
  0xe2   :  { %614 = vmatmul.f32.gmra.mxu3 %v3776_v51  ;;  %v5869_v1 = vand.u32 4294901760, %v4291_v8  ;;  %1467 = vmatpush.msrb.mxu2 %v6060_v41  ;;  %v6061_v51 = vand.u32 4294901760, %v3994_v44  ;;  %v6065_v44 = vand.u32 4294901760, %v4044_v46 }
  0xe3   :  { %848 = vmatmul.f32.gmra.mxu1 %v3723_v25  ;;  %1253 = vmatpush.msra.mxu0 %v4291_v8  ;;  %v6063_v25 = vand.u32 4294901760, %v4025_v27  ;;  %v6067_v27 = vld [vmem:[#allocation26_spill] sm:$0xff] }
  0xe4   :  { %v4296_v35 = vpop.f32.mrf.mxu0  ;;  %v365_v58 = vpop.f32.mrf.mxu3  ;;  %1471 = vmatpush.msrb.mxu2 %v6061_v51  ;;  %1872 = vmatpush.msrb.mxu1 %v6062_v18  ;;  %v6073_v18 = vand.u32 4294901760, %v4120_v24 }
  0xe5   :  { %6059 = vst [vmem:[#allocation122_spill] sm:$0xff] %v4296_v35  ;;  %1707 = vmatpush.msrb.mxu0 %v3360_v3  ;;  %v4309_v13 = vadd.f32 %v365_v58, %v188_v52  ;;  %v6064_v35 = vld [vmem:[#allocation22_spill] sm:$0xff]  ;;  %v6068_v52 = vand.u32 4294901760, %v4082_v21 }
  0xe6   :  { %494 = vmatmul.f32.gmra.mxu2 %v3793_v20  ;;  %v1138_v20 = vsub.f32 %v4291_v8, %v5869_v1  ;;  %1878 = vmatpush.msrb.mxu1 %v6064_v35 }
  0xe7   :  { %755 = vmatmul.f32.gmra.mxu0 %v3769_v14  ;;  %1475 = vmatpush.msrb.mxu2 %v6063_v25  ;;  %v4317_v1 = vpop.f32.mrf.mxu1 }
  0xe8   :  { %v1139_v41 = vand.u32 4294901760, %v1138_v20  ;;  %1709 = vmatpush.msrb.mxu0 %v3362_v4  ;;  %v6066_v20 = vand.u32 4294901760, %v4063_v33  ;;  %1884 = vmatpush.msrb.mxu1 %v6067_v27  ;;  %v6070_v33 = vand.u32 4294901760, %v4101_v43 }
  0xe9   :  { %v196_v49 = vpop.f32.mrf.mxu2  ;;  %1479 = vmatpush.msrb.mxu2 %v6065_v44  ;;  %v6076_v44 = vand.u32 4294901760, %v4139_v17  ;;  %v6081_v17 = vand.u32 4294901760, %v4158_v40  ;;  %v6087_v40 = vld [vmem:[#allocation57_spill] sm:$0xff] }
  0xea   :  { %1140 = vmatpush.msra.mxu3 %v1139_v41  ;;  %1711 = vmatpush.msrb.mxu0 %v3364_v5  ;;  %v6075_v41 = vld [vmem:[#allocation43_spill] sm:$0xff] }
  0xeb   :  { %620 = vmatmul.f32.gmra.mxu3 %v3816_v62  ;;  %852 = vmatmul.f32.gmra.mxu1 %v3769_v14 }
  0xec   :  { %v4323_v51 = vpop.f32.mrf.mxu0  ;;  %1594 = vmatpush.msrb.mxu3 %v3906_v6  ;;  %1483 = vmatpush.msrb.mxu2 %v6066_v20  ;;  %v369_v58 = vpop.f32.mrf.mxu3  ;;  %v6069_v6 = vld [vmem:[#allocation30_spill] sm:$0xff] }
  0xed   :  { %v4332_v46 = vadd.f32 %v369_v58, %v196_v49  ;;  %1713 = vmatpush.msrb.mxu0 %v3375_v9  ;;  %1890 = vmatpush.msrb.mxu1 %v6069_v6  ;;  %v6079_v58 = vld [vmem:[#allocation103_spill] sm:$0xff] }
  0xee   :  { %499 = vmatmul.f32.gmra.mxu2 %v3845_v32  ;;  %1596 = vmatpush.msrb.mxu3 %v3977_v60 }
  0xef   :  { %759 = vmatmul.f32.gmra.mxu0 %v3824_v57  ;;  %1487 = vmatpush.msrb.mxu2 %v6068_v52  ;;  %v4342_v35 = vpop.f32.mrf.mxu1 }
  0xf0   :  { %1598 = vmatpush.msrb.mxu3 %v4001_v63  ;;  %1715 = vmatpush.msrb.mxu0 %v3377_v10  ;;  %v6071_v63 = vld [vmem:[#allocation35_spill] sm:$0xff] }
  0xf1   :  { %v204_v25 = vpop.f32.mrf.mxu2  ;;  %1491 = vmatpush.msrb.mxu2 %v6070_v33  ;;  %1896 = vmatpush.msrb.mxu1 %v6071_v63  ;;  %v6083_v33 = vld [vmem:[#allocation104_spill] sm:$0xff]  ;;  %v6084_v63 = vld [vmem:[#allocation51_spill] sm:$0xff] }
  0xf2   :  { %1600 = vmatpush.msrb.mxu3 %v4030_v0  ;;  %1717 = vmatpush.msrb.mxu0 %v3379_v11  ;;  %v6072_v0 = vld [vmem:[#allocation38_spill] sm:$0xff] }
  0xf3   :  { %626 = vmatmul.f32.gmra.mxu3 %v3867_v55  ;;  %856 = vmatmul.f32.gmra.mxu1 %v3824_v57 }
  0xf4   :  { %v4348_v60 = vpop.f32.mrf.mxu0  ;;  %1602 = vmatpush.msrb.mxu3 %v4049_v7  ;;  %v373_v43 = vpop.f32.mrf.mxu3  ;;  %1902 = vmatpush.msrb.mxu1 %v6072_v0  ;;  %v6074_v7 = vld [vmem:[#allocation8_spill] sm:$0xff] }
  0xf5   :  { %v4356_v49 = vadd.f32 %v373_v43, %v204_v25  ;;  %1495 = vmatpush.msrb.mxu2 %v6073_v18  ;;  %1719 = vmatpush.msrb.mxu0 %v6074_v7  ;;  %v6078_v25 = vld [vmem:[#allocation107_spill] sm:$0xff]  ;;  %v6090_v18 = vld [vmem:[#allocation73_spill] sm:$0xff] }
  0xf6   :  { %504 = vmatmul.f32.gmra.mxu2 %v3883_v53  ;;  %1604 = vmatpush.msrb.mxu3 %v4068_v54  ;;  %v6077_v54 = vld [vmem:[#allocation14_spill] sm:$0xff]  ;;  %v6086_v43 = vld [vmem:[#allocation19_spill] sm:$0xff] }
  0xf7   :  { %763 = vmatmul.f32.gmra.mxu0 %v3861_v26  ;;  %1908 = vmatpush.msrb.mxu1 %v6075_v41  ;;  %v4366_v20 = vpop.f32.mrf.mxu1 }
  0xf8   :  { %1606 = vmatpush.msrb.mxu3 %v4087_v59  ;;  %1499 = vmatpush.msrb.mxu2 %v6076_v44  ;;  %v6080_v59 = vld [vmem:[#allocation47_spill] sm:$0xff]  ;;  %v6092_v44 = vld [vmem:[#allocation62_spill] sm:$0xff] }
  0xf9   :  { %v212_v21 = vpop.f32.mrf.mxu2  ;;  %1721 = vmatpush.msrb.mxu0 %v6077_v54  ;;  %1914 = vmatpush.msrb.mxu1 %v6080_v59  ;;  %v6093_v59 = vand.u32 4294901760, %v4219_v28  ;;  %v6098_v28 = vld [vmem:[#allocation36_spill] sm:$0xff] }
  0xfa   :  { %1608 = vmatpush.msrb.mxu3 %v4106_v12  ;;  %1503 = vmatpush.msrb.mxu2 %v6081_v17  ;;  %v6082_v12 = vld [vmem:[#allocation16_spill] sm:$0xff] }
  0xfb   :  { %632 = vmatmul.f32.gmra.mxu3 %v6079_v58  ;;  %860 = vmatmul.f32.gmra.mxu1 %v3861_v26 }
  0xfc   :  { %v4372_v24 = vpop.f32.mrf.mxu0  ;;  %1610 = vmatpush.msrb.mxu3 %v4132_v30  ;;  %v377_v52 = vpop.f32.mrf.mxu3  ;;  %1723 = vmatpush.msrb.mxu0 %v6082_v12  ;;  %v6085_v30 = vand.u32 4294901760, %v4177_v22  ;;  %v6091_v22 = vld [vmem:[#allocation25_spill] sm:$0xff] }
  0xfd   :  { %v4381_v6 = vadd.f32 %v377_v52, %v212_v21  ;;  %1920 = vmatpush.msrb.mxu1 %v6084_v63  ;;  %v6089_v21 = vld [vmem:[#allocation112_spill] sm:$0xff] }
  0xfe   :  { %509 = vmatmul.f32.gmra.mxu2 %v6078_v25  ;;  %1612 = vmatpush.msrb.mxu3 %v4151_v45  ;;  %v6088_v45 = vand.u32 4294901760, %v4196_v50 }
  0xff   :  { %767 = vmatmul.f32.gmra.mxu0 %v6083_v33  ;;  %1507 = vmatpush.msrb.mxu2 %v6085_v30  ;;  %v4390_v0 = vpop.f32.mrf.mxu1  ;;  %v6095_v30 = vld [vmem:[#allocation56_spill] sm:$0xff] }
 0x100   :  { %1614 = vmatpush.msrb.mxu3 %v4170_v48  ;;  %1725 = vmatpush.msrb.mxu0 %v6086_v43  ;;  %v322_v48 = vadd.f32 %v4212_v37, %v4198_v16  ;;  %v6097_v16 = vand.u32 4294901760, %v4244_v19  ;;  %v6099_v37 = vld [vmem:[#allocation70_spill] sm:$0xff]  ;;  %v6103_v19 = vld [vmem:[#allocation71_spill] sm:$0xff] }
 0x101   :  { %v220_v27 = vpop.f32.mrf.mxu2  ;;  %1926 = vmatpush.msrb.mxu1 %v6087_v40  ;;  %1511 = vmatpush.msrb.mxu2 %v6088_v45  ;;  %v6096_v40 = vld [vmem:[#allocation64_spill] sm:$0xff] }
 0x102   :  { %1616 = vmatpush.msrb.mxu3 %v4189_v29  ;;  %1727 = vmatpush.msrb.mxu0 %v6091_v22  ;;  %v6094_v29 = vld [vmem:[#allocation31_spill] sm:$0xff] }
 0x103   :  { %638 = vmatmul.f32.gmra.mxu3 %v6089_v21  ;;  %1932 = vmatpush.msrb.mxu1 %v6092_v44  ;;  %v6102_v44 = vld [vmem:[#allocation39_spill] sm:$0xff] }
 0x104   :  { %v708_v41 = vpop.f32.mrf.mxu0  ;;  %864 = vmatmul.f32.gmra.mxu1 %v6083_v33  ;;  %1515 = vmatpush.msrb.mxu2 %v6093_v59  ;;  %v381_v50 = vpop.f32.mrf.mxu3  ;;  %v6105_v59 = vand.u32 4294901760, %v4291_v8  ;;  %v6111_v8 = vld [vmem:[#allocation77_spill] sm:$0xff] }
 0x105   :  { %1618 = vmatpush.msrb.mxu3 %v4210_v39  ;;  %1729 = vmatpush.msrb.mxu0 %v6094_v29  ;;  %v4406_v52 = vadd.f32 %v381_v50, %v220_v27  ;;  %v6100_v39 = vand.u32 4294901760, %v4269_v15  ;;  %v6101_v27 = vld [vmem:[#allocation83_spill] sm:$0xff] }
 0x106   :  { %921 = vmatmul.f32.vlgmr.msra.gmra.mxu2 %v6090_v18  ;;  %1938 = vmatpush.msrb.mxu1 %v6096_v40  ;;  %v6107_v40 = vld [vmem:[#allocation69_spill] sm:$0xff] }
 0x107   :  { %1256 = vmatmul.f32.vlgmr.msra.gmra.mxu0 %v6095_v30  ;;  %1519 = vmatpush.msrb.mxu2 %v6097_v16  ;;  %v805_v45 = vpop.f32.mrf.mxu1  ;;  %v6108_v16 = vld [vmem:[#allocation76_spill] sm:$0xff] }
 0x108   :  { %1620 = vmatpush.msrb.mxu3 %v4235_v38  ;;  %1731 = vmatpush.msrb.mxu0 %v6098_v28  ;;  %v326_v38 = vadd.f32 %v4237_v56, %v4221_v36  ;;  %v6110_v36 = vld [vmem:[#allocation48_spill] sm:$0xff] }
 0x109   :  { %v435_v17 = vpop.f32.mrf.mxu2  ;;  %1944 = vmatpush.msrb.mxu1 %v6099_v37  ;;  %1523 = vmatpush.msrb.mxu2 %v6100_v39  ;;  %v6109_v37 = vld [vmem:[#allocation5_spill] sm:$0xff] }
 0x10a   :  { %v436_v63 = vadd.f32 %v435_v17, %v322_v48  ;;  %1622 = vmatpush.msrb.mxu3 %v4260_v34  ;;  %1733 = vmatpush.msrb.mxu0 %v6102_v44  ;;  %v6104_v48 = vld [vmem:[#allocation61_spill] sm:$0xff]  ;;  %v6106_v34 = vld [vmem:[#allocation44_spill] sm:$0xff] }
 0x10b   :  { %1142 = vmatmul.f32.vlgmr.msra.gmra.mxu3 %v3589_v47  ;;  %1950 = vmatpush.msrb.mxu1 %v6103_v19 }
 0x10c   :  { %v712_v18 = vpop.f32.mrf.mxu0  ;;  %1370 = vmatmul.f32.vlgmr.msra.gmra.mxu1 %v6104_v48  ;;  %1527 = vmatpush.msrb.mxu2 %v6105_v59  ;;  %v549_v50 = vpop.f32.mrf.mxu3  ;;  %v6116_v59 = vld [vmem:[#allocation74_spill] sm:$0xff] }
 0x10d   :  { %1624 = vmatpush.msrb.mxu3 %v4285_v31  ;;  %1735 = vmatpush.msrb.mxu0 %v6106_v34  ;;  %v550_v30 = vadd.f32 %v549_v50, %v436_v63  ;;  %v6113_v31 = vld [vmem:[#allocation11_spill] sm:$0xff]  ;;  %v6114_v63 = vld [vmem:[#allocation90_spill] sm:$0xff] }
 0x10e   :  { %929 = vmatmul.f32.gmra.mxu2 %v6101_v27  ;;  %1956 = vmatpush.msrb.mxu1 %v6108_v16  ;;  %v6112_v27 = vld [vmem:[#allocation6_spill] sm:$0xff] }
 0x10f   :  { %1261 = vmatmul.f32.gmra.mxu0 %v6107_v40  ;;  %2030 = vmatpush.msra.mxu2 %v6109_v37  ;;  %v709_v56 = vadd.f32 %v708_v41, %v550_v30  ;;  %v809_v39 = vpop.f32.mrf.mxu1  ;;  %v6115_v41 = vld [vmem:[#allocation120_spill] sm:$0xff]  ;;  %v6119_v37 = vld [vmem:[#allocation81_spill] sm:$0xff] }
 0x110   :  { %1737 = vmatpush.msrb.mxu0 %v6110_v36  ;;  %2158 = vmatpush.msra.mxu3 %v3360_v3  ;;  %v330_v48 = vadd.f32 %v6115_v41, %v4246_v2  ;;  %v6121_v2 = vld [vmem:[#allocation13_spill] sm:$0xff] }
 0x111   :  { %v440_v15 = vpop.f32.mrf.mxu2  ;;  %1962 = vmatpush.msrb.mxu1 %v6111_v8  ;;  %2033 = vmatpush.msra.mxu2 %v6112_v27  ;;  %v4437_v19 = vadd.f32 %v805_v45, %v709_v56  ;;  %v6118_v45 = vld [vmem:[#allocation12_spill] sm:$0xff]  ;;  %v6122_v27 = vld [vmem:[#allocation10_spill] sm:$0xff] }
 0x112   :  { %v441_v17 = vadd.f32 %v440_v15, %v326_v38  ;;  %2289 = vmatpush.msra.mxu0 %v6113_v31  ;;  %2160 = vmatpush.msra.mxu3 %v3362_v4  ;;  %v6117_v15 = vld [vmem:[#allocation7_spill] sm:$0xff] }
 0x113   :  { %1146 = vmatmul.f32.gmra.mxu3 %v3643_v42  ;;  %2416 = vmatpush.msra.mxu1 %v3360_v3  ;;  %v6120_v3 = vld [vmem:[#allocation9_spill] sm:$0xff] }
 0x114   :  { %v716_v38 = vpop.f32.mrf.mxu0  ;;  %1376 = vmatmul.f32.gmra.mxu1 %v6116_v59  ;;  %2036 = vmatpush.msra.mxu2 %v6117_v15  ;;  %v555_v30 = vpop.f32.mrf.mxu3  ;;  %v6127_v59 = vld [vmem:[#allocation17_spill] sm:$0xff] }
 0x115   :  { %2162 = vmatpush.msra.mxu3 %v3364_v5  ;;  %2293 = vmatpush.msra.mxu0 %v6118_v45  ;;  %v556_v16 = vadd.f32 %v555_v30, %v441_v17  ;;  %v6124_v17 = vld [vmem:[#allocation75_spill] sm:$0xff]  ;;  %v6128_v30 = vld [vmem:[#allocation88_spill] sm:$0xff]  ;;  %v6129_v45 = vld [vmem:[#allocation18_spill] sm:$0xff] }
 0x116   :  { %937 = vmatmul.f32.gmra.mxu2 %v6114_v63  ;;  %2418 = vmatpush.msra.mxu1 %v3362_v4  ;;  %v6123_v63 = vld [vmem:[#allocation95_spill] sm:$0xff] }
 0x117   :  { %1266 = vmatmul.f32.gmra.mxu0 %v6119_v37  ;;  %2039 = vmatpush.msra.mxu2 %v6120_v3  ;;  %v713_v56 = vadd.f32 %v712_v18, %v556_v16  ;;  %v813_v8 = vpop.f32.mrf.mxu1  ;;  %v6125_v4 = vld [vmem:[#allocation15_spill] sm:$0xff]  ;;  %v334_v18 = vadd.f32 %v4287_v61, %v4271_v23  ;;  %v6130_v61 = vld [vmem:[#allocation20_spill] sm:$0xff] }
 0x118   :  { %2164 = vmatpush.msra.mxu3 %v3375_v9  ;;  %2297 = vmatpush.msra.mxu0 %v6121_v2  ;;  %v6131_v37 = vld [vmem:[#allocation23_spill] sm:$0xff]  ;;  %v6132_v3 = vld [vmem:[#allocation100_spill] sm:$0xff] }
 0x119   :  { %v445_v50 = vpop.f32.mrf.mxu2  ;;  %2420 = vmatpush.msra.mxu1 %v3364_v5  ;;  %2042 = vmatpush.msra.mxu2 %v6122_v27  ;;  %v4456_v31 = vadd.f32 %v809_v39, %v713_v56  ;;  %v6134_v2 = vld [vmem:[#allocation24_spill] sm:$0xff]  ;;  %v6136_v27 = vld [vmem:[#allocation91_spill] sm:$0xff] }
 0x11a   :  { %v446_v40 = vadd.f32 %v445_v50, %v330_v48  ;;  %2166 = vmatpush.msra.mxu3 %v3377_v10  ;;  %2301 = vmatpush.msra.mxu0 %v6125_v4  ;;  %v6126_v48 = vld [vmem:[#allocation84_spill] sm:$0xff] }
 0x11b   :  { %1150 = vmatmul.f32.gmra.mxu3 %v6124_v17  ;;  %2045 = vmatpush.msra.mxu2 %v6127_v59  ;;  %v6139_v59 = vld [vmem:[#allocation94_spill] sm:$0xff] }
 0x11c   :  { %v720_v41 = vpop.f32.mrf.mxu0  ;;  %1382 = vmatmul.f32.gmra.mxu1 %v6126_v48  ;;  %v561_v15 = vpop.f32.mrf.mxu3  ;;  %2168 = vmatpush.msra.mxu3 %v3379_v11 }
 0x11d   :  { %2422 = vmatpush.msra.mxu1 %v3375_v9  ;;  %v562_v50 = vadd.f32 %v561_v15, %v446_v40  ;;  %2305 = vmatpush.msra.mxu0 %v6129_v45  ;;  %v6133_v40 = vld [vmem:[#allocation85_spill] sm:$0xff]  ;;  %v6143_v45 = vld [vmem:[#allocation108_spill] sm:$0xff] }
 0x11e   :  { %945 = vmatmul.f32.gmra.mxu2 %v6123_v63  ;;  %2170 = vmatpush.msra.mxu3 %v6074_v7  ;;  %v6137_v63 = vld [vmem:[#allocation27_spill] sm:$0xff] }
 0x11f   :  { %1271 = vmatmul.f32.gmra.mxu0 %v6128_v30  ;;  %2424 = vmatpush.msra.mxu1 %v3377_v10  ;;  %v717_v16 = vadd.f32 %v716_v38, %v562_v50  ;;  %v817_v23 = vpop.f32.mrf.mxu1  ;;  %v6135_v10 = vld [vmem:[#allocation122_spill] sm:$0xff]  ;;  %v6142_v30 = vld [vmem:[#allocation33_spill] sm:$0xff] }
 0x120   :  { %2048 = vmatpush.msra.mxu2 %v6130_v61  ;;  %2309 = vmatpush.msra.mxu0 %v6131_v37  ;;  %v338_v38 = vadd.f32 %v4317_v1, %v6135_v10  ;;  %v6141_v1 = vld [vmem:[#allocation32_spill] sm:$0xff]  ;;  %v6145_v61 = vld [vmem:[#allocation37_spill] sm:$0xff] }
 0x121   :  { %v450_v5 = vpop.f32.mrf.mxu2  ;;  %2426 = vmatpush.msra.mxu1 %v3379_v11  ;;  %v4475_v9 = vadd.f32 %v813_v8, %v717_v16  ;;  %2172 = vmatpush.msra.mxu3 %v6077_v54  ;;  %v6138_v8 = vld [vmem:[#allocation28_spill] sm:$0xff] }
 0x122   :  { %v451_v39 = vadd.f32 %v450_v5, %v334_v18  ;;  %2051 = vmatpush.msra.mxu2 %v6134_v2  ;;  %2313 = vmatpush.msra.mxu0 %v6137_v63  ;;  %v6140_v5 = vld [vmem:[#allocation29_spill] sm:$0xff]  ;;  %v6151_v63 = vld [vmem:[#allocation46_spill] sm:$0xff] }
 0x123   :  { %1154 = vmatmul.f32.gmra.mxu3 %v6133_v40  ;;  %2428 = vmatpush.msra.mxu1 %v6074_v7 }
 0x124   :  { %v724_v56 = vpop.f32.mrf.mxu0  ;;  %1388 = vmatmul.f32.gmra.mxu1 %v6136_v27  ;;  %v567_v11 = vpop.f32.mrf.mxu3  ;;  %2054 = vmatpush.msra.mxu2 %v6138_v8 }
 0x125   :  { %v568_v48 = vadd.f32 %v567_v11, %v451_v39  ;;  %2174 = vmatpush.msra.mxu3 %v6082_v12  ;;  %2317 = vmatpush.msra.mxu0 %v6140_v5  ;;  %v6144_v39 = vld [vmem:[#allocation92_spill] sm:$0xff]  ;;  %v6153_v11 = vld [vmem:[#allocation97_spill] sm:$0xff] }
 0x126   :  { %953 = vmatmul.f32.gmra.mxu2 %v6132_v3  ;;  %2430 = vmatpush.msra.mxu1 %v6077_v54  ;;  %v342_v54 = vadd.f32 %v4342_v35, %v4323_v51  ;;  %v6150_v51 = vld [vmem:[#allocation45_spill] sm:$0xff] }
 0x127   :  { %1276 = vmatmul.f32.gmra.mxu0 %v6139_v59  ;;  %v721_v15 = vadd.f32 %v720_v41, %v568_v48  ;;  %2057 = vmatpush.msra.mxu2 %v6141_v1  ;;  %v821_v50 = vpop.f32.mrf.mxu1  ;;  %v6146_v41 = vld [vmem:[#allocation96_spill] sm:$0xff]  ;;  %v6156_v48 = vld [vmem:[#allocation50_spill] sm:$0xff] }
 0x128   :  { %2176 = vmatpush.msra.mxu3 %v6086_v43  ;;  %2321 = vmatpush.msra.mxu0 %v6142_v30  ;;  %v6158_v30 = vld [vmem:[#allocation106_spill] sm:$0xff] }
 0x129   :  { %v455_v4 = vpop.f32.mrf.mxu2  ;;  %v4494_v7 = vadd.f32 %v817_v23, %v721_v15  ;;  %2432 = vmatpush.msra.mxu1 %v6082_v12  ;;  %2060 = vmatpush.msra.mxu2 %v6145_v61  ;;  %v6147_v23 = vld [vmem:[#allocation40_spill] sm:$0xff]  ;;  %v6149_v12 = vld [vmem:[#allocation41_spill] sm:$0xff]  ;;  %v6157_v15 = vld [vmem:[#allocation54_spill] sm:$0xff] }
 0x12a   :  { %v456_v18 = vadd.f32 %v455_v4, %v338_v38  ;;  %2178 = vmatpush.msra.mxu3 %v6091_v22  ;;  %2325 = vmatpush.msra.mxu0 %v6147_v23  ;;  %v6148_v38 = vld [vmem:[#allocation99_spill] sm:$0xff]  ;;  %v6165_v23 = vld [vmem:[#allocation109_spill] sm:$0xff] }
 0x12b   :  { %1158 = vmatmul.f32.gmra.mxu3 %v6144_v39  ;;  %2434 = vmatpush.msra.mxu1 %v6086_v43  ;;  %v6152_v43 = vld [vmem:[#allocation114_spill] sm:$0xff]  ;;  %v6161_v61 = vld [vmem:[#allocation59_spill] sm:$0xff] }
 0x12c   :  { %v728_v16 = vpop.f32.mrf.mxu0  ;;  %1394 = vmatmul.f32.gmra.mxu1 %v6146_v41  ;;  %v573_v3 = vpop.f32.mrf.mxu3  ;;  %2063 = vmatpush.msra.mxu2 %v6149_v12  ;;  %v6162_v41 = vld [vmem:[#allocation117_spill] sm:$0xff] }
 0x12d   :  { %v574_v10 = vadd.f32 %v573_v3, %v456_v18  ;;  %2180 = vmatpush.msra.mxu3 %v6094_v29  ;;  %2329 = vmatpush.msra.mxu0 %v6150_v51  ;;  %v6154_v18 = vld [vmem:[#allocation49_spill] sm:$0xff] }
 0x12e   :  { %961 = vmatmul.f32.gmra.mxu2 %v6143_v45  ;;  %2436 = vmatpush.msra.mxu1 %v6091_v22  ;;  %v6155_v22 = vld [vmem:[#allocation101_spill] sm:$0xff] }
 0x12f   :  { %1281 = vmatmul.f32.gmra.mxu0 %v6148_v38  ;;  %v725_v27 = vadd.f32 %v724_v56, %v574_v10  ;;  %v825_v35 = vpop.f32.mrf.mxu1  ;;  %2066 = vmatpush.msra.mxu2 %v6151_v63  ;;  %v346_v56 = vadd.f32 %v4366_v20, %v4348_v60  ;;  %v6160_v60 = vld [vmem:[#allocation58_spill] sm:$0xff]  ;;  %v6166_v10 = vld [vmem:[#allocation65_spill] sm:$0xff] }
 0x130   :  { %2182 = vmatpush.msra.mxu3 %v6098_v28  ;;  %2333 = vmatpush.msra.mxu0 %v6154_v18  ;;  %v6170_v18 = vld [vmem:[#allocation115_spill] sm:$0xff] }
 0x131   :  { %v460_v37 = vpop.f32.mrf.mxu2  ;;  %v4513_v4 = vadd.f32 %v821_v50, %v725_v27  ;;  %2438 = vmatpush.msra.mxu1 %v6094_v29  ;;  %2069 = vmatpush.msra.mxu2 %v6156_v48  ;;  %v6159_v29 = vld [vmem:[#allocation55_spill] sm:$0xff]  ;;  %v6167_v27 = vld [vmem:[#allocation113_spill] sm:$0xff] }
 0x132   :  { %v461_v2 = vadd.f32 %v460_v37, %v342_v54  ;;  %2184 = vmatpush.msra.mxu3 %v6102_v44  ;;  %2337 = vmatpush.msra.mxu0 %v6157_v15  ;;  %v6163_v37 = vld [vmem:[#allocation102_spill] sm:$0xff] }
 0x133   :  { %1162 = vmatmul.f32.gmra.mxu3 %v6153_v11  ;;  %2440 = vmatpush.msra.mxu1 %v6098_v28  ;;  %v6164_v28 = vld [vmem:[#allocation63_spill] sm:$0xff] }
 0x134   :  { %v732_v8 = vpop.f32.mrf.mxu0  ;;  %1400 = vmatmul.f32.gmra.mxu1 %v6155_v22  ;;  %v579_v5 = vpop.f32.mrf.mxu3  ;;  %2072 = vmatpush.msra.mxu2 %v6159_v29  ;;  %v6171_v22 = vld [vmem:[#allocation118_spill] sm:$0xff]  ;;  %v6175_v29 = vld [vmem:[#allocation52_spill] sm:$0xff] }
 0x135   :  { %v580_v50 = vadd.f32 %v579_v5, %v461_v2  ;;  %2186 = vmatpush.msra.mxu3 %v6106_v34  ;;  %2341 = vmatpush.msra.mxu0 %v6160_v60  ;;  %v6172_v5 = vld [vmem:[#allocation42_spill] sm:$0xff] }
 0x136   :  { %969 = vmatmul.f32.gmra.mxu2 %v6152_v43  ;;  %2442 = vmatpush.msra.mxu1 %v6102_v44  ;;  %v6168_v43 = vld [vmem:[#allocation67_spill] sm:$0xff] }
 0x137   :  { %1286 = vmatmul.f32.gmra.mxu0 %v6158_v30  ;;  %v729_v45 = vadd.f32 %v728_v16, %v580_v50  ;;  %v829_v20 = vpop.f32.mrf.mxu1  ;;  %2075 = vmatpush.msra.mxu2 %v6161_v61  ;;  %v350_v16 = vadd.f32 %v4390_v0, %v4372_v24  ;;  %v6169_v24 = vld [vmem:[#allocation110_spill] sm:$0xff] }
 0x138   :  { %2188 = vmatpush.msra.mxu3 %v6110_v36  ;;  %2345 = vmatpush.msra.mxu0 %v6164_v28  ;;  %v6174_v50 = vld [vmem:[#allocation34_spill] sm:$0xff]  ;;  %v6177_v28 = vld [vmem:[#allocation60_spill] sm:$0xff] }
 0x139   :  { %v465_v59 = vpop.f32.mrf.mxu2  ;;  %v4532_v54 = vadd.f32 %v825_v35, %v729_v45  ;;  %2444 = vmatpush.msra.mxu1 %v6106_v34 }
 0x13a   :  { %v466_v1 = vadd.f32 %v465_v59, %v346_v56  ;;  %2349 = vmatpush.msra.mxu0 %v6166_v10 }
 0x13b   :  { %1166 = vmatmul.f32.gmra.mxu3 %v6163_v37  ;;  %2446 = vmatpush.msra.mxu1 %v6110_v36 }
 0x13c   :  { %v736_v3 = vpop.f32.mrf.mxu0  ;;  %1406 = vmatmul.f32.gmra.mxu1 %v6165_v23 }
 0x13d   :  { %v585_v44 = vpop.f32.mrf.mxu3 }
 0x13e   :  { %977 = vmatmul.f32.gmra.mxu2 %v6162_v41  ;;  %v586_v12 = vadd.f32 %v585_v44, %v466_v1  ;;  %v6173_v1 = vld [vmem:[#allocation79_spill] sm:$0xff]  ;;  %v6179_v44 = vld [vmem:[#allocation53_spill] sm:$0xff] }
 0x13f   :  { %1291 = vmatmul.f32.gmra.mxu0 %v6167_v27  ;;  %v833_v35 = vpop.f32.mrf.mxu1 }
 0x140   :  { %v733_v51 = vadd.f32 %v732_v8, %v586_v12 }
 0x141   :  { %v470_v2 = vpop.f32.mrf.mxu2 }
 0x142   :  { %v471_v38 = vadd.f32 %v470_v2, %v350_v16  ;;  %v4545_v63 = vadd.f32 %v829_v20, %v733_v51  ;;  %v6176_v20 = vld [vmem:[#allocation119_spill] sm:$0xff]  ;;  %v6178_v2 = vld [vmem:[#allocation86_spill] sm:$0xff]  ;;  %v6181_v51 = vld [vmem:[#allocation121_spill] sm:$0xff] }
 0x143   :  { %1170 = vmatmul.f32.gmra.mxu3 %v6169_v24 }
 0x144   :  { %v740_v0 = vpop.f32.mrf.mxu0  ;;  %1412 = vmatmul.f32.gmra.mxu1 %v6170_v18  ;;  %v6182_v18 = vld [vmem:[#allocation72_spill] sm:$0xff] }
 0x145   :  { %v591_v56 = vpop.f32.mrf.mxu3 }
 0x146   :  { %985 = vmatmul.f32.gmra.mxu2 %v6168_v43  ;;  %v592_v59 = vadd.f32 %v591_v56, %v471_v38  ;;  %v6180_v38 = vld [vmem:[#allocation68_spill] sm:$0xff] }
 0x147   :  { %1296 = vmatmul.f32.gmra.mxu0 %v6172_v5  ;;  %v837_v36 = vpop.f32.mrf.mxu1  ;;  %v6186_v5 = vld [vmem:[#allocation80_spill] sm:$0xff] }
 0x148   :  { %v737_v15 = vadd.f32 %v736_v3, %v592_v59 }
 0x149   :  { %v475_v34 = vpop.f32.mrf.mxu2 }
 0x14a   :  { %v476_v48 = vadd.f32 %v475_v34, %v6171_v22  ;;  %v4552_v8 = vadd.f32 %v833_v35, %v737_v15  ;;  %v6184_v22 = vld [vmem:[#allocation93_spill] sm:$0xff] }
 0x14b   :  { %1174 = vmatmul.f32.gmra.mxu3 %v6174_v50 }
 0x14c   :  { %v744_v30 = vpop.f32.mrf.mxu0  ;;  %1418 = vmatmul.f32.gmra.mxu1 %v6175_v29 }
 0x14d   :  { %v597_v60 = vpop.f32.mrf.mxu3 }
 0x14e   :  { %993 = vmatmul.f32.gmra.mxu2 %v6173_v1  ;;  %v598_v41 = vadd.f32 %v597_v60, %v476_v48  ;;  %v6185_v48 = vld [vmem:[#allocation66_spill] sm:$0xff] }
 0x14f   :  { %1301 = vmatmul.f32.gmra.mxu0 %v6177_v28  ;;  %v841_v23 = vpop.f32.mrf.mxu1 }
 0x150   :  { %v741_v16 = vadd.f32 %v740_v0, %v598_v41  ;;  %v6190_v41 = vld [vmem:[#allocation78_spill] sm:$0xff] }
 0x151   :  { %v480_v45 = vpop.f32.mrf.mxu2 }
 0x152   :  { %v481_v61 = vadd.f32 %v480_v45, %v6176_v20  ;;  %v4559_v3 = vadd.f32 %v837_v36, %v741_v16  ;;  %v6187_v45 = vld [vmem:[#allocation82_spill] sm:$0xff]  ;;  %v6191_v16 = vld [vmem:[#allocation87_spill] sm:$0xff] }
 0x153   :  { %1178 = vmatmul.f32.gmra.mxu3 %v6179_v44 }
 0x154   :  { %v748_v10 = vpop.f32.mrf.mxu0  ;;  %1424 = vmatmul.f32.gmra.mxu1 %v6180_v38 }
 0x155   :  { %v603_v27 = vpop.f32.mrf.mxu3 }
 0x156   :  { %1001 = vmatmul.f32.gmra.mxu2 %v6178_v2  ;;  %v604_v43 = vadd.f32 %v603_v27, %v481_v61  ;;  %v6189_v61 = vld [vmem:[#allocation98_spill] sm:$0xff] }
 0x157   :  { %1306 = vmatmul.f32.gmra.mxu0 %v6182_v18  ;;  %v845_v56 = vpop.f32.mrf.mxu1  ;;  %v3292_v18 = vld [vmem:[%s5701_s0] sm:$0xff] }
 0x158   :  { %v745_v34 = vadd.f32 %v744_v30, %v604_v43 }
 0x159   :  { %v485_v12 = vpop.f32.mrf.mxu2 }
 0x15a   :  { %v486_v35 = vadd.f32 %v485_v12, %v6181_v51  ;;  %v4566_v0 = vadd.f32 %v841_v23, %v745_v34  ;;  %v1690_v34 = vmul.f32 %v3292_v18, %v3292_v18  ;;  %v3294_v18 = vld [vmem:[%s5701_s0 + $0x10] sm:$0xff] }
 0x15b   :  { %1182 = vmatmul.f32.gmra.mxu3 %v6185_v48 }
 0x15c   :  { %6183 = vst [vmem:[#allocation21_spill] sm:$0xff] %v4566_v0  ;;  %v752_v59 = vpop.f32.mrf.mxu0  ;;  %1430 = vmatmul.f32.gmra.mxu1 %v6186_v5 }
 0x15d   :  { %v609_v36 = vpop.f32.mrf.mxu3 }
 0x15e   :  { %1009 = vmatmul.f32.gmra.mxu2 %v6184_v22  ;;  %v610_v29 = vadd.f32 %v609_v36, %v486_v35  ;;  %v6194_v35 = vld [vmem:[#allocation105_spill] sm:$0xff] }
 0x15f   :  { %1311 = vmatmul.f32.gmra.mxu0 %v6187_v45 }
 0x160   :  { %v749_v60 = vadd.f32 %v748_v10, %v610_v29  ;;  %v849_v20 = vpop.f32.mrf.mxu1  ;;  %v6196_v29 = vld [vmem:[#allocation111_spill] sm:$0xff] }
 0x161   :  { %v490_v15 = vpop.f32.mrf.mxu2 }
 0x162   :  { %v491_v1 = vadd.f32 %v490_v15, %v4309_v13  ;;  %v4573_v30 = vadd.f32 %v845_v56, %v749_v60  ;;  %v6192_v13 = vld [vmem:[#allocation89_spill] sm:$0xff]  ;;  %v4590_v15 = vand.u32 4294901760, %v1690_v34 }
 0x163   :  { %1186 = vmatmul.f32.gmra.mxu3 %v6190_v41 }
 0x164   :  { %6188 = vst [vmem:[#allocation22_spill] sm:$0xff] %v4573_v30  ;;  %v756_v28 = vpop.f32.mrf.mxu0  ;;  %1436 = vmatmul.f32.gmra.mxu1 %v6191_v16  ;;  %v4598_v45 = vsub.f32 %v1690_v34, %v4590_v15  ;;  %v1692_v34 = vmul.f32 %v3294_v18, %v3294_v18 }
 0x165   :  { %v615_v2 = vpop.f32.mrf.mxu3 }
 0x166   :  { %1017 = vmatmul.f32.gmra.mxu2 %v6189_v61  ;;  %v616_v12 = vadd.f32 %v615_v2, %v491_v1  ;;  %v3293_v61 = vld [vmem:[%s5701_s0 + $0x8] sm:$0xff]  ;;  %v5876_v2 = vand.u32 4294901760, %v4598_v45 }
 0x167   :  { %1316 = vmatmul.f32.gmra.mxu0 %v6192_v13 }
 0x168   :  { %v753_v27 = vadd.f32 %v752_v59, %v616_v12  ;;  %v853_v51 = vpop.f32.mrf.mxu1 }
 0x169   :  { %v495_v23 = vpop.f32.mrf.mxu2 }
 0x16a   :  { %v496_v38 = vadd.f32 %v495_v23, %v4332_v46  ;;  %v4580_v10 = vadd.f32 %v849_v20, %v753_v27  ;;  %v1741_v27 = vsub.f32 %v4598_v45, %v5876_v2 }
 0x16b   :  { %1190 = vmatmul.f32.gmra.mxu3 %v3769_v14 }
 0x16c   :  { %6193 = vst [vmem:[#allocation26_spill] sm:$0xff] %v4580_v10  ;;  %v760_v43 = vpop.f32.mrf.mxu0  ;;  %1442 = vmatmul.f32.gmra.mxu1 %v3816_v62 }
 0x16e   :  { %1025 = vmatmul.f32.gmra.mxu2 %v6194_v35  ;;  %v621_v56 = vpop.f32.mrf.mxu3 }
 0x16f   :  { %v622_v59 = vadd.f32 %v621_v56, %v496_v38  ;;  %1321 = vmatmul.f32.gmra.mxu0 %v3845_v32  ;;  %v6198_v38 = vld [vmem:[#allocation116_spill] sm:$0xff] }
 0x170   :  { %v857_v36 = vpop.f32.mrf.mxu1 }
 0x171   :  { %v500_v46 = vpop.f32.mrf.mxu2  ;;  %v757_v5 = vadd.f32 %v756_v28, %v622_v59  ;;  %v1691_v28 = vmul.f32 %v3293_v61, %v3293_v61 }
 0x172   :  { %v501_v22 = vadd.f32 %v500_v46, %v4356_v49 }
 0x173   :  { %v4592_v1 = vadd.f32 %v853_v51, %v757_v5  ;;  %1194 = vmatmul.f32.gmra.mxu3 %v3824_v57  ;;  %v4610_v12 = vand.u32 4294901760, %v1691_v28 }
 0x174   :  { %v764_v62 = vpop.f32.mrf.mxu0  ;;  %1448 = vmatmul.f32.gmra.mxu1 %v3867_v55 }
 0x175   :  { %6195 = vst [vmem:[#allocation30_spill] sm:$0xff] %v4592_v1 }
 0x176   :  { %1033 = vmatmul.f32.gmra.mxu2 %v6196_v29  ;;  %v627_v60 = vpop.f32.mrf.mxu3 }
 0x177   :  { %v628_v20 = vadd.f32 %v627_v60, %v501_v22  ;;  %1326 = vmatmul.f32.gmra.mxu0 %v3883_v53  ;;  %v3295_v60 = vld [vmem:[%s5701_s0 + $0x18] sm:$0xff] }
 0x178   :  { %v861_v23 = vpop.f32.mrf.mxu1 }
 0x179   :  { %v505_v49 = vpop.f32.mrf.mxu2  ;;  %v761_v16 = vadd.f32 %v760_v43, %v628_v20  ;;  %v4619_v43 = vsub.f32 %v1691_v28, %v4610_v12 }
 0x17a   :  { %v506_v32 = vadd.f32 %v505_v49, %v4381_v6 }
 0x17b   :  { %v4606_v55 = vadd.f32 %v857_v36, %v761_v16  ;;  %1198 = vmatmul.f32.gmra.mxu3 %v3861_v26  ;;  %v5874_v22 = vand.u32 4294901760, %v4619_v43 }
 0x17c   :  { %v768_v6 = vpop.f32.mrf.mxu0  ;;  %1454 = vmatmul.f32.gmra.mxu1 %v6079_v58 }
 0x17d   :  { %6197 = vst [vmem:[#allocation35_spill] sm:$0xff] %v4606_v55 }
 0x17e   :  { %1041 = vmatmul.f32.gmra.mxu2 %v6198_v38  ;;  %v633_v13 = vpop.f32.mrf.mxu3 }
 0x17f   :  { %v634_v35 = vadd.f32 %v633_v13, %v506_v32  ;;  %1331 = vmatmul.f32.gmra.mxu0 %v6078_v25  ;;  %v4629_v25 = vand.u32 4294901760, %v1692_v34  ;;  %v1693_v32 = vmul.f32 %v3295_v60, %v3295_v60 }
 0x181   :  { %v510_v53 = vpop.f32.mrf.mxu2  ;;  %v765_v58 = vadd.f32 %v764_v62, %v634_v35  ;;  %v865_v46 = vpop.f32.mrf.mxu1  ;;  %v1749_v62 = vsub.f32 %v4619_v43, %v5874_v22  ;;  %v4636_v49 = vsub.f32 %v1692_v34, %v4629_v25 }
 0x182   :  { %v511_v51 = vadd.f32 %v510_v53, %v4406_v52  ;;  %v1742_v52 = vand.u32 4294901760, %v1741_v27 }
 0x183   :  { %v4624_v56 = vadd.f32 %v861_v23, %v765_v58  ;;  %1202 = vmatmul.f32.gmra.mxu3 %v6083_v33  ;;  %v5873_v16 = vand.u32 4294901760, %v4636_v49  ;;  %v4646_v23 = vand.u32 4294901760, %v1693_v32 }
 0x184   :  { %v1257_v59 = vpop.f32.mrf.mxu0  ;;  %1460 = vmatmul.f32.gmra.mxu1 %v6089_v21  ;;  %v1750_v21 = vand.u32 4294901760, %v1749_v62 }
 0x185   :  { %6199 = vst [vmem:[#allocation38_spill] sm:$0xff] %v4624_v56 }
 0x186   :  { %1529 = vmatmul.f32.vlgmr.msrb.gmra.mxu2 %v3589_v47  ;;  %v639_v5 = vpop.f32.mrf.mxu3 }
 0x187   :  { %v640_v29 = vadd.f32 %v639_v5, %v511_v51  ;;  %1743 = vmatmul.f32.vlgmr.msrb.gmra.mxu0 %v1742_v52  ;;  %v4653_v51 = vsub.f32 %v1693_v32, %v4646_v23 }
 0x189   :  { %v922_v36 = vpop.f32.mrf.mxu2  ;;  %v769_v20 = vadd.f32 %v768_v6, %v640_v29  ;;  %v1371_v61 = vpop.f32.mrf.mxu1  ;;  %v1757_v6 = vsub.f32 %v4636_v49, %v5873_v16  ;;  %v5871_v52 = vand.u32 4294901760, %v4653_v51 }
 0x18b   :  { %v4641_v28 = vadd.f32 %v865_v46, %v769_v20  ;;  %1626 = vmatmul.f32.vlgmr.msrb.gmra.mxu3 %v3589_v47  ;;  %v3296_v47 = vld [vmem:[%s5701_s0 + $0x20] sm:$0xff]  ;;  %v1758_v46 = vand.u32 4294901760, %v1757_v6 }
 0x18c   :  { %v1262_v38 = vpop.f32.mrf.mxu0  ;;  %1964 = vmatmul.f32.vlgmr.msrb.gmra.mxu1 %v4590_v15  ;;  %v1694_v35 = vmul.f32 %v3296_v47, %v3296_v47 }
 0x18d   :  { %6200 = vst [vmem:[#allocation8_spill] sm:$0xff] %v4641_v28 }
 0x18e   :  { %1533 = vmatmul.f32.gmra.mxu2 %v3643_v42  ;;  %v1143_v13 = vpop.f32.mrf.mxu3  ;;  %v4663_v5 = vand.u32 4294901760, %v1694_v35 }
 0x18f   :  { %v1144_v27 = vadd.f32 %v1143_v13, %v922_v36  ;;  %1751 = vmatmul.f32.gmra.mxu0 %v1750_v21 }
 0x190   :  { %v4670_v32 = vsub.f32 %v1694_v35, %v4663_v5 }
 0x191   :  { %v930_v53 = vpop.f32.mrf.mxu2  ;;  %v1258_v18 = vadd.f32 %v1257_v59, %v1144_v27  ;;  %v1377_v34 = vpop.f32.mrf.mxu1  ;;  %v1765_v59 = vsub.f32 %v4653_v51, %v5871_v52 }
 0x192   :  { %v5870_v27 = vand.u32 4294901760, %v4670_v32 }
 0x193   :  { %v4658_v58 = vadd.f32 %v1371_v61, %v1258_v18  ;;  %1630 = vmatmul.f32.gmra.mxu3 %v3643_v42  ;;  %v3297_v42 = vld [vmem:[%s5701_s0 + $0x28] sm:$0xff] }
 0x194   :  { %v1267_v36 = vpop.f32.mrf.mxu0  ;;  %1968 = vmatmul.f32.gmra.mxu1 %v4610_v12  ;;  %v1695_v20 = vmul.f32 %v3297_v42, %v3297_v42 }
 0x196   :  { %1537 = vmatmul.f32.gmra.mxu2 %v6124_v17  ;;  %v1147_v62 = vpop.f32.mrf.mxu3  ;;  %v4680_v6 = vand.u32 4294901760, %v1695_v20 }
 0x197   :  { %v1148_v60 = vadd.f32 %v1147_v62, %v930_v53  ;;  %1759 = vmatmul.f32.gmra.mxu0 %v1758_v46  ;;  %v1766_v53 = vand.u32 4294901760, %v1765_v59 }
 0x199   :  { %v938_v29 = vpop.f32.mrf.mxu2  ;;  %v1263_v61 = vadd.f32 %v1262_v38, %v1148_v60  ;;  %v1383_v21 = vpop.f32.mrf.mxu1  ;;  %v1773_v38 = vsub.f32 %v4670_v32, %v5870_v27 }
 0x19b   :  { %v4675_v13 = vadd.f32 %v1377_v34, %v1263_v61  ;;  %1634 = vmatmul.f32.gmra.mxu3 %v6124_v17  ;;  %v4687_v34 = vsub.f32 %v1695_v20, %v4680_v6  ;;  %v3298_v17 = vld [vmem:[%s5701_s0 + $0x30] sm:$0xff] }
 0x19c   :  { %v1272_v47 = vpop.f32.mrf.mxu0  ;;  %1972 = vmatmul.f32.gmra.mxu1 %v4629_v25  ;;  %v1696_v62 = vmul.f32 %v3298_v17, %v3298_v17 }
 0x19d   :  { %v5872_v61 = vand.u32 4294901760, %v4687_v34 }
 0x19e   :  { %1541 = vmatmul.f32.gmra.mxu2 %v6133_v40  ;;  %v1151_v18 = vpop.f32.mrf.mxu3 }
 0x19f   :  { %v1152_v46 = vadd.f32 %v1151_v18, %v938_v29  ;;  %1767 = vmatmul.f32.gmra.mxu0 %v1766_v53  ;;  %v1774_v29 = vand.u32 4294901760, %v1773_v38  ;;  %v4697_v53 = vand.u32 4294901760, %v1696_v62 }
 0x1a1   :  { %v946_v35 = vpop.f32.mrf.mxu2  ;;  %v1268_v60 = vadd.f32 %v1267_v36, %v1152_v46  ;;  %v1389_v59 = vpop.f32.mrf.mxu1  ;;  %v1781_v36 = vsub.f32 %v4687_v34, %v5872_v61 }
 0x1a3   :  { %v4692_v42 = vadd.f32 %v1383_v21, %v1268_v60  ;;  %1638 = vmatmul.f32.gmra.mxu3 %v6133_v40  ;;  %v4704_v21 = vsub.f32 %v1696_v62, %v4697_v53  ;;  %v3299_v40 = vld [vmem:[%s5701_s0 + $0x38] sm:$0xff] }
 0x1a4   :  { %v1277_v20 = vpop.f32.mrf.mxu0  ;;  %1976 = vmatmul.f32.gmra.mxu1 %v4646_v23  ;;  %v1697_v46 = vmul.f32 %v3299_v40, %v3299_v40 }
 0x1a6   :  { %1545 = vmatmul.f32.gmra.mxu2 %v6144_v39  ;;  %v1155_v27 = vpop.f32.mrf.mxu3 }
 0x1a7   :  { %v1156_v52 = vadd.f32 %v1155_v27, %v946_v35  ;;  %1775 = vmatmul.f32.gmra.mxu0 %v1774_v29  ;;  %v1782_v27 = vand.u32 4294901760, %v1781_v36  ;;  %v5875_v35 = vand.u32 4294901760, %v4704_v21  ;;  %v4714_v29 = vand.u32 4294901760, %v1697_v46 }
 0x1a9   :  { %v954_v18 = vpop.f32.mrf.mxu2  ;;  %v1273_v38 = vadd.f32 %v1272_v47, %v1156_v52  ;;  %v1395_v17 = vpop.f32.mrf.mxu1  ;;  %v1789_v52 = vsub.f32 %v4704_v21, %v5875_v35  ;;  %v4721_v47 = vsub.f32 %v1697_v46, %v4714_v29 }
 0x1ab   :  { %v4709_v60 = vadd.f32 %v1389_v59, %v1273_v38  ;;  %1642 = vmatmul.f32.gmra.mxu3 %v6144_v39  ;;  %v3300_v39 = vld [vmem:[%s5701_s0 + $0x40] sm:$0xff] }
 0x1ac   :  { %v1282_v62 = vpop.f32.mrf.mxu0  ;;  %1980 = vmatmul.f32.gmra.mxu1 %v4663_v5  ;;  %v1698_v59 = vmul.f32 %v3300_v39, %v3300_v39 }
 0x1ae   :  { %1549 = vmatmul.f32.gmra.mxu2 %v6153_v11  ;;  %v1159_v16 = vpop.f32.mrf.mxu3 }
 0x1af   :  { %v1160_v22 = vadd.f32 %v1159_v16, %v954_v18  ;;  %1783 = vmatmul.f32.gmra.mxu0 %v1782_v27  ;;  %v1790_v16 = vand.u32 4294901760, %v1789_v52  ;;  %v5877_v18 = vand.u32 4294901760, %v4721_v47  ;;  %v4731_v27 = vand.u32 4294901760, %v1698_v59 }
 0x1b1   :  { %v962_v61 = vpop.f32.mrf.mxu2  ;;  %v1278_v36 = vadd.f32 %v1277_v20, %v1160_v22  ;;  %v1401_v40 = vpop.f32.mrf.mxu1  ;;  %v1797_v22 = vsub.f32 %v4721_v47, %v5877_v18  ;;  %v4738_v20 = vsub.f32 %v1698_v59, %v4731_v27 }
 0x1b3   :  { %v4726_v38 = vadd.f32 %v1395_v17, %v1278_v36  ;;  %1646 = vmatmul.f32.gmra.mxu3 %v6153_v11  ;;  %v3301_v11 = vld [vmem:[%s5701_s0 + $0x48] sm:$0xff] }
 0x1b4   :  { %v1287_v46 = vpop.f32.mrf.mxu0  ;;  %1984 = vmatmul.f32.gmra.mxu1 %v4680_v6  ;;  %v1699_v17 = vmul.f32 %v3301_v11, %v3301_v11 }
 0x1b6   :  { %1553 = vmatmul.f32.gmra.mxu2 %v6163_v37  ;;  %v1163_v2 = vpop.f32.mrf.mxu3 }
 0x1b7   :  { %v1164_v28 = vadd.f32 %v1163_v2, %v962_v61  ;;  %1791 = vmatmul.f32.gmra.mxu0 %v1790_v16  ;;  %v1798_v2 = vand.u32 4294901760, %v1797_v22  ;;  %v5878_v61 = vand.u32 4294901760, %v4738_v20  ;;  %v4748_v16 = vand.u32 4294901760, %v1699_v17 }
 0x1b9   :  { %v970_v35 = vpop.f32.mrf.mxu2  ;;  %v1283_v52 = vadd.f32 %v1282_v62, %v1164_v28  ;;  %v1407_v39 = vpop.f32.mrf.mxu1  ;;  %6201 = vst [vmem:[#allocation43_spill] sm:$0xff] %v4748_v16  ;;  %v1805_v28 = vsub.f32 %v4738_v20, %v5878_v61  ;;  %v4755_v62 = vsub.f32 %v1699_v17, %v4748_v16 }
 0x1bb   :  { %v4743_v36 = vadd.f32 %v1401_v40, %v1283_v52  ;;  %1650 = vmatmul.f32.gmra.mxu3 %v6163_v37  ;;  %6202 = vst [vmem:[#allocation14_spill] sm:$0xff] %v4755_v62  ;;  %v3302_v37 = vld [vmem:[%s5701_s0 + $0x50] sm:$0xff] }
 0x1bc   :  { %v1292_v59 = vpop.f32.mrf.mxu0  ;;  %1988 = vmatmul.f32.gmra.mxu1 %v4697_v53  ;;  %v1700_v40 = vmul.f32 %v3302_v37, %v3302_v37 }
 0x1be   :  { %1557 = vmatmul.f32.gmra.mxu2 %v6169_v24  ;;  %v1167_v56 = vpop.f32.mrf.mxu3 }
 0x1bf   :  { %v1168_v55 = vadd.f32 %v1167_v56, %v970_v35  ;;  %1799 = vmatmul.f32.gmra.mxu0 %v1798_v2  ;;  %v1806_v56 = vand.u32 4294901760, %v1805_v28  ;;  %v5879_v35 = vand.u32 4294901760, %v4755_v62  ;;  %v4765_v2 = vand.u32 4294901760, %v1700_v40 }
 0x1c1   :  { %v978_v18 = vpop.f32.mrf.mxu2  ;;  %v1288_v22 = vadd.f32 %v1287_v46, %v1168_v55  ;;  %v1413_v11 = vpop.f32.mrf.mxu1  ;;  %6203 = vst [vmem:[#allocation107_spill] sm:$0xff] %v4765_v2  ;;  %v1813_v55 = vsub.f32 %v4755_v62, %v5879_v35  ;;  %v4772_v46 = vsub.f32 %v1700_v40, %v4765_v2 }
 0x1c3   :  { %v4760_v52 = vadd.f32 %v1407_v39, %v1288_v22  ;;  %1654 = vmatmul.f32.gmra.mxu3 %v6169_v24  ;;  %6204 = vst [vmem:[#allocation103_spill] sm:$0xff] %v4772_v46  ;;  %v3303_v24 = vld [vmem:[%s5701_s0 + $0x58] sm:$0xff] }
 0x1c4   :  { %v1297_v17 = vpop.f32.mrf.mxu0  ;;  %1992 = vmatmul.f32.gmra.mxu1 %v4714_v29  ;;  %v1701_v39 = vmul.f32 %v3303_v24, %v3303_v24 }
 0x1c6   :  { %1561 = vmatmul.f32.gmra.mxu2 %v6174_v50  ;;  %v1171_v1 = vpop.f32.mrf.mxu3 }
 0x1c7   :  { %v1172_v10 = vadd.f32 %v1171_v1, %v978_v18  ;;  %1807 = vmatmul.f32.gmra.mxu0 %v1806_v56  ;;  %v1814_v1 = vand.u32 4294901760, %v1813_v55  ;;  %v5880_v18 = vand.u32 4294901760, %v4772_v46  ;;  %v4782_v56 = vand.u32 4294901760, %v1701_v39 }
 0x1c9   :  { %v986_v61 = vpop.f32.mrf.mxu2  ;;  %v1293_v28 = vadd.f32 %v1292_v59, %v1172_v10  ;;  %v1419_v37 = vpop.f32.mrf.mxu1  ;;  %6205 = vst [vmem:[#allocation47_spill] sm:$0xff] %v4782_v56  ;;  %v1821_v10 = vsub.f32 %v4772_v46, %v5880_v18  ;;  %v4789_v59 = vsub.f32 %v1701_v39, %v4782_v56 }
 0x1cb   :  { %v4777_v22 = vadd.f32 %v1413_v11, %v1293_v28  ;;  %1658 = vmatmul.f32.gmra.mxu3 %v6174_v50  ;;  %6206 = vst [vmem:[#allocation16_spill] sm:$0xff] %v4789_v59  ;;  %v3304_v50 = vld [vmem:[%s5701_s0 + $0x60] sm:$0xff] }
 0x1cc   :  { %v1302_v40 = vpop.f32.mrf.mxu0  ;;  %1996 = vmatmul.f32.gmra.mxu1 %v4731_v27  ;;  %v1702_v11 = vmul.f32 %v3304_v50, %v3304_v50 }
 0x1ce   :  { %1565 = vmatmul.f32.gmra.mxu2 %v6179_v44  ;;  %v1175_v30 = vpop.f32.mrf.mxu3 }
 0x1cf   :  { %v1176_v0 = vadd.f32 %v1175_v30, %v986_v61  ;;  %1815 = vmatmul.f32.gmra.mxu0 %v1814_v1  ;;  %v1822_v30 = vand.u32 4294901760, %v1821_v10  ;;  %v5885_v61 = vand.u32 4294901760, %v4789_v59  ;;  %v4799_v1 = vand.u32 4294901760, %v1702_v11 }
 0x1d1   :  { %v994_v35 = vpop.f32.mrf.mxu2  ;;  %v1298_v55 = vadd.f32 %v1297_v17, %v1176_v0  ;;  %v1425_v24 = vpop.f32.mrf.mxu1  ;;  %v1829_v0 = vsub.f32 %v4789_v59, %v5885_v61  ;;  %v4806_v17 = vsub.f32 %v1702_v11, %v4799_v1 }
 0x1d3   :  { %v4794_v28 = vadd.f32 %v1419_v37, %v1298_v55  ;;  %1662 = vmatmul.f32.gmra.mxu3 %v6179_v44  ;;  %6207 = vst [vmem:[#allocation104_spill] sm:$0xff] %v4806_v17  ;;  %v3305_v44 = vld [vmem:[%s5701_s0 + $0x68] sm:$0xff] }
 0x1d4   :  { %v1307_v39 = vpop.f32.mrf.mxu0  ;;  %2000 = vmatmul.f32.gmra.mxu1 %v4748_v16  ;;  %v1703_v37 = vmul.f32 %v3305_v44, %v3305_v44 }
 0x1d6   :  { %1569 = vmatmul.f32.gmra.mxu2 %v6185_v48  ;;  %v1179_v46 = vpop.f32.mrf.mxu3 }
 0x1d7   :  { %v1180_v62 = vadd.f32 %v1179_v46, %v994_v35  ;;  %1823 = vmatmul.f32.gmra.mxu0 %v1822_v30  ;;  %v1830_v35 = vand.u32 4294901760, %v1829_v0  ;;  %v5890_v46 = vand.u32 4294901760, %v4806_v17  ;;  %v4816_v30 = vand.u32 4294901760, %v1703_v37 }
 0x1d9   :  { %v1002_v18 = vpop.f32.mrf.mxu2  ;;  %v1303_v10 = vadd.f32 %v1302_v40, %v1180_v62  ;;  %v1431_v50 = vpop.f32.mrf.mxu1  ;;  %6208 = vst [vmem:[#allocation51_spill] sm:$0xff] %v4816_v30  ;;  %v1837_v62 = vsub.f32 %v4806_v17, %v5890_v46  ;;  %v4823_v40 = vsub.f32 %v1703_v37, %v4816_v30 }
 0x1db   :  { %v4811_v55 = vadd.f32 %v1425_v24, %v1303_v10  ;;  %1666 = vmatmul.f32.gmra.mxu3 %v6185_v48  ;;  %6209 = vst [vmem:[#allocation19_spill] sm:$0xff] %v4823_v40  ;;  %v3306_v48 = vld [vmem:[%s5701_s0 + $0x70] sm:$0xff] }
 0x1dc   :  { %v1312_v11 = vpop.f32.mrf.mxu0  ;;  %2004 = vmatmul.f32.gmra.mxu1 %v4765_v2  ;;  %v1704_v24 = vmul.f32 %v3306_v48, %v3306_v48 }
 0x1de   :  { %1573 = vmatmul.f32.gmra.mxu2 %v6190_v41  ;;  %v1183_v59 = vpop.f32.mrf.mxu3 }
 0x1df   :  { %v1184_v16 = vadd.f32 %v1183_v59, %v1002_v18  ;;  %1831 = vmatmul.f32.gmra.mxu0 %v1830_v35  ;;  %v1838_v18 = vand.u32 4294901760, %v1837_v62  ;;  %v5895_v59 = vand.u32 4294901760, %v4823_v40  ;;  %v4833_v35 = vand.u32 4294901760, %v1704_v24 }
 0x1e1   :  { %v1010_v61 = vpop.f32.mrf.mxu2  ;;  %v1308_v0 = vadd.f32 %v1307_v39, %v1184_v16  ;;  %v1437_v44 = vpop.f32.mrf.mxu1  ;;  %v1845_v16 = vsub.f32 %v4823_v40, %v5895_v59  ;;  %v4840_v39 = vsub.f32 %v1704_v24, %v4833_v35 }
 0x1e3   :  { %v4828_v10 = vadd.f32 %v1431_v50, %v1308_v0  ;;  %1670 = vmatmul.f32.gmra.mxu3 %v6190_v41  ;;  %6210 = vst [vmem:[#allocation57_spill] sm:$0xff] %v4840_v39  ;;  %v3307_v41 = vld [vmem:[%s5701_s0 + $0x78] sm:$0xff]  ;;  %s3146_s0 = sld [smem:[#allocation2 + $0x1]] }
 0x1e4   :  { %v1317_v37 = vpop.f32.mrf.mxu0  ;;  %2008 = vmatmul.f32.gmra.mxu1 %v4782_v56  ;;  %v1705_v50 = vmul.f32 %v3307_v41, %v3307_v41 }
 0x1e6   :  { %1577 = vmatmul.f32.gmra.mxu2 %v3769_v14  ;;  %v1187_v17 = vpop.f32.mrf.mxu3 }
 0x1e7   :  { %v1188_v2 = vadd.f32 %v1187_v17, %v1010_v61  ;;  %1839 = vmatmul.f32.gmra.mxu0 %v1838_v18  ;;  %v1846_v61 = vand.u32 4294901760, %v1845_v16  ;;  %v5900_v17 = vand.u32 4294901760, %v4840_v39  ;;  %v4850_v18 = vand.u32 4294901760, %v1705_v50 }
 0x1e9   :  { %v1018_v46 = vpop.f32.mrf.mxu2  ;;  %v1313_v62 = vadd.f32 %v1312_v11, %v1188_v2  ;;  %v1443_v48 = vpop.f32.mrf.mxu1  ;;  %v1853_v2 = vsub.f32 %v4840_v39, %v5900_v17  ;;  %v4857_v11 = vsub.f32 %v1705_v50, %v4850_v18 }
 0x1eb   :  { %v4845_v0 = vadd.f32 %v1437_v44, %v1313_v62  ;;  %1674 = vmatmul.f32.gmra.mxu3 %v3769_v14  ;;  %v1854_v41 = vand.u32 4294901760, %v1853_v2  ;;  %v5905_v62 = vand.u32 4294901760, %v4857_v11 }
 0x1ec   :  { %v1322_v24 = vpop.f32.mrf.mxu0  ;;  %2012 = vmatmul.f32.gmra.mxu1 %v4799_v1 }
 0x1ee   :  { %1581 = vmatmul.f32.gmra.mxu2 %v3824_v57  ;;  %v1191_v40 = vpop.f32.mrf.mxu3 }
 0x1ef   :  { %v1192_v56 = vadd.f32 %v1191_v40, %v1018_v46  ;;  %1847 = vmatmul.f32.gmra.mxu0 %v1846_v61 }
 0x1f1   :  { %v1026_v59 = vpop.f32.mrf.mxu2  ;;  %v1318_v14 = vadd.f32 %v1317_v37, %v1192_v56  ;;  %v1449_v44 = vpop.f32.mrf.mxu1  ;;  %v1861_v56 = vsub.f32 %v4857_v11, %v5905_v62 }
 0x1f3   :  { %v4859_v16 = vadd.f32 %v1443_v48, %v1318_v14  ;;  %1678 = vmatmul.f32.gmra.mxu3 %v3824_v57  ;;  %v1862_v57 = vand.u32 4294901760, %v1861_v56 }
 0x1f4   :  { %v1327_v46 = vpop.f32.mrf.mxu0  ;;  %2016 = vmatmul.f32.gmra.mxu1 %v4816_v30 }
 0x1f6   :  { %1585 = vmatmul.f32.gmra.mxu2 %v3861_v26  ;;  %v1195_v61 = vpop.f32.mrf.mxu3 }
 0x1f7   :  { %v1196_v17 = vadd.f32 %v1195_v61, %v1026_v59  ;;  %1855 = vmatmul.f32.gmra.mxu0 %v1854_v41 }
 0x1f9   :  { %v1034_v40 = vpop.f32.mrf.mxu2  ;;  %v1323_v37 = vadd.f32 %v1322_v24, %v1196_v17  ;;  %v1455_v50 = vpop.f32.mrf.mxu1 }
 0x1fb   :  { %v4868_v48 = vadd.f32 %v1449_v44, %v1323_v37  ;;  %1682 = vmatmul.f32.gmra.mxu3 %v3861_v26  ;;  %v6211_v37 = vand.u32 4294901760, %v4598_v45 }
 0x1fc   :  { %v1332_v2 = vpop.f32.mrf.mxu0  ;;  %2020 = vmatmul.f32.gmra.mxu1 %v4833_v35 }
 0x1fe   :  { %1589 = vmatmul.f32.gmra.mxu2 %v6083_v33  ;;  %v1199_v39 = vpop.f32.mrf.mxu3 }
 0x1ff   :  { %v1200_v59 = vadd.f32 %v1199_v39, %v1034_v40  ;;  %1863 = vmatmul.f32.gmra.mxu0 %v1862_v57  ;;  %v4885_v40 = vmul.f32 0.03125, %v4437_v19 }
 0x201   :  { %v1042_v14 = vpop.f32.mrf.mxu2  ;;  %v1328_v41 = vadd.f32 %v1327_v46, %v1200_v59  ;;  %v1461_v61 = vpop.f32.mrf.mxu1 }
 0x203   :  { %v4873_v30 = vadd.f32 %v1455_v50, %v1328_v41  ;;  %1686 = vmatmul.f32.gmra.mxu3 %v6083_v33  ;;  %v4892_v50 = vstv %s3146_s0 }
 0x204   :  { %v4877_v17 = vpop.f32.mrf.mxu0  ;;  %2024 = vmatmul.f32.gmra.mxu1 %v4850_v18 }
 0x206   :  { %2078 = vmatmul.f32.vlgmr.msra.gmra.mxu2 %v4598_v45  ;;  %v1203_v26 = vpop.f32.mrf.mxu3 }
 0x207   :  { %v1204_v44 = vadd.f32 %v1203_v26, %v1042_v14  ;;  %2351 = vmatmul.f32.vlgmr.msra.gmra.mxu0 %v4590_v15  ;;  %v4899_v14 = vmul.f32 %v4892_v50, %v4885_v40 }
 0x209   :  { %v1530_v24 = vpop.f32.mrf.mxu2  ;;  %v1333_v39 = vadd.f32 %v1332_v2, %v1204_v44  ;;  %v4882_v46 = vpop.f32.mrf.mxu1 }
 0x20a   :  { %v1531_v56 = vadd.f32 %v1530_v24, %v4658_v58 }
 0x20b   :  { %v4887_v33 = vadd.f32 %v1461_v61, %v1333_v39  ;;  %2192 = vmatmul.f32.vlgmr.msra.gmra.mxu3 %v6211_v37  ;;  %v4910_v61 = vmul.f32 0.03125, %v4456_v31  ;;  %v4931_v37 = vmul.f32 0.03125, %v4475_v9 }
 0x20c   :  { %v4894_v57 = vpop.f32.mrf.mxu0  ;;  %2448 = vmatmul.f32.vlgmr.msra.gmra.mxu1 %v4590_v15  ;;  %v6212_v15 = vand.u32 4294901760, %v4619_v43 }
 0x20d   :  { %v4920_v44 = vmul.f32 %v4892_v50, %v4910_v61 }
 0x20e   :  { %2083 = vmatmul.f32.gmra.mxu2 %v4619_v43  ;;  %v1627_v2 = vpop.f32.mrf.mxu3 }
 0x20f   :  { %v4902_v59 = vadd.f32 %v1627_v2, %v1531_v56  ;;  %2355 = vmatmul.f32.gmra.mxu0 %v4610_v12 }
 0x211   :  { %v1534_v58 = vpop.f32.mrf.mxu2  ;;  %v4907_v41 = vpop.f32.mrf.mxu1 }
 0x212   :  { %v1535_v19 = vadd.f32 %v1534_v58, %v4675_v13 }
 0x213   :  { %2198 = vmatmul.f32.gmra.mxu3 %v6212_v15 }
 0x214   :  { %v4915_v26 = vpop.f32.mrf.mxu0  ;;  %2452 = vmatmul.f32.gmra.mxu1 %v4610_v12  ;;  %v6213_v12 = vand.u32 4294901760, %v4636_v49 }
 0x216   :  { %2088 = vmatmul.f32.gmra.mxu2 %v4636_v49  ;;  %v1631_v24 = vpop.f32.mrf.mxu3 }
 0x217   :  { %v4923_v39 = vadd.f32 %v1631_v24, %v1535_v19  ;;  %2359 = vmatmul.f32.gmra.mxu0 %v4629_v25  ;;  %v4941_v19 = vmul.f32 %v4892_v50, %v4931_v37  ;;  %v4952_v24 = vmul.f32 0.03125, %v4494_v7 }
 0x219   :  { %v1538_v13 = vpop.f32.mrf.mxu2  ;;  %v4928_v43 = vpop.f32.mrf.mxu1 }
 0x21a   :  { %v1539_v56 = vadd.f32 %v1538_v13, %v4692_v42 }
 0x21b   :  { %2204 = vmatmul.f32.gmra.mxu3 %v6213_v12 }
 0x21c   :  { %v4936_v58 = vpop.f32.mrf.mxu0  ;;  %2456 = vmatmul.f32.gmra.mxu1 %v4629_v25  ;;  %v6214_v25 = vand.u32 4294901760, %v4653_v51 }
 0x21e   :  { %2093 = vmatmul.f32.gmra.mxu2 %v4653_v51  ;;  %v1635_v2 = vpop.f32.mrf.mxu3 }
 0x21f   :  { %v4944_v13 = vadd.f32 %v1635_v2, %v1539_v56  ;;  %2363 = vmatmul.f32.gmra.mxu0 %v4646_v23 }
 0x221   :  { %v1542_v42 = vpop.f32.mrf.mxu2  ;;  %v4949_v49 = vpop.f32.mrf.mxu1 }
 0x222   :  { %v1543_v15 = vadd.f32 %v1542_v42, %v4709_v60  ;;  %v4962_v42 = vmul.f32 %v4892_v50, %v4952_v24 }
 0x223   :  { %2210 = vmatmul.f32.gmra.mxu3 %v6214_v25  ;;  %v4973_v25 = vmul.f32 0.03125, %v4513_v4 }
 0x224   :  { %v4957_v12 = vpop.f32.mrf.mxu0  ;;  %2460 = vmatmul.f32.gmra.mxu1 %v4646_v23  ;;  %v6215_v23 = vand.u32 4294901760, %v4670_v32 }
 0x226   :  { %2098 = vmatmul.f32.gmra.mxu2 %v4670_v32  ;;  %v1639_v56 = vpop.f32.mrf.mxu3 }
 0x227   :  { %v4965_v9 = vadd.f32 %v1639_v56, %v1543_v15  ;;  %2367 = vmatmul.f32.gmra.mxu0 %v4663_v5 }
 0x229   :  { %v1546_v60 = vpop.f32.mrf.mxu2  ;;  %v4970_v51 = vpop.f32.mrf.mxu1 }
 0x22a   :  { %v1547_v2 = vadd.f32 %v1546_v60, %v4726_v38  ;;  %v4983_v60 = vmul.f32 %v4892_v50, %v4973_v25 }
 0x22b   :  { %2216 = vmatmul.f32.gmra.mxu3 %v6215_v23  ;;  %v4994_v23 = vmul.f32 0.03125, %v4532_v54 }
 0x22c   :  { %v4978_v31 = vpop.f32.mrf.mxu0  ;;  %2464 = vmatmul.f32.gmra.mxu1 %v4663_v5  ;;  %v6216_v5 = vand.u32 4294901760, %v4687_v34 }
 0x22e   :  { %2103 = vmatmul.f32.gmra.mxu2 %v4687_v34  ;;  %v1643_v15 = vpop.f32.mrf.mxu3 }
 0x22f   :  { %v4986_v7 = vadd.f32 %v1643_v15, %v1547_v2  ;;  %2371 = vmatmul.f32.gmra.mxu0 %v4680_v6 }
 0x231   :  { %v1550_v38 = vpop.f32.mrf.mxu2  ;;  %v4991_v32 = vpop.f32.mrf.mxu1 }
 0x232   :  { %v1551_v56 = vadd.f32 %v1550_v38, %v4743_v36  ;;  %v5004_v38 = vmul.f32 %v4892_v50, %v4994_v23 }
 0x233   :  { %2222 = vmatmul.f32.gmra.mxu3 %v6216_v5  ;;  %v5015_v5 = vmul.f32 0.03125, %v4545_v63 }
 0x234   :  { %v4999_v45 = vpop.f32.mrf.mxu0  ;;  %2468 = vmatmul.f32.gmra.mxu1 %v4680_v6  ;;  %6217 = vst [vmem:[#allocation112_spill] sm:$0xff] %v5004_v38  ;;  %v6219_v6 = vand.u32 4294901760, %v4704_v21 }
 0x236   :  { %2108 = vmatmul.f32.gmra.mxu2 %v4704_v21  ;;  %v1647_v2 = vpop.f32.mrf.mxu3 }
 0x237   :  { %v5007_v4 = vadd.f32 %v1647_v2, %v1551_v56  ;;  %2375 = vmatmul.f32.gmra.mxu0 %v4697_v53 }
 0x239   :  { %v1554_v36 = vpop.f32.mrf.mxu2  ;;  %6218 = vst [vmem:[#allocation73_spill] sm:$0xff] %v5007_v4  ;;  %v5012_v34 = vpop.f32.mrf.mxu1 }
 0x23a   :  { %v1555_v15 = vadd.f32 %v1554_v36, %v4760_v52  ;;  %v5025_v36 = vmul.f32 %v4892_v50, %v5015_v5 }
 0x23b   :  { %2228 = vmatmul.f32.gmra.mxu3 %v6219_v6  ;;  %v5036_v6 = vmul.f32 0.03125, %v4552_v8  ;;  %v6230_v8 = vld [vmem:[#allocation43_spill] sm:$0xff] }
 0x23c   :  { %v5020_v62 = vpop.f32.mrf.mxu0  ;;  %2472 = vmatmul.f32.gmra.mxu1 %v4697_v53  ;;  %6220 = vst [vmem:[#allocation25_spill] sm:$0xff] %v5025_v36  ;;  %v6222_v53 = vand.u32 4294901760, %v4721_v47  ;;  %v6226_v36 = vand.u32 4294901760, %v4738_v20 }
 0x23e   :  { %2113 = vmatmul.f32.gmra.mxu2 %v4721_v47  ;;  %v1651_v56 = vpop.f32.mrf.mxu3 }
 0x23f   :  { %v5028_v54 = vadd.f32 %v1651_v56, %v1555_v15  ;;  %2379 = vmatmul.f32.gmra.mxu0 %v4714_v29 }
 0x241   :  { %v1558_v52 = vpop.f32.mrf.mxu2  ;;  %6221 = vst [vmem:[#allocation62_spill] sm:$0xff] %v5028_v54  ;;  %v5033_v21 = vpop.f32.mrf.mxu1 }
 0x242   :  { %v1559_v2 = vadd.f32 %v1558_v52, %v4777_v22  ;;  %v5044_v52 = vmul.f32 %v4892_v50, %v5036_v6 }
 0x243   :  { %2234 = vmatmul.f32.gmra.mxu3 %v6222_v53  ;;  %v5053_v53 = vmul.f32 0.03125, %v4559_v3 }
 0x244   :  { %v1808_v38 = vpop.f32.mrf.mxu0  ;;  %2476 = vmatmul.f32.gmra.mxu1 %v4714_v29  ;;  %6223 = vst [vmem:[#allocation31_spill] sm:$0xff] %v5044_v52  ;;  %v6225_v29 = vld [vmem:[#allocation14_spill] sm:$0xff] }
 0x245   :  { %v6233_v52 = vand.u32 4294901760, %v6225_v29 }
 0x246   :  { %2118 = vmatmul.f32.gmra.mxu2 %v4738_v20  ;;  %v1655_v15 = vpop.f32.mrf.mxu3  ;;  %v6237_v20 = vld [vmem:[#allocation107_spill] sm:$0xff] }
 0x247   :  { %v5047_v63 = vadd.f32 %v1655_v15, %v1559_v2  ;;  %2383 = vmatmul.f32.gmra.mxu0 %v4731_v27 }
 0x249   :  { %v1562_v22 = vpop.f32.mrf.mxu2  ;;  %6224 = vst [vmem:[#allocation56_spill] sm:$0xff] %v5047_v63  ;;  %v1997_v47 = vpop.f32.mrf.mxu1 }
 0x24a   :  { %v1563_v56 = vadd.f32 %v1562_v22, %v4794_v28  ;;  %v5058_v54 = vadd.f32 %v1997_v47, %v1808_v38  ;;  %v5063_v22 = vmul.f32 %v4892_v50, %v5053_v53 }
 0x24b   :  { %2240 = vmatmul.f32.gmra.mxu3 %v6226_v36  ;;  %v6231_v36 = vld [vmem:[#allocation21_spill] sm:$0xff] }
 0x24c   :  { %6227 = vst [vmem:[#allocation64_spill] sm:$0xff] %v5058_v54  ;;  %v1816_v4 = vpop.f32.mrf.mxu0  ;;  %2480 = vmatmul.f32.gmra.mxu1 %v4731_v27  ;;  %v5072_v47 = vmul.f32 0.03125, %v6231_v36  ;;  %v6232_v27 = vld [vmem:[#allocation103_spill] sm:$0xff] }
 0x24d   :  { %6228 = vst [vmem:[#allocation36_spill] sm:$0xff] %v5063_v22  ;;  %v6240_v22 = vand.u32 4294901760, %v6232_v27 }
 0x24e   :  { %2123 = vmatmul.f32.gmra.mxu2 %v6225_v29  ;;  %v1659_v2 = vpop.f32.mrf.mxu3  ;;  %v6238_v29 = vld [vmem:[#allocation22_spill] sm:$0xff] }
 0x24f   :  { %v5066_v3 = vadd.f32 %v1659_v2, %v1563_v56  ;;  %2387 = vmatmul.f32.gmra.mxu0 %v6230_v8 }
 0x251   :  { %v1566_v28 = vpop.f32.mrf.mxu2  ;;  %6229 = vst [vmem:[#allocation70_spill] sm:$0xff] %v5066_v3  ;;  %v2001_v38 = vpop.f32.mrf.mxu1 }
 0x252   :  { %v1567_v15 = vadd.f32 %v1566_v28, %v4811_v55  ;;  %v5077_v63 = vadd.f32 %v2001_v38, %v1816_v4  ;;  %v5082_v28 = vmul.f32 %v4892_v50, %v5072_v47  ;;  %v5091_v38 = vmul.f32 0.03125, %v6238_v29 }
 0x253   :  { %2246 = vmatmul.f32.gmra.mxu3 %v6233_v52  ;;  %v6244_v52 = vld [vmem:[#allocation47_spill] sm:$0xff] }
 0x254   :  { %6234 = vst [vmem:[#allocation83_spill] sm:$0xff] %v5077_v63  ;;  %v1824_v54 = vpop.f32.mrf.mxu0  ;;  %2484 = vmatmul.f32.gmra.mxu1 %v6230_v8  ;;  %v6239_v8 = vld [vmem:[#allocation16_spill] sm:$0xff] }
 0x255   :  { %6235 = vst [vmem:[#allocation39_spill] sm:$0xff] %v5082_v28  ;;  %v6247_v28 = vand.u32 4294901760, %v6239_v8 }
 0x256   :  { %2128 = vmatmul.f32.gmra.mxu2 %v6232_v27  ;;  %v1663_v56 = vpop.f32.mrf.mxu3  ;;  %v6245_v27 = vld [vmem:[#allocation26_spill] sm:$0xff] }
 0x257   :  { %v5085_v36 = vadd.f32 %v1663_v56, %v1567_v15  ;;  %2391 = vmatmul.f32.gmra.mxu0 %v6237_v20 }
 0x259   :  { %v1570_v55 = vpop.f32.mrf.mxu2  ;;  %6236 = vst [vmem:[#allocation71_spill] sm:$0xff] %v5085_v36  ;;  %v2005_v4 = vpop.f32.mrf.mxu1 }
 0x25a   :  { %v1571_v2 = vadd.f32 %v1570_v55, %v4828_v10  ;;  %v5096_v3 = vadd.f32 %v2005_v4, %v1824_v54  ;;  %v5101_v55 = vmul.f32 %v4892_v50, %v5091_v38  ;;  %v5110_v4 = vmul.f32 0.03125, %v6245_v27 }
 0x25b   :  { %2252 = vmatmul.f32.gmra.mxu3 %v6240_v22 }
 0x25c   :  { %6241 = vst [vmem:[#allocation61_spill] sm:$0xff] %v5096_v3  ;;  %v1832_v63 = vpop.f32.mrf.mxu0  ;;  %2488 = vmatmul.f32.gmra.mxu1 %v6237_v20  ;;  %v6246_v20 = vld [vmem:[#allocation104_spill] sm:$0xff] }
 0x25d   :  { %6242 = vst [vmem:[#allocation44_spill] sm:$0xff] %v5101_v55  ;;  %v6253_v22 = vand.u32 4294901760, %v6246_v20 }
 0x25e   :  { %2133 = vmatmul.f32.gmra.mxu2 %v6239_v8  ;;  %v1667_v15 = vpop.f32.mrf.mxu3  ;;  %v6250_v8 = vld [vmem:[#allocation30_spill] sm:$0xff] }
 0x25f   :  { %v5104_v29 = vadd.f32 %v1667_v15, %v1571_v2  ;;  %2395 = vmatmul.f32.gmra.mxu0 %v6244_v52 }
 0x261   :  { %v1574_v10 = vpop.f32.mrf.mxu2  ;;  %6243 = vst [vmem:[#allocation69_spill] sm:$0xff] %v5104_v29  ;;  %v2009_v54 = vpop.f32.mrf.mxu1 }
 0x262   :  { %v1575_v56 = vadd.f32 %v1574_v10, %v4845_v0  ;;  %v5115_v36 = vadd.f32 %v2009_v54, %v1832_v63  ;;  %v5120_v10 = vmul.f32 %v4892_v50, %v5110_v4  ;;  %v5129_v54 = vmul.f32 0.03125, %v6250_v8 }
 0x263   :  { %2258 = vmatmul.f32.gmra.mxu3 %v6247_v28  ;;  %v6256_v28 = vld [vmem:[#allocation51_spill] sm:$0xff] }
 0x264   :  { %v1840_v3 = vpop.f32.mrf.mxu0  ;;  %2492 = vmatmul.f32.gmra.mxu1 %v6244_v52  ;;  %6248 = vst [vmem:[#allocation76_spill] sm:$0xff] %v5120_v10  ;;  %v6252_v52 = vld [vmem:[#allocation19_spill] sm:$0xff] }
 0x265   :  { %6251 = vst [vmem:[#allocation48_spill] sm:$0xff] %v5129_v54  ;;  %v6259_v10 = vand.u32 4294901760, %v6252_v52 }
 0x266   :  { %2138 = vmatmul.f32.gmra.mxu2 %v6246_v20  ;;  %v1671_v2 = vpop.f32.mrf.mxu3  ;;  %v6257_v20 = vld [vmem:[#allocation35_spill] sm:$0xff] }
 0x267   :  { %v5123_v27 = vadd.f32 %v1671_v2, %v1575_v56  ;;  %2399 = vmatmul.f32.gmra.mxu0 %v4799_v1 }
 0x269   :  { %v1578_v0 = vpop.f32.mrf.mxu2  ;;  %6249 = vst [vmem:[#allocation5_spill] sm:$0xff] %v5123_v27  ;;  %v2013_v63 = vpop.f32.mrf.mxu1 }
 0x26a   :  { %v1579_v15 = vadd.f32 %v1578_v0, %v4859_v16  ;;  %v5134_v55 = vadd.f32 %v2013_v63, %v1840_v3  ;;  %v5139_v0 = vmul.f32 %v4892_v50, %v5129_v54  ;;  %v5148_v63 = vmul.f32 0.03125, %v6257_v20 }
 0x26b   :  { %2264 = vmatmul.f32.gmra.mxu3 %v6253_v22 }
 0x26c   :  { %v1848_v29 = vpop.f32.mrf.mxu0  ;;  %2496 = vmatmul.f32.gmra.mxu1 %v4799_v1  ;;  %6254 = vst [vmem:[#allocation77_spill] sm:$0xff] %v5139_v0  ;;  %v6258_v1 = vld [vmem:[#allocation57_spill] sm:$0xff] }
 0x26e   :  { %2143 = vmatmul.f32.gmra.mxu2 %v6252_v52  ;;  %v1675_v56 = vpop.f32.mrf.mxu3  ;;  %v6262_v52 = vld [vmem:[#allocation38_spill] sm:$0xff] }
 0x26f   :  { %v5142_v8 = vadd.f32 %v1675_v56, %v1579_v15  ;;  %2403 = vmatmul.f32.gmra.mxu0 %v6256_v28 }
 0x271   :  { %v1582_v16 = vpop.f32.mrf.mxu2  ;;  %6255 = vst [vmem:[#allocation6_spill] sm:$0xff] %v5142_v8  ;;  %v2017_v3 = vpop.f32.mrf.mxu1 }
 0x272   :  { %v1583_v2 = vadd.f32 %v1582_v16, %v4868_v48  ;;  %v5153_v27 = vadd.f32 %v2017_v3, %v1848_v29  ;;  %v5158_v16 = vmul.f32 %v4892_v50, %v5148_v63  ;;  %v5167_v3 = vmul.f32 0.03125, %v6262_v52 }
 0x273   :  { %2270 = vmatmul.f32.gmra.mxu3 %v6259_v10 }
 0x274   :  { %v1856_v54 = vpop.f32.mrf.mxu0  ;;  %2500 = vmatmul.f32.gmra.mxu1 %v6256_v28  ;;  %6260 = vst [vmem:[#allocation11_spill] sm:$0xff] %v5158_v16  ;;  %v6264_v28 = vand.u32 4294901760, %v6258_v1 }
 0x275   :  { %6263 = vst [vmem:[#allocation120_spill] sm:$0xff] %v5167_v3 }
 0x276   :  { %2148 = vmatmul.f32.gmra.mxu2 %v6258_v1  ;;  %v1679_v15 = vpop.f32.mrf.mxu3 }
 0x277   :  { %v5161_v20 = vadd.f32 %v1679_v15, %v1583_v2  ;;  %2407 = vmatmul.f32.gmra.mxu0 %v4833_v35 }
 0x279   :  { %v1586_v48 = vpop.f32.mrf.mxu2  ;;  %6261 = vst [vmem:[#allocation90_spill] sm:$0xff] %v5161_v20  ;;  %v2021_v29 = vpop.f32.mrf.mxu1 }
 0x27a   :  { %v1587_v56 = vadd.f32 %v1586_v48, %v4873_v30  ;;  %v5172_v22 = vadd.f32 %v2021_v29, %v1856_v54  ;;  %v5177_v48 = vmul.f32 %v4892_v50, %v5167_v3  ;;  %v6267_v29 = vld [vmem:[#allocation8_spill] sm:$0xff] }
 0x27b   :  { %2276 = vmatmul.f32.gmra.mxu3 %v6264_v28  ;;  %v5186_v28 = vmul.f32 0.03125, %v6267_v29 }
 0x27c   :  { %v1864_v0 = vpop.f32.mrf.mxu0  ;;  %2504 = vmatmul.f32.gmra.mxu1 %v4833_v35  ;;  %6265 = vst [vmem:[#allocation74_spill] sm:$0xff] %v5177_v48  ;;  %v6269_v35 = vand.u32 4294901760, %v4857_v11 }
 0x27d   :  { %6268 = vst [vmem:[#allocation12_spill] sm:$0xff] %v5186_v28 }
 0x27e   :  { %2153 = vmatmul.f32.gmra.mxu2 %v4857_v11  ;;  %v1683_v2 = vpop.f32.mrf.mxu3  ;;  %v1966_v11 = vadd.f32 %v4882_v46, %v4877_v17 }
 0x27f   :  { %v5180_v52 = vadd.f32 %v1683_v2, %v1587_v56  ;;  %2411 = vmatmul.f32.gmra.mxu0 %v4850_v18 }
 0x281   :  { %v1590_v30 = vpop.f32.mrf.mxu2  ;;  %6266 = vst [vmem:[#allocation7_spill] sm:$0xff] %v5180_v52  ;;  %v2025_v54 = vpop.f32.mrf.mxu1 }
 0x282   :  { %v1591_v15 = vadd.f32 %v1590_v30, %v4887_v33  ;;  %v5190_v10 = vadd.f32 %v2025_v54, %v1864_v0  ;;  %v5195_v30 = vmul.f32 %v4892_v50, %v5186_v28  ;;  %v1970_v50 = vadd.f32 %v4907_v41, %v4894_v57 }
 0x283   :  { %2282 = vmatmul.f32.gmra.mxu3 %v6269_v35  ;;  %v2545_v41 = vmul.f32 %v4910_v61, %v4910_v61  ;;  %v2546_v61 = vmul.f32 %v4931_v37, %v4931_v37  ;;  %v1982_v37 = vadd.f32 %v4970_v51, %v4957_v12 }
 0x284   :  { %v2352_v16 = vpop.f32.mrf.mxu0  ;;  %2508 = vmatmul.f32.gmra.mxu1 %v4850_v18  ;;  %6270 = vst [vmem:[#allocation81_spill] sm:$0xff] %v5195_v30 }
 0x286   :  { %v1687_v33 = vpop.f32.mrf.mxu3 }
 0x287   :  { %v5197_v2 = vadd.f32 %v1687_v33, %v1591_v15  ;;  %v2544_v33 = vmul.f32 %v4885_v40, %v4885_v40 }
 0x289   :  { %v2079_v56 = vpop.f32.mrf.mxu2  ;;  %6271 = vst [vmem:[#allocation9_spill] sm:$0xff] %v5197_v2  ;;  %v2449_v1 = vpop.f32.mrf.mxu1 }
 0x28a   :  { %v2080_v54 = vadd.f32 %v2079_v56, %v1966_v11 }
 0x28c   :  { %v2356_v0 = vpop.f32.mrf.mxu0 }
 0x28e   :  { %v2193_v48 = vpop.f32.mrf.mxu3 }
 0x28f   :  { %v2194_v18 = vadd.f32 %v2193_v48, %v2080_v54 }
 0x291   :  { %v2084_v35 = vpop.f32.mrf.mxu2  ;;  %v2353_v52 = vadd.f32 %v2352_v16, %v2194_v18  ;;  %v2453_v20 = vpop.f32.mrf.mxu1  ;;  %v1974_v16 = vadd.f32 %v4928_v43, %v4915_v26  ;;  %v1978_v26 = vadd.f32 %v4949_v49, %v4936_v58 }
 0x292   :  { %v2085_v29 = vadd.f32 %v2084_v35, %v1970_v50 }
 0x293   :  { %v2450_v8 = vadd.f32 %v2449_v1, %v2353_v52 }
 0x294   :  { %v2360_v15 = vpop.f32.mrf.mxu0 }
 0x295   :  { %v2528_v30 = vmul.f32 0.03125, %v2450_v8 }
 0x296   :  { %v2199_v28 = vpop.f32.mrf.mxu3 }
 0x297   :  { %v2560_v17 = vsub.f32 %v2528_v30, %v2544_v33  ;;  %v2200_v46 = vadd.f32 %v2199_v28, %v2085_v29 }
 0x299   :  { %v2089_v2 = vpop.f32.mrf.mxu2  ;;  %v2576_v56 = vadd.f32 1e-05, %v2560_v17  ;;  %v2357_v11 = vadd.f32 %v2356_v0, %v2200_v46  ;;  %v2457_v3 = vpop.f32.mrf.mxu1 }
 0x29a   :  { %v2090_v52 = vadd.f32 %v2089_v2, %v1974_v16 }
 0x29b   :  { %3196 = vrsqrt.f32 %v2576_v56  ;;  %v2454_v48 = vadd.f32 %v2453_v20, %v2357_v11  ;;  %vm2598_vm1 = vweird.f32 %v2576_v56 }
 0x29c   :  { %v2364_v57 = vpop.f32.mrf.mxu0 }
 0x29d   :  { %v2529_v40 = vmul.f32 0.03125, %v2454_v48 }
 0x29e   :  { %v2205_v8 = vpop.f32.mrf.mxu3 }
 0x29f   :  { %v2561_v54 = vsub.f32 %v2529_v40, %v2545_v41  ;;  %v2206_v35 = vadd.f32 %v2205_v8, %v2090_v52 }
 0x2a1   :  { %v2094_v1 = vpop.f32.mrf.mxu2  ;;  %v3197_v30 = vpop.eup %3196  ;;  %v2577_v28 = vadd.f32 1e-05, %v2561_v54  ;;  %v2361_v29 = vadd.f32 %v2360_v15, %v2206_v35  ;;  %v5220_v54 = vstv %s2802_s6 }
 0x2a2   :  { %v2593_v0 = vmul.f32 %v3197_v30, %v2576_v56  ;;  %v2461_v18 = vpop.f32.mrf.mxu1  ;;  %v2095_v2 = vadd.f32 %v2094_v1, %v1978_v26  ;;  %vm2599_vm0 = vweird.f32 %v3197_v30  ;;  %v6272_v56 = vsub.f32 %v4902_v59, %v4899_v14 }
 0x2a3   :  { %3198 = vrsqrt.f32 %v2577_v28  ;;  %v2458_v43 = vadd.f32 %v2457_v3, %v2361_v29  ;;  %vm2600_vm2 = vmor %vm2598_vm1, %vm2599_vm0  ;;  %vm2608_vm4 = vweird.f32 %v2577_v28 }
 0x2a4   :  { %v2594_v20 = vmul.f32 %v3197_v30, %v2593_v0  ;;  %v2368_v50 = vpop.f32.mrf.mxu0  ;;  %v2547_v0 = vmul.f32 %v4952_v24, %v4952_v24 }
 0x2a5   :  { %v2530_v33 = vmul.f32 0.03125, %v2458_v43 }
 0x2a6   :  { %v2595_v17 = vmul.f32 0.5, %v2594_v20  ;;  %v2211_v11 = vpop.f32.mrf.mxu3 }
 0x2a7   :  { %v2562_v16 = vsub.f32 %v2530_v33, %v2546_v61  ;;  %v2212_v15 = vadd.f32 %v2211_v11, %v2095_v2 }
 0x2a8   :  { %v2596_v48 = vsub.f32 1.5, %v2595_v17 }
 0x2a9   :  { %v2099_v46 = vpop.f32.mrf.mxu2  ;;  %v3199_v41 = vpop.eup %3198  ;;  %v5215_v52 = vadd.f32 1e-05, %v2562_v16  ;;  %v2365_v58 = vadd.f32 %v2364_v57, %v2212_v15 }
 0x2aa   :  { %v2597_v49 = vmul.f32 %v3197_v30, %v2596_v48  ;;  %v2603_v3 = vmul.f32 %v3199_v41, %v2577_v28  ;;  %v2465_v40 = vpop.f32.mrf.mxu1  ;;  %v2100_v26 = vadd.f32 %v2099_v46, %v1982_v37  ;;  %vm2609_vm3 = vweird.f32 %v3199_v41 }
 0x2ab   :  { %3200 = vrsqrt.f32 %v5215_v52  ;;  %v2462_v1 = vadd.f32 %v2461_v18, %v2365_v58  ;;  %v1986_v46 = vadd.f32 %v4991_v32, %v4978_v31  ;;  %vm2610_vm5 = vmor %vm2608_vm4, %vm2609_vm3  ;;  %v6273_v28 = vsub.f32 %v4923_v39, %v4920_v44 }
 0x2ac   :  { %v2601_v8 = vsel %vm2600_vm2, %v3197_v30, %v2597_v49  ;;  %v2604_v35 = vmul.f32 %v3199_v41, %v2603_v3  ;;  %v2372_v29 = vpop.f32.mrf.mxu0  ;;  %v2548_v3 = vmul.f32 %v4973_v25, %v4973_v25  ;;  %vm2618_vm7 = vweird.f32 %v5215_v52 }
 0x2ad   :  { %v2786_v57 = vmul.f32 %v6272_v56, %v2601_v8  ;;  %v2531_v43 = vmul.f32 0.03125, %v2462_v1 }
 0x2ae   :  { %v2605_v20 = vmul.f32 0.5, %v2604_v35  ;;  %v2217_v51 = vpop.f32.mrf.mxu3 }
 0x2af   :  { %v2804_v61 = vadd.f32 %v5220_v54, %v2786_v57  ;;  %v2563_v18 = vsub.f32 %v2531_v43, %v2547_v0  ;;  %v2218_v30 = vadd.f32 %v2217_v51, %v2100_v26  ;;  %v1990_v51 = vadd.f32 %v5012_v34, %v4999_v45 }
 0x2b0   :  { %v2606_v2 = vsub.f32 1.5, %v2605_v20 }
 0x2b1   :  { %v2104_v12 = vpop.f32.mrf.mxu2  ;;  %v3201_v33 = vpop.eup %3200  ;;  %v3147_v17 = vmul.f32 -1.442695, %v2804_v61  ;;  %v5228_v11 = vadd.f32 1e-05, %v2563_v18  ;;  %v2369_v24 = vadd.f32 %v2368_v50, %v2218_v30 }
 0x2b2   :  { %v2607_v16 = vmul.f32 %v3199_v41, %v2606_v2  ;;  %v2613_v14 = vmul.f32 %v3201_v33, %v5215_v52  ;;  %v2469_v59 = vpop.f32.mrf.mxu1  ;;  %v2105_v37 = vadd.f32 %v2104_v12, %v1986_v46  ;;  %vm2619_vm6 = vweird.f32 %v3201_v33 }
 0x2b3   :  { %3202 = vpow2.f32 %v3147_v17  ;;  %v2466_v15 = vadd.f32 %v2465_v40, %v2369_v24  ;;  %vm2620_vm8 = vmor %vm2618_vm7, %vm2619_vm6  ;;  %v6274_v2 = vsub.f32 %v4944_v13, %v4941_v19  ;;  %v5258_v19 = vmul.f32 %v5015_v5, %v5015_v5 }
 0x2b4   :  { %v2611_v48 = vsel %vm2610_vm5, %v3199_v41, %v2607_v16  ;;  %v2614_v58 = vmul.f32 %v3201_v33, %v2613_v14  ;;  %3204 = vrsqrt.f32 %v5228_v11  ;;  %v2376_v49 = vpop.f32.mrf.mxu0  ;;  %v2549_v14 = vmul.f32 %v4994_v23, %v4994_v23 }
 0x2b5   :  { %v2787_v50 = vmul.f32 %v6273_v28, %v2611_v48  ;;  %v2532_v1 = vmul.f32 0.03125, %v2466_v15  ;;  %vm2628_vm10 = vweird.f32 %v5228_v11 }
 0x2b6   :  { %v2615_v8 = vmul.f32 0.5, %v2614_v58  ;;  %v2223_v31 = vpop.f32.mrf.mxu3 }
 0x2b7   :  { %v2805_v32 = vadd.f32 %v5220_v54, %v2787_v50  ;;  %v2564_v40 = vsub.f32 %v2532_v1, %v2548_v3  ;;  %v2224_v41 = vadd.f32 %v2223_v31, %v2105_v37 }
 0x2b8   :  { %v2616_v0 = vsub.f32 1.5, %v2615_v8  ;;  %v1994_v8 = vadd.f32 %v5033_v21, %v5020_v62  ;;  %v6275_v62 = vsub.f32 %v4965_v9, %v4962_v42 }
 0x2b9   :  { %v2109_v35 = vpop.f32.mrf.mxu2  ;;  %v3203_v56 = vpop.eup %3202  ;;  %v3148_v57 = vmul.f32 -1.442695, %v2805_v32  ;;  %v5240_v26 = vadd.f32 1e-05, %v2564_v40  ;;  %v2373_v25 = vadd.f32 %v2372_v29, %v2224_v41 }
 0x2ba   :  { %v3205_v43 = vpop.eup %3204  ;;  %v5242_v20 = vadd.f32 1.0, %v3203_v56  ;;  %v2617_v44 = vmul.f32 %v3201_v33, %v2616_v0  ;;  %v2473_v39 = vpop.f32.mrf.mxu1  ;;  %v2110_v24 = vadd.f32 %v2109_v35, %v1990_v51 }
 0x2bb   :  { %3206 = vpow2.f32 %v3148_v57  ;;  %v2623_v12 = vmul.f32 %v3205_v43, %v5228_v11  ;;  %v2470_v29 = vadd.f32 %v2469_v59, %v2373_v25  ;;  %vm2629_vm9 = vweird.f32 %v3205_v43 }
 0x2bc   :  { %3208 = vrcp.f32 %v5242_v20  ;;  %v2380_v61 = vpop.f32.mrf.mxu0  ;;  %v2621_v18 = vsel %vm2620_vm8, %v3201_v33, %v2617_v44  ;;  %v2893_v35 = vand.u32 2147483647, %v5242_v20  ;;  %vm2630_vm11 = vmor %vm2628_vm10, %vm2629_vm9  ;;  %v2895_v11 = vand.u32 2147483648, %v5242_v20 }
 0x2bd   :  { %v2624_v30 = vmul.f32 %v3205_v43, %v2623_v12  ;;  %3210 = vrsqrt.f32 %v5240_v26  ;;  %v2788_v17 = vmul.f32 %v6274_v2, %v2621_v18  ;;  %v2533_v34 = vmul.f32 0.03125, %v2470_v29 }
 0x2be   :  { %v2229_v16 = vpop.f32.mrf.mxu3  ;;  %vm2638_vm14 = vweird.f32 %v5240_v26  ;;  %vm2889_vm15 = vweird.f32 %v5242_v20  ;;  %vm2894_vm0 = vcmp.eq.f32.partialorder %v2893_v35, 8.507059e+37  ;;  %v2896_v18 = vor.u32 1.1754944e-38, %v2895_v11  ;;  %v6277_v35 = vld [vmem:[#allocation64_spill] sm:$0xff] }
 0x2bf   :  { %v2625_v45 = vmul.f32 0.5, %v2624_v30  ;;  %v2806_v46 = vadd.f32 %v5220_v54, %v2788_v17  ;;  %v2230_v15 = vadd.f32 %v2229_v16, %v2110_v24  ;;  %v2565_v58 = vsub.f32 %v2533_v34, %v2549_v14 }
 0x2c1   :  { %v2114_v52 = vpop.f32.mrf.mxu2  ;;  %v3207_v33 = vpop.eup %3206  ;;  %v2626_v48 = vsub.f32 1.5, %v2625_v45  ;;  %v3149_v3 = vmul.f32 -1.442695, %v2806_v46  ;;  %v5266_v1 = vadd.f32 1e-05, %v2565_v58  ;;  %v2377_v5 = vadd.f32 %v2376_v49, %v2230_v15 }
 0x2c2   :  { %v3209_v59 = vpop.eup %3208  ;;  %v5260_v13 = vadd.f32 1.0, %v3207_v33  ;;  %v2477_v28 = vpop.f32.mrf.mxu1  ;;  %v2115_v0 = vadd.f32 %v2114_v52, %v1994_v8  ;;  %v5305_v58 = vmul.f32 %v5053_v53, %v5053_v53  ;;  %v6276_v53 = vsub.f32 %v4986_v7, %v4983_v60 }
 0x2c3   :  { %v5262_v50 = vpop.eup %3210  ;;  %v2885_v23 = vmul.f32 %v3209_v59, %v5242_v20  ;;  %v2627_v37 = vmul.f32 %v3205_v43, %v2626_v48  ;;  %vm2890_vm13 = vweird.f32 %v3209_v59  ;;  %v2474_v44 = vadd.f32 %v2473_v39, %v2377_v5 }
 0x2c4   :  { %3212 = vrcp.f32 %v5260_v13  ;;  %v2633_v40 = vmul.f32 %v5262_v50, %v5240_v26  ;;  %v5275_v41 = vpop.f32.mrf.mxu0  ;;  %vm2891_vm1 = vmor %vm2889_vm15, %vm2890_vm13  ;;  %vm2639_vm2 = vweird.f32 %v5262_v50  ;;  %v2908_v46 = vand.u32 2147483647, %v5260_v13 }
 0x2c5   :  { %v2886_v31 = vsub.f32 1.0, %v2885_v23  ;;  %3214 = vpow2.f32 %v3149_v3  ;;  %v2631_v32 = vsel %vm2630_vm11, %v3205_v43, %v2627_v37  ;;  %v2534_v29 = vmul.f32 0.03125, %v2474_v44  ;;  %vm2640_vm3 = vmor %vm2638_vm14, %vm2639_vm2 }
 0x2c6   :  { %v2789_v21 = vmul.f32 %v6275_v62, %v2631_v32  ;;  %v2235_v57 = vpop.f32.mrf.mxu3  ;;  %v2634_v49 = vmul.f32 %v5262_v50, %v2633_v40  ;;  %3216 = vrsqrt.f32 %v5266_v1  ;;  %v2551_v48 = vmul.f32 %v5036_v6, %v5036_v6 }
 0x2c7   :  { %v2887_v25 = vmul.f32 %v3209_v59, %v2886_v31  ;;  %v2236_v12 = vadd.f32 %v2235_v57, %v2115_v0  ;;  %v2566_v20 = vsub.f32 %v2534_v29, %v5258_v19  ;;  %vm2904_vm5 = vweird.f32 %v5260_v13 }
 0x2c8   :  { %v2807_v43 = vadd.f32 %v5220_v54, %v2789_v21  ;;  %v2635_v9 = vmul.f32 0.5, %v2634_v49  ;;  %vm5323_vm6 = vcmp.eq.f32.partialorder %v2908_v46, 8.507059e+37  ;;  %v5334_v49 = vmul.f32 %v5072_v47, %v5072_v47 }
 0x2c9   :  { %v2119_v56 = vpop.f32.mrf.mxu2  ;;  %v2888_v51 = vadd.f32 %v3209_v59, %v2887_v25  ;;  %v2381_v2 = vadd.f32 %v2380_v61, %v2236_v12  ;;  %v5320_v8 = vadd.f32 1e-05, %v2566_v20  ;;  %vm2648_vm10 = vweird.f32 %v5266_v1 }
 0x2ca   :  { %v3213_v42 = vpop.eup %3212  ;;  %v3150_v30 = vmul.f32 -1.442695, %v2807_v43  ;;  %v5286_v17 = vpop.f32.mrf.mxu1  ;;  %v2636_v14 = vsub.f32 1.5, %v2635_v9  ;;  %v2120_v26 = vadd.f32 %v2119_v56, %v6277_v35 }
 0x2cb   :  { %v3215_v24 = vpop.eup %3214  ;;  %v2892_v52 = vsel %vm2891_vm1, %v3209_v59, %v2888_v51  ;;  %v2900_v16 = vmul.f32 %v3213_v42, %v5260_v13  ;;  %v2478_v33 = vadd.f32 %v2477_v28, %v2381_v2  ;;  %v2910_v59 = vand.u32 2147483648, %v5260_v13 }
 0x2cc   :  { %v2897_v39 = vsel %vm2894_vm0, %v2896_v18, %v2892_v52  ;;  %v5290_v45 = vadd.f32 1.0, %v3215_v24  ;;  %3218 = vpow2.f32 %v3150_v30  ;;  %v5293_v34 = vpop.eup %3216  ;;  %v2637_v15 = vmul.f32 %v5262_v50, %v2636_v14  ;;  %v2388_v5 = vpop.f32.mrf.mxu0 }
 0x2cd   :  { %3125 = vst.msk [vmem:[%s5705_s4] sm:$0xff] %vm3124_vm12, %v2897_v39  ;;  %v2901_v61 = vsub.f32 1.0, %v2900_v16  ;;  %vm2905_vm4 = vweird.f32 %v3213_v42  ;;  %v2643_v6 = vmul.f32 %v5293_v34, %v5266_v1  ;;  %v2535_v40 = vmul.f32 0.03125, %v2478_v33 }
 0x2ce   :  { %3220 = vrcp.f32 %v5290_v45  ;;  %v2241_v3 = vpop.f32.mrf.mxu3  ;;  %v2641_v28 = vsel %vm2640_vm3, %v5262_v50, %v2637_v15  ;;  %vm2906_vm7 = vmor %vm2904_vm5, %vm2905_vm4  ;;  %v2911_v13 = vor.u32 1.1754944e-38, %v2910_v59  ;;  %v5341_v51 = vmul.f32 %v5091_v38, %v5091_v38 }
 0x2cf   :  { %v2902_v23 = vmul.f32 %v3213_v42, %v2901_v61  ;;  %v2790_v37 = vmul.f32 %v6276_v53, %v2641_v28  ;;  %v2644_v50 = vmul.f32 %v5293_v34, %v2643_v6  ;;  %3222 = vrsqrt.f32 %v5320_v8 }
 0x2d0   :  { %v2242_v7 = vadd.f32 %v2241_v3, %v2120_v26  ;;  %v2567_v57 = vsub.f32 %v2535_v40, %v2551_v48  ;;  %v2923_v47 = vand.u32 2147483647, %v5290_v45  ;;  %vm2649_vm8 = vweird.f32 %v5293_v34  ;;  %v6283_v3 = vld [vmem:[#allocation73_spill] sm:$0xff] }
 0x2d1   :  { %v2124_v19 = vpop.f32.mrf.mxu2  ;;  %v2903_v31 = vadd.f32 %v3213_v42, %v2902_v23  ;;  %v2808_v62 = vadd.f32 %v5220_v54, %v2790_v37  ;;  %v2645_v56 = vmul.f32 0.5, %v2644_v50  ;;  %v2925_v2 = vand.u32 2147483648, %v5290_v45  ;;  %vm2650_vm13 = vmor %vm2648_vm10, %vm2649_vm8  ;;  %v6284_v23 = vld [vmem:[#allocation112_spill] sm:$0xff] }
 0x2d2   :  { %v3219_v11 = vpop.eup %3218  ;;  %v2485_v60 = vpop.f32.mrf.mxu1  ;;  %v2385_v12 = vadd.f32 %v5275_v41, %v2242_v7  ;;  %v6280_v41 = vld [vmem:[#allocation83_spill] sm:$0xff]  ;;  %v5353_v24 = vadd.f32 1e-05, %v2567_v57  ;;  %vm2919_vm9 = vweird.f32 %v5290_v45  ;;  %vm5366_vm14 = vcmp.eq.f32.partialorder %v2923_v47, 8.507059e+37 }
 0x2d3   :  { %v2907_v21 = vsel %vm2906_vm7, %v3213_v42, %v2903_v31  ;;  %v5330_v0 = vadd.f32 1.0, %v3219_v11  ;;  %v3151_v44 = vmul.f32 -1.442695, %v2808_v62  ;;  %v2646_v42 = vsub.f32 1.5, %v2645_v56 }
 0x2d4   :  { %v3221_v25 = vpop.eup %3220  ;;  %v2912_v43 = vsel %vm5323_vm6, %v2911_v13, %v2907_v21  ;;  %v2125_v18 = vadd.f32 %v2124_v19, %v6280_v41  ;;  %v2482_v52 = vadd.f32 %v5286_v17, %v2385_v12  ;;  %v2392_v1 = vpop.f32.mrf.mxu0  ;;  %v2926_v19 = vor.u32 1.1754944e-38, %v2925_v2  ;;  %v6286_v12 = vld [vmem:[#allocation61_spill] sm:$0xff] }
 0x2d5   :  { %3126 = vst.msk [vmem:[%s5705_s4 + $0x8] sm:$0xff] %vm3124_vm12, %v2912_v43  ;;  %v2915_v9 = vmul.f32 %v3221_v25, %v5290_v45  ;;  %3224 = vrcp.f32 %v5330_v0  ;;  %v5356_v16 = vpop.eup %3222  ;;  %v2647_v14 = vmul.f32 %v5293_v34, %v2646_v42  ;;  %vm2920_vm11 = vweird.f32 %v3221_v25 }
 0x2d6   :  { %3226 = vpow2.f32 %v3151_v44  ;;  %v2247_v38 = vpop.f32.mrf.mxu3  ;;  %v2653_v61 = vmul.f32 %v5356_v16, %v5320_v8  ;;  %v2536_v15 = vmul.f32 0.03125, %v2482_v52  ;;  %v6285_v28 = vsub.f32 %v6283_v3, %v6284_v23  ;;  %vm2921_vm15 = vmor %vm2919_vm9, %vm2920_vm11 }
 0x2d7   :  { %v2916_v29 = vsub.f32 1.0, %v2915_v9  ;;  %v2248_v39 = vadd.f32 %v2247_v38, %v2125_v18  ;;  %3228 = vrsqrt.f32 %v5353_v24  ;;  %v2651_v46 = vsel %vm2650_vm13, %v5293_v34, %v2647_v14 }
 0x2d8   :  { %v2791_v6 = vmul.f32 %v6285_v28, %v2651_v46  ;;  %v2654_v53 = vmul.f32 %v5356_v16, %v2653_v61  ;;  %v2938_v34 = vand.u32 2147483647, %v5330_v0  ;;  %v2568_v26 = vsub.f32 %v2536_v15, %v5305_v58 }
 0x2d9   :  { %v2129_v30 = vpop.f32.mrf.mxu2  ;;  %v2917_v20 = vmul.f32 %v3221_v25, %v2916_v29  ;;  %v2389_v33 = vadd.f32 %v2388_v5, %v2248_v39  ;;  %v2940_v45 = vand.u32 2147483648, %v5330_v0  ;;  %vm2659_vm1 = vweird.f32 %v5356_v16  ;;  %v6287_v39 = vld [vmem:[#allocation62_spill] sm:$0xff] }
 0x2da   :  { %v2489_v31 = vpop.f32.mrf.mxu1  ;;  %v2809_v40 = vadd.f32 %v5220_v54, %v2791_v6  ;;  %v2655_v11 = vmul.f32 0.5, %v2654_v53  ;;  %v5387_v7 = vadd.f32 1e-05, %v2568_v26  ;;  %vm2934_vm2 = vweird.f32 %v5330_v0 }
 0x2db   :  { %v3225_v48 = vpop.eup %3224  ;;  %v2918_v59 = vadd.f32 %v3221_v25, %v2917_v20  ;;  %v2486_v5 = vadd.f32 %v2485_v60, %v2389_v33  ;;  %vm2658_vm3 = vweird.f32 %v5320_v8  ;;  %v2130_v9 = vadd.f32 %v2129_v30, %v6286_v12  ;;  %v6288_v20 = vld [vmem:[#allocation25_spill] sm:$0xff] }
 0x2dc   :  { %v3227_v37 = vpop.eup %3226  ;;  %v2930_v35 = vmul.f32 %v3225_v48, %v5330_v0  ;;  %vm2935_vm0 = vweird.f32 %v3225_v48  ;;  %v2656_v43 = vsub.f32 1.5, %v2655_v11  ;;  %vm2660_vm4 = vmor %vm2658_vm3, %vm2659_vm1  ;;  %vm2939_vm6 = vcmp.eq.f32.partialorder %v2938_v34, 8.507059e+37  ;;  %v2396_v30 = vpop.f32.mrf.mxu0 }
 0x2dd   :  { %v2922_v32 = vsel %vm2921_vm15, %v3221_v25, %v2918_v59  ;;  %v5381_v50 = vadd.f32 1.0, %v3227_v37  ;;  %v5389_v57 = vpop.eup %3228  ;;  %v2537_v58 = vmul.f32 0.03125, %v2486_v5  ;;  %v3152_v25 = vmul.f32 -1.442695, %v2809_v40  ;;  %vm2936_vm5 = vmor %vm2934_vm2, %vm2935_vm0 }
 0x2de   :  { %v2927_v13 = vsel %vm5366_vm14, %v2926_v19, %v2922_v32  ;;  %v2931_v62 = vsub.f32 1.0, %v2930_v35  ;;  %v2253_v56 = vpop.f32.mrf.mxu3  ;;  %v2663_v44 = vmul.f32 %v5389_v57, %v5353_v24  ;;  %v2657_v42 = vmul.f32 %v5356_v16, %v2656_v43 }
 0x2df   :  { %3127 = vst.msk [vmem:[%s5705_s4 + $0x10] sm:$0xff] %vm3124_vm12, %v2927_v13  ;;  %3230 = vrcp.f32 %v5381_v50  ;;  %v2941_v18 = vor.u32 1.1754944e-38, %v2940_v45  ;;  %v2569_v38 = vsub.f32 %v2537_v58, %v5334_v49  ;;  %v2254_v0 = vadd.f32 %v2253_v56, %v2130_v9  ;;  %v6292_v45 = vld [vmem:[#allocation56_spill] sm:$0xff] }
 0x2e0   :  { %v2932_v60 = vmul.f32 %v3225_v48, %v2931_v62  ;;  %3232 = vrsqrt.f32 %v5387_v7  ;;  %v2664_v41 = vmul.f32 %v5389_v57, %v2663_v44  ;;  %v2661_v8 = vsel %vm2660_vm4, %v5356_v16, %v2657_v42 }
 0x2e1   :  { %v2134_v21 = vpop.f32.mrf.mxu2  ;;  %3234 = vpow2.f32 %v3152_v25  ;;  %vm2668_vm7 = vweird.f32 %v5353_v24  ;;  %v6289_v61 = vsub.f32 %v6287_v39, %v6288_v20  ;;  %v5412_v46 = vadd.f32 1e-05, %v2569_v38 }
 0x2e2   :  { %v2933_v47 = vadd.f32 %v3225_v48, %v2932_v60  ;;  %v2665_v2 = vmul.f32 0.5, %v2664_v41  ;;  %v2393_v15 = vadd.f32 %v2392_v1, %v2254_v0  ;;  %v2953_v16 = vand.u32 2147483647, %v5381_v50  ;;  %v2493_v59 = vpop.f32.mrf.mxu1 }
 0x2e3   :  { %v2792_v17 = vmul.f32 %v6289_v61, %v2661_v8  ;;  %vm2669_vm8 = vweird.f32 %v5389_v57  ;;  %v2955_v3 = vand.u32 2147483648, %v5381_v50  ;;  %3236 = vrsqrt.f32 %v5412_v46 }
 0x2e4   :  { %v2937_v29 = vsel %vm2936_vm5, %v3225_v48, %v2933_v47  ;;  %v2666_v33 = vsub.f32 1.5, %v2665_v2  ;;  %v2490_v23 = vadd.f32 %v2489_v31, %v2393_v15  ;;  %v2135_v35 = vadd.f32 %v2134_v21, %v5115_v36  ;;  %vm2670_vm10 = vmor %vm2668_vm7, %vm2669_vm8  ;;  %v6293_v21 = vld [vmem:[#allocation31_spill] sm:$0xff]  ;;  %v2400_v42 = vpop.f32.mrf.mxu0 }
 0x2e5   :  { %v3231_v52 = vpop.eup %3230  ;;  %v2942_v14 = vsel %vm2939_vm6, %v2941_v18, %v2937_v29  ;;  %v2810_v1 = vadd.f32 %v5220_v54, %v2792_v17  ;;  %v2555_v36 = vmul.f32 %v5110_v4, %v5110_v4  ;;  %vm2949_vm11 = vweird.f32 %v5381_v50 }
 0x2e6   :  { %3128 = vst.msk [vmem:[%s5705_s4 + $0x18] sm:$0xff] %vm3124_vm12, %v2942_v14  ;;  %v2945_v49 = vmul.f32 %v3231_v52, %v5381_v50  ;;  %v2259_v48 = vpop.f32.mrf.mxu3  ;;  %v5421_v19 = vpop.eup %3232  ;;  %v2667_v53 = vmul.f32 %v5389_v57, %v2666_v33  ;;  %vm2950_vm9 = vweird.f32 %v3231_v52  ;;  %v2538_v31 = vmul.f32 0.03125, %v2490_v23 }
 0x2e7   :  { %v3235_v28 = vpop.eup %3234  ;;  %v2673_v37 = vmul.f32 %v5421_v19, %v5387_v7  ;;  %v3153_v5 = vmul.f32 -1.442695, %v2810_v1  ;;  %v2260_v13 = vadd.f32 %v2259_v48, %v2135_v35  ;;  %vm5441_vm13 = vcmp.eq.f32.partialorder %v2953_v16, 8.507059e+37  ;;  %vm2951_vm14 = vmor %vm2949_vm11, %vm2950_vm9  ;;  %v6296_v16 = vld [vmem:[#allocation36_spill] sm:$0xff] }
 0x2e8   :  { %v2946_v6 = vsub.f32 1.0, %v2945_v49  ;;  %v5430_v26 = vadd.f32 1.0, %v3235_v28  ;;  %v2671_v40 = vsel %vm2670_vm10, %v5389_v57, %v2667_v53  ;;  %v6294_v56 = vsub.f32 %v6292_v45, %v6293_v21  ;;  %v6295_v49 = vld [vmem:[#allocation70_spill] sm:$0xff] }
 0x2e9   :  { %v2139_v34 = vpop.f32.mrf.mxu2  ;;  %v2674_v11 = vmul.f32 %v5421_v19, %v2673_v37  ;;  %v5449_v60 = vpop.eup %3236  ;;  %v2956_v4 = vor.u32 1.1754944e-38, %v2955_v3  ;;  %vm2679_vm15 = vweird.f32 %v5421_v19  ;;  %v2570_v50 = vsub.f32 %v2538_v31, %v5341_v51 }
 0x2ea   :  { %v2947_v32 = vmul.f32 %v3231_v52, %v2946_v6  ;;  %3238 = vrcp.f32 %v5430_v26  ;;  %v2793_v57 = vmul.f32 %v6294_v56, %v2671_v40  ;;  %v2397_v25 = vadd.f32 %v2396_v30, %v2260_v13  ;;  %v2497_v2 = vpop.f32.mrf.mxu1 }
 0x2eb   :  { %3240 = vpow2.f32 %v3153_v5  ;;  %v2675_v58 = vmul.f32 0.5, %v2674_v11  ;;  %v2683_v9 = vmul.f32 %v5449_v60, %v5412_v46  ;;  %v5459_v18 = vadd.f32 1e-05, %v2570_v50 }
 0x2ec   :  { %v2948_v24 = vadd.f32 %v3231_v52, %v2947_v32  ;;  %v2811_v44 = vadd.f32 %v5220_v54, %v2793_v57  ;;  %v2140_v38 = vadd.f32 %v2139_v34, %v5134_v55  ;;  %v2494_v0 = vadd.f32 %v2493_v59, %v2397_v25 }
 0x2ed   :  { %v2676_v12 = vsub.f32 1.5, %v2675_v58  ;;  %vm2678_vm0 = vweird.f32 %v5387_v7  ;;  %v2684_v8 = vmul.f32 %v5449_v60, %v2683_v9  ;;  %3242 = vrsqrt.f32 %v5459_v18  ;;  %v6304_v9 = vld [vmem:[#allocation39_spill] sm:$0xff] }
 0x2ee   :  { %v2952_v43 = vsel %vm2951_vm14, %v3231_v52, %v2948_v24  ;;  %v2265_v47 = vpop.f32.mrf.mxu3  ;;  %v3154_v51 = vmul.f32 -1.442695, %v2811_v44  ;;  %v2968_v52 = vand.u32 2147483647, %v5430_v26  ;;  %vm2680_vm1 = vmor %vm2678_vm0, %vm2679_vm15  ;;  %v2539_v55 = vmul.f32 0.03125, %v2494_v0 }
 0x2ef   :  { %v2957_v41 = vsel %vm5441_vm13, %v2956_v4, %v2952_v43  ;;  %v2677_v29 = vmul.f32 %v5421_v19, %v2676_v12  ;;  %v2266_v14 = vadd.f32 %v2265_v47, %v2140_v38  ;;  %v2970_v61 = vand.u32 2147483648, %v5430_v26  ;;  %v6302_v4 = vld [vmem:[#allocation48_spill] sm:$0xff]  ;;  %v6303_v12 = vld [vmem:[#allocation71_spill] sm:$0xff] }
 0x2f0   :  { %3129 = vst.msk [vmem:[%s5705_s4 + $0x20] sm:$0xff] %vm3124_vm12, %v2957_v41  ;;  %v3239_v30 = vpop.eup %3238  ;;  %3244 = vpow2.f32 %v3154_v51  ;;  %v6297_v33 = vsub.f32 %v6295_v49, %v6296_v16  ;;  %v2685_v59 = vmul.f32 0.5, %v2684_v8  ;;  %v2571_v3 = vsub.f32 %v2539_v55, %v2555_v36  ;;  %v2404_v36 = vpop.f32.mrf.mxu0 }
 0x2f1   :  { %v3241_v39 = vpop.eup %3240  ;;  %v2960_v20 = vmul.f32 %v3239_v30, %v5430_v26  ;;  %v2681_v7 = vsel %vm2680_vm1, %v5421_v19, %v2677_v29  ;;  %v2144_v17 = vpop.f32.mrf.mxu2  ;;  %vm2965_vm2 = vweird.f32 %v3239_v30  ;;  %vm2689_vm3 = vweird.f32 %v5449_v60 }
 0x2f2   :  { %v5476_v15 = vadd.f32 1.0, %v3241_v39  ;;  %v2794_v48 = vmul.f32 %v6297_v33, %v2681_v7  ;;  %v2401_v23 = vadd.f32 %v2400_v42, %v2266_v14  ;;  %v2686_v19 = vsub.f32 1.5, %v2685_v59  ;;  %v2501_v57 = vpop.f32.mrf.mxu1 }
 0x2f3   :  { %v2961_v1 = vsub.f32 1.0, %v2960_v20  ;;  %v5484_v53 = vadd.f32 1e-05, %v2571_v3  ;;  %v5486_v35 = vpop.eup %3242  ;;  %vm2964_vm4 = vweird.f32 %v5430_v26  ;;  %vm5489_vm5 = vcmp.eq.f32.partialorder %v2968_v52, 8.507059e+37 }
 0x2f4   :  { %3246 = vrcp.f32 %v5476_v15  ;;  %v2812_v6 = vadd.f32 %v5220_v54, %v2794_v48  ;;  %v2971_v5 = vor.u32 1.1754944e-38, %v2970_v61  ;;  %vm2688_vm6 = vweird.f32 %v5412_v46  ;;  %vm2966_vm8 = vmor %vm2964_vm4, %vm2965_vm2 }
 0x2f5   :  { %v2962_v28 = vmul.f32 %v3239_v30, %v2961_v1  ;;  %v2687_v11 = vmul.f32 %v5449_v60, %v2686_v19  ;;  %vm5497_vm7 = vmor %vm2688_vm6, %vm2689_vm3  ;;  %v2693_v26 = vmul.f32 %v5486_v35, %v5459_v18  ;;  %v2983_v62 = vand.u32 2147483647, %v5476_v15 }
 0x2f6   :  { %v2271_v37 = vpop.f32.mrf.mxu3  ;;  %v3245_v31 = vpop.eup %3244  ;;  %v3155_v40 = vmul.f32 -1.442695, %v2812_v6  ;;  %3248 = vrsqrt.f32 %v5484_v53  ;;  %v2498_v24 = vadd.f32 %v2497_v2, %v2401_v23  ;;  %v2556_v50 = vmul.f32 %v6302_v4, %v6302_v4 }
 0x2f7   :  { %v2963_v32 = vadd.f32 %v3239_v30, %v2962_v28  ;;  %v5505_v46 = vadd.f32 1.0, %v3245_v31  ;;  %v2691_v21 = vsel %vm5497_vm7, %v5449_v60, %v2687_v11  ;;  %v2694_v56 = vmul.f32 %v5486_v35, %v2693_v26 }
 0x2f8   :  { %3250 = vpow2.f32 %v3155_v40  ;;  %v2145_v43 = vadd.f32 %v2144_v17, %v5153_v27  ;;  %v5520_v44 = vmul.f32 %v5148_v63, %v5148_v63  ;;  %v6305_v47 = vsub.f32 %v6303_v12, %v6304_v9  ;;  %v2408_v23 = vpop.f32.mrf.mxu0 }
 0x2f9   :  { %v2967_v45 = vsel %vm2966_vm8, %v3239_v30, %v2963_v32  ;;  %3252 = vrcp.f32 %v5505_v46  ;;  %vm2698_vm9 = vweird.f32 %v5459_v18  ;;  %v2149_v41 = vpop.f32.mrf.mxu2  ;;  %v2985_v27 = vand.u32 2147483648, %v5476_v15  ;;  %v6309_v32 = vld [vmem:[#allocation44_spill] sm:$0xff] }
 0x2fa   :  { %v3247_v58 = vpop.eup %3246  ;;  %v2972_v25 = vsel %vm5489_vm5, %v2971_v5, %v2967_v45  ;;  %v2795_v42 = vmul.f32 %v6305_v47, %v2691_v21  ;;  %v2695_v38 = vmul.f32 0.5, %v2694_v56  ;;  %v2540_v0 = vmul.f32 0.03125, %v2498_v24  ;;  %v2505_v5 = vpop.f32.mrf.mxu1 }
 0x2fb   :  { %3130 = vst.msk [vmem:[%s5705_s4 + $0x28] sm:$0xff] %vm3124_vm12, %v2972_v25  ;;  %v2975_v60 = vmul.f32 %v3247_v58, %v5476_v15  ;;  %v2272_v63 = vadd.f32 %v2271_v37, %v2145_v43  ;;  %vm2979_vm10 = vweird.f32 %v5476_v15  ;;  %vm5533_vm11 = vcmp.eq.f32.partialorder %v2983_v62, 8.507059e+37  ;;  %v6308_v15 = vld [vmem:[#allocation69_spill] sm:$0xff] }
 0x2fc   :  { %v2813_v8 = vadd.f32 %v5220_v54, %v2795_v42  ;;  %v5538_v30 = vpop.eup %3248  ;;  %v2696_v52 = vsub.f32 1.5, %v2695_v38  ;;  %vm2699_vm13 = vweird.f32 %v5486_v35  ;;  %v2572_v55 = vsub.f32 %v2540_v0, %v2556_v50 }
 0x2fd   :  { %v2976_v51 = vsub.f32 1.0, %v2975_v60  ;;  %v2405_v14 = vadd.f32 %v2404_v36, %v2272_v63  ;;  %vm2980_vm14 = vweird.f32 %v3247_v58  ;;  %v2703_v7 = vmul.f32 %v5538_v30, %v5484_v53  ;;  %vm2700_vm15 = vmor %vm2698_vm9, %vm2699_vm13 }
 0x2fe   :  { %v2277_v2 = vpop.f32.mrf.mxu3  ;;  %v3251_v39 = vpop.eup %3250  ;;  %v3156_v61 = vmul.f32 -1.442695, %v2813_v8  ;;  %v2986_v49 = vor.u32 1.1754944e-38, %v2985_v27  ;;  %v2697_v33 = vmul.f32 %v5486_v35, %v2696_v52  ;;  %v2150_v48 = vadd.f32 %v2149_v41, %v5172_v22  ;;  %vm2981_vm0 = vmor %vm2979_vm10, %vm2980_vm14  ;;  %v6314_v8 = vld [vmem:[#allocation5_spill] sm:$0xff] }
 0x2ff   :  { %v2977_v20 = vmul.f32 %v3247_v58, %v2976_v51  ;;  %v3253_v17 = vpop.eup %3252  ;;  %v5543_v16 = vadd.f32 1.0, %v3251_v39  ;;  %v5552_v1 = vadd.f32 1e-05, %v2572_v55  ;;  %v2998_v28 = vand.u32 2147483647, %v5505_v46 }
 0x300   :  { %v2990_v3 = vmul.f32 %v3253_v17, %v5505_v46  ;;  %3254 = vpow2.f32 %v3156_v61  ;;  %v3000_v6 = vand.u32 2147483648, %v5505_v46  ;;  %v2502_v22 = vadd.f32 %v2501_v57, %v2405_v14  ;;  %v2412_v51 = vpop.f32.mrf.mxu0 }
 0x301   :  { %v2978_v59 = vadd.f32 %v3247_v58, %v2977_v20  ;;  %3256 = vrcp.f32 %v5543_v16  ;;  %v2701_v34 = vsel %vm2700_vm15, %v5486_v35, %v2697_v33  ;;  %v2704_v18 = vmul.f32 %v5538_v30, %v2703_v7  ;;  %v2154_v26 = vpop.f32.mrf.mxu2 }
 0x302   :  { %v2991_v37 = vsub.f32 1.0, %v2990_v3  ;;  %vm2994_vm1 = vweird.f32 %v5505_v46  ;;  %v6310_v40 = vsub.f32 %v6308_v15, %v6309_v32  ;;  %vm2708_vm2 = vweird.f32 %v5484_v53  ;;  %v2509_v7 = vpop.f32.mrf.mxu1 }
 0x303   :  { %v2982_v19 = vsel %vm2981_vm0, %v3247_v58, %v2978_v59  ;;  %vm2995_vm3 = vweird.f32 %v3253_v17  ;;  %v2705_v13 = vmul.f32 0.5, %v2704_v18  ;;  %3258 = vrsqrt.f32 %v5552_v1 }
 0x304   :  { %v2987_v31 = vsel %vm5533_vm11, %v2986_v49, %v2982_v19  ;;  %v2796_v11 = vmul.f32 %v6310_v40, %v2701_v34  ;;  %v2992_v35 = vmul.f32 %v3253_v17, %v2991_v37  ;;  %vm5573_vm4 = vcmp.eq.f32.partialorder %v2998_v28, 8.507059e+37  ;;  %vm2996_vm6 = vmor %vm2994_vm1, %vm2995_vm3 }
 0x305   :  { %3131 = vst.msk [vmem:[%s5705_s4 + $0x30] sm:$0xff] %vm3124_vm12, %v2987_v31  ;;  %v2541_v24 = vmul.f32 0.03125, %v2502_v22  ;;  %v2278_v45 = vadd.f32 %v2277_v2, %v2150_v48  ;;  %v3001_v57 = vor.u32 1.1754944e-38, %v3000_v6  ;;  %v2706_v58 = vsub.f32 1.5, %v2705_v13  ;;  %v6315_v2 = vld [vmem:[#allocation76_spill] sm:$0xff] }
 0x306   :  { %v2814_v62 = vadd.f32 %v5220_v54, %v2796_v11  ;;  %v3255_v21 = vpop.eup %3254  ;;  %v2993_v56 = vadd.f32 %v3253_v17, %v2992_v35  ;;  %vm2709_vm5 = vweird.f32 %v5538_v30  ;;  %v2283_v4 = vpop.f32.mrf.mxu3  ;;  %v2155_v12 = vadd.f32 %v2154_v26, %v5190_v10 }
 0x307   :  { %v3257_v50 = vpop.eup %3256  ;;  %v5582_v25 = vadd.f32 1.0, %v3255_v21  ;;  %v2573_v60 = vsub.f32 %v2541_v24, %v5520_v44  ;;  %v2707_v42 = vmul.f32 %v5538_v30, %v2706_v58  ;;  %v2409_v41 = vadd.f32 %v2408_v23, %v2278_v45  ;;  %vm2710_vm7 = vmor %vm2708_vm2, %vm2709_vm5  ;;  %v6313_v44 = vld [vmem:[#allocation120_spill] sm:$0xff] }
 0x308   :  { %v3157_v43 = vmul.f32 -1.442695, %v2814_v62  ;;  %v2997_v9 = vsel %vm2996_vm6, %v3253_v17, %v2993_v56  ;;  %v3005_v47 = vmul.f32 %v3257_v50, %v5543_v16  ;;  %v2284_v46 = vadd.f32 %v2283_v4, %v2155_v12  ;;  %v6317_v17 = vld [vmem:[#allocation12_spill] sm:$0xff]  ;;  %v6319_v4 = vld [vmem:[#allocation77_spill] sm:$0xff] }
 0x309   :  { %v3002_v27 = vsel %vm5573_vm4, %v3001_v57, %v2997_v9  ;;  %3260 = vrcp.f32 %v5582_v25  ;;  %v5593_v38 = vpop.eup %3258  ;;  %v2558_v10 = vmul.f32 %v6313_v44, %v6313_v44  ;;  %v2711_v63 = vsel %vm2710_vm7, %v5538_v30, %v2707_v42 }
 0x30a   :  { %3132 = vst.msk [vmem:[%s5705_s4 + $0x38] sm:$0xff] %vm3124_vm12, %v3002_v27  ;;  %v3006_v0 = vsub.f32 1.0, %v3005_v47  ;;  %3262 = vpow2.f32 %v3157_v43  ;;  %v3013_v29 = vand.u32 2147483647, %v5543_v16  ;;  %v3015_v53 = vand.u32 2147483648, %v5543_v16 }
 0x30b   :  { %v6316_v52 = vsub.f32 %v6314_v8, %v6315_v2  ;;  %v2713_v14 = vmul.f32 %v5593_v38, %v5552_v1  ;;  %vm3010_vm8 = vweird.f32 %v3257_v50  ;;  %v5609_v20 = vadd.f32 1e-05, %v2573_v60 }
 0x30c   :  { %v3007_v39 = vmul.f32 %v3257_v50, %v3006_v0  ;;  %v2506_v61 = vadd.f32 %v2505_v5, %v2409_v41  ;;  %v2559_v30 = vmul.f32 %v6317_v17, %v6317_v17  ;;  %v2413_v48 = vadd.f32 %v2412_v51, %v2284_v46 }
 0x30d   :  { %v2797_v55 = vmul.f32 %v6316_v52, %v2711_v63  ;;  %v2714_v33 = vmul.f32 %v5593_v38, %v2713_v14  ;;  %vm3009_vm9 = vweird.f32 %v5543_v16  ;;  %3264 = vrsqrt.f32 %v5609_v20 }
 0x30e   :  { %v3008_v59 = vadd.f32 %v3257_v50, %v3007_v39  ;;  %v2542_v3 = vmul.f32 0.03125, %v2506_v61  ;;  %vm3011_vm10 = vmor %vm3009_vm9, %vm3010_vm8  ;;  %v3016_v28 = vor.u32 1.1754944e-38, %v3015_v53  ;;  %v2510_v19 = vadd.f32 %v2509_v7, %v2413_v48  ;;  %v6321_v39 = vld [vmem:[#allocation90_spill] sm:$0xff]  ;;  %v6322_v61 = vld [vmem:[#allocation11_spill] sm:$0xff] }
 0x30f   :  { %v2815_v49 = vadd.f32 %v5220_v54, %v2797_v55  ;;  %v3261_v23 = vpop.eup %3260  ;;  %v2715_v22 = vmul.f32 0.5, %v2714_v33  ;;  %vm3014_vm11 = vcmp.eq.f32.partialorder %v3013_v29, 8.507059e+37  ;;  %vm2719_vm13 = vweird.f32 %v5593_v38 }
 0x310   :  { %v3263_v37 = vpop.eup %3262  ;;  %v3012_v34 = vsel %vm3011_vm10, %v3257_v50, %v3008_v59  ;;  %v3020_v18 = vmul.f32 %v3261_v23, %v5582_v25  ;;  %v2574_v5 = vsub.f32 %v2542_v3, %v2558_v10  ;;  %v2543_v11 = vmul.f32 0.03125, %v2510_v19 }
 0x311   :  { %v3158_v6 = vmul.f32 -1.442695, %v2815_v49  ;;  %v3017_v31 = vsel %vm3014_vm11, %v3016_v28, %v3012_v34  ;;  %v5618_v15 = vadd.f32 1.0, %v3263_v37  ;;  %v2716_v16 = vsub.f32 1.5, %v2715_v22 }
 0x312   :  { %3133 = vst.msk [vmem:[%s5705_s4 + $0x40] sm:$0xff] %vm3124_vm12, %v3017_v31  ;;  %v3021_v32 = vsub.f32 1.0, %v3020_v18  ;;  %v5625_v40 = vadd.f32 1e-05, %v2574_v5  ;;  %v3028_v35 = vand.u32 2147483647, %v5582_v25  ;;  %vm2718_vm14 = vweird.f32 %v5552_v1 }
 0x313   :  { %3266 = vpow2.f32 %v3158_v6  ;;  %v3030_v13 = vand.u32 2147483648, %v5582_v25  ;;  %v3265_v26 = vpop.eup %3264  ;;  %vm3025_vm15 = vweird.f32 %v3261_v23  ;;  %v2717_v62 = vmul.f32 %v5593_v38, %v2716_v16  ;;  %vm2720_vm0 = vmor %vm2718_vm14, %vm2719_vm13  ;;  %v6318_v1 = vld [vmem:[#allocation6_spill] sm:$0xff] }
 0x314   :  { %3268 = vrcp.f32 %v5618_v15  ;;  %v3022_v36 = vmul.f32 %v3261_v23, %v3021_v32  ;;  %v2723_v24 = vmul.f32 %v3265_v26, %v5609_v20  ;;  %vm3024_vm1 = vweird.f32 %v5582_v25 }
 0x315   :  { %3270 = vrsqrt.f32 %v5625_v40  ;;  %v2721_v21 = vsel %vm2720_vm0, %v5593_v38, %v2717_v62  ;;  %v2575_v56 = vsub.f32 %v2543_v11, %v2559_v30  ;;  %vm3026_vm2 = vmor %vm3024_vm1, %vm3025_vm15  ;;  %v3031_v58 = vor.u32 1.1754944e-38, %v3030_v13  ;;  %v6324_v13 = vld [vmem:[#allocation7_spill] sm:$0xff] }
 0x316   :  { %v3023_v45 = vadd.f32 %v3261_v23, %v3022_v36  ;;  %v6320_v50 = vsub.f32 %v6318_v1, %v6319_v4  ;;  %v2724_v60 = vmul.f32 %v3265_v26, %v2723_v24  ;;  %vm3029_vm3 = vcmp.eq.f32.partialorder %v3028_v35, 8.507059e+37 }
 0x317   :  { %v5641_v47 = vadd.f32 1e-05, %v2575_v56  ;;  %vm2729_vm4 = vweird.f32 %v3265_v26  ;;  %v3045_v51 = vand.u32 2147483648, %v5618_v15  ;;  %vm2728_vm5 = vweird.f32 %v5609_v20 }
 0x318   :  { %v2798_v43 = vmul.f32 %v6320_v50, %v2721_v21  ;;  %v3027_v12 = vsel %vm3026_vm2, %v3261_v23, %v3023_v45  ;;  %v2725_v27 = vmul.f32 0.5, %v2724_v60  ;;  %v3043_v8 = vand.u32 2147483647, %v5618_v15  ;;  %vm2730_vm7 = vmor %vm2728_vm5, %vm2729_vm4  ;;  %v6327_v60 = vld [vmem:[#allocation9_spill] sm:$0xff] }
 0x319   :  { %v3267_v57 = vpop.eup %3266  ;;  %v3032_v41 = vsel %vm3029_vm3, %v3031_v58, %v3027_v12  ;;  %vm3039_vm8 = vweird.f32 %v5618_v15  ;;  %v6323_v7 = vsub.f32 %v6321_v39, %v6322_v61  ;;  %v3046_v49 = vor.u32 1.1754944e-38, %v3045_v51  ;;  %v6328_v12 = vld [vmem:[#allocation81_spill] sm:$0xff] }
 0x31a   :  { %v5639_v9 = vadd.f32 1.0, %v3267_v57  ;;  %v3269_v42 = vpop.eup %3268  ;;  %v2816_v25 = vadd.f32 %v5220_v54, %v2798_v43  ;;  %3134 = vst.msk [vmem:[%s5705_s4 + $0x48] sm:$0xff] %vm3124_vm12, %v3032_v41  ;;  %v2726_v10 = vsub.f32 1.5, %v2725_v27  ;;  %vm2738_vm10 = vweird.f32 %v5625_v40 }
 0x31b   :  { %v3271_v46 = vpop.eup %3270  ;;  %v3035_v38 = vmul.f32 %v3269_v42, %v5618_v15  ;;  %vm3040_vm6 = vweird.f32 %v3269_v42  ;;  %vm3044_vm11 = vcmp.eq.f32.partialorder %v3043_v8, 8.507059e+37  ;;  %vm2748_vm4 = vweird.f32 %v5641_v47 }
 0x31c   :  { %3272 = vrcp.f32 %v5639_v9  ;;  %v3159_v44 = vmul.f32 -1.442695, %v2816_v25  ;;  %v2733_v63 = vmul.f32 %v3271_v46, %v5625_v40  ;;  %v2727_v29 = vmul.f32 %v3265_v26, %v2726_v10  ;;  %vm3041_vm9 = vmor %vm3039_vm8, %vm3040_vm6 }
 0x31d   :  { %v3036_v0 = vsub.f32 1.0, %v3035_v38  ;;  %3274 = vrsqrt.f32 %v5641_v47  ;;  %vm2739_vm13 = vweird.f32 %v3271_v46  ;;  %v3060_v19 = vand.u32 2147483648, %v5639_v9 }
 0x31e   :  { %3276 = vpow2.f32 %v3159_v44  ;;  %v2734_v2 = vmul.f32 %v3271_v46, %v2733_v63  ;;  %v2731_v52 = vsel %vm2730_vm7, %v3265_v26, %v2727_v29  ;;  %v3058_v31 = vand.u32 2147483647, %v5639_v9  ;;  %vm2740_vm0 = vmor %vm2738_vm10, %vm2739_vm13  ;;  %v6325_v26 = vld [vmem:[#allocation74_spill] sm:$0xff] }
 0x31f   :  { %v3037_v53 = vmul.f32 %v3269_v42, %v3036_v0  ;;  %v2799_v17 = vmul.f32 %v6323_v7, %v2731_v52  ;;  %vm3054_vm15 = vweird.f32 %v5639_v9  ;;  %v3061_v35 = vor.u32 1.1754944e-38, %v3060_v19 }
 0x320   :  { %v2735_v30 = vmul.f32 0.5, %v2734_v2  ;;  %v6326_v36 = vsub.f32 %v6324_v13, %v6325_v26  ;;  %vm3059_vm2 = vcmp.eq.f32.partialorder %v3058_v31, 8.507059e+37 }
 0x321   :  { %v3038_v14 = vadd.f32 %v3269_v42, %v3037_v53  ;;  %v2817_v59 = vadd.f32 %v5220_v54, %v2799_v17 }
 0x322   :  { %v3273_v55 = vpop.eup %3272  ;;  %v2736_v3 = vsub.f32 1.5, %v2735_v30 }
 0x323   :  { %v3050_v20 = vmul.f32 %v3273_v55, %v5639_v9  ;;  %v3275_v33 = vpop.eup %3274  ;;  %v3042_v48 = vsel %vm3041_vm9, %v3269_v42, %v3038_v14  ;;  %v3160_v34 = vmul.f32 -1.442695, %v2817_v59  ;;  %vm3055_vm14 = vweird.f32 %v3273_v55 }
 0x324   :  { %v3277_v23 = vpop.eup %3276  ;;  %v3047_v28 = vsel %vm3044_vm11, %v3046_v49, %v3042_v48  ;;  %v2743_v22 = vmul.f32 %v3275_v33, %v5641_v47  ;;  %v2737_v18 = vmul.f32 %v3271_v46, %v2736_v3  ;;  %vm3056_vm1 = vmor %vm3054_vm15, %vm3055_vm14  ;;  %vm2749_vm3 = vweird.f32 %v3275_v33 }
 0x325   :  { %v3051_v6 = vsub.f32 1.0, %v3050_v20  ;;  %3135 = vst.msk [vmem:[%s5705_s4 + $0x50] sm:$0xff] %vm3124_vm12, %v3047_v28  ;;  %v2880_v37 = vadd.f32 1.0, %v3277_v23  ;;  %vm2750_vm5 = vmor %vm2748_vm4, %vm2749_vm3  ;;  %v6329_v9 = vsub.f32 %v6327_v60, %v6328_v12 }
 0x326   :  { %v2744_v15 = vmul.f32 %v3275_v33, %v2743_v22  ;;  %v2741_v32 = vsel %vm2740_vm0, %v3271_v46, %v2737_v18 }
 0x327   :  { %v3052_v5 = vmul.f32 %v3273_v55, %v3051_v6  ;;  %3278 = vrcp.f32 %v2880_v37  ;;  %v2800_v62 = vmul.f32 %v6326_v36, %v2741_v32  ;;  %v3075_v25 = vand.u32 2147483648, %v2880_v37 }
 0x328   :  { %3280 = vpow2.f32 %v3160_v34  ;;  %v2745_v11 = vmul.f32 0.5, %v2744_v15  ;;  %v3073_v46 = vand.u32 2147483647, %v2880_v37  ;;  %vm3069_vm7 = vweird.f32 %v2880_v37 }
 0x329   :  { %v3053_v16 = vadd.f32 %v3273_v55, %v3052_v5  ;;  %v2818_v56 = vadd.f32 %v5220_v54, %v2800_v62  ;;  %v3076_v0 = vor.u32 1.1754944e-38, %v3075_v25 }
 0x32a   :  { %v2746_v45 = vsub.f32 1.5, %v2745_v11  ;;  %vm3074_vm9 = vcmp.eq.f32.partialorder %v3073_v46, 8.507059e+37 }
 0x32b   :  { %v3057_v24 = vsel %vm3056_vm1, %v3273_v55, %v3053_v16  ;;  %v3161_v58 = vmul.f32 -1.442695, %v2818_v56 }
 0x32c   :  { %v3062_v21 = vsel %vm3059_vm2, %v3061_v35, %v3057_v24  ;;  %v2747_v40 = vmul.f32 %v3275_v33, %v2746_v45 }
 0x32d   :  { %3136 = vst.msk [vmem:[%s5705_s4 + $0x58] sm:$0xff] %vm3124_vm12, %v3062_v21  ;;  %v3279_v57 = vpop.eup %3278  ;;  %3282 = vpow2.f32 %v3161_v58 }
 0x32e   :  { %v3281_v1 = vpop.eup %3280  ;;  %v3065_v4 = vmul.f32 %v3279_v57, %v2880_v37  ;;  %v2751_v50 = vsel %vm2750_vm5, %v3275_v33, %v2747_v40  ;;  %vm3070_vm6 = vweird.f32 %v3279_v57 }
 0x32f   :  { %v2881_v43 = vadd.f32 1.0, %v3281_v1  ;;  %v2801_v42 = vmul.f32 %v6329_v9, %v2751_v50  ;;  %vm3071_vm8 = vmor %vm3069_vm7, %vm3070_vm6 }
 0x330   :  { %v3066_v41 = vsub.f32 1.0, %v3065_v4 }
 0x331   :  { %3284 = vrcp.f32 %v2881_v43  ;;  %v2819_v47 = vadd.f32 %v5220_v54, %v2801_v42  ;;  %v3090_v2 = vand.u32 2147483648, %v2881_v43  ;;  %v3088_v14 = vand.u32 2147483647, %v2881_v43 }
 0x332   :  { %v3067_v27 = vmul.f32 %v3279_v57, %v3066_v41  ;;  %vm3084_vm11 = vweird.f32 %v2881_v43 }
 0x333   :  { %v3162_v44 = vmul.f32 -1.442695, %v2819_v47  ;;  %v3283_v10 = vpop.eup %3282  ;;  %v3091_v17 = vor.u32 1.1754944e-38, %v3090_v2  ;;  %vm3089_vm14 = vcmp.eq.f32.partialorder %v3088_v14, 8.507059e+37 }
 0x334   :  { %v3068_v38 = vadd.f32 %v3279_v57, %v3067_v27  ;;  %v2882_v51 = vadd.f32 1.0, %v3283_v10 }
 0x335   :  { %3286 = vpow2.f32 %v3162_v44 }
 0x336   :  { %v3072_v63 = vsel %vm3071_vm8, %v3279_v57, %v3068_v38  ;;  %3288 = vrcp.f32 %v2882_v51  ;;  %v3105_v48 = vand.u32 2147483648, %v2882_v51  ;;  %v3103_v3 = vand.u32 2147483647, %v2882_v51 }
 0x337   :  { %v3285_v29 = vpop.eup %3284  ;;  %v3077_v53 = vsel %vm3074_vm9, %v3076_v0, %v3072_v63  ;;  %vm3099_vm0 = vweird.f32 %v2882_v51 }
 0x338   :  { %3137 = vst.msk [vmem:[%s5705_s4 + $0x60] sm:$0xff] %vm3124_vm12, %v3077_v53  ;;  %v3080_v8 = vmul.f32 %v3285_v29, %v2881_v43  ;;  %vm3085_vm10 = vweird.f32 %v3285_v29  ;;  %v3106_v6 = vor.u32 1.1754944e-38, %v3105_v48  ;;  %vm3104_vm2 = vcmp.eq.f32.partialorder %v3103_v3, 8.507059e+37 }
 0x339   :  { %vm3086_vm13 = vmor %vm3084_vm11, %vm3085_vm10 }
 0x33a   :  { %v3081_v54 = vsub.f32 1.0, %v3080_v8 }
 0x33b   :  { %v3287_v52 = vpop.eup %3286 }
 0x33c   :  { %v3082_v55 = vmul.f32 %v3285_v29, %v3081_v54  ;;  %v2883_v39 = vadd.f32 1.0, %v3287_v52  ;;  %v3289_v61 = vpop.eup %3288 }
 0x33d   :  { %v3095_v30 = vmul.f32 %v3289_v61, %v2882_v51  ;;  %vm3100_vm15 = vweird.f32 %v3289_v61 }
 0x33e   :  { %v3083_v7 = vadd.f32 %v3285_v29, %v3082_v55  ;;  %3290 = vrcp.f32 %v2883_v39  ;;  %vm3101_vm1 = vmor %vm3099_vm0, %vm3100_vm15  ;;  %v3120_v18 = vand.u32 2147483648, %v2883_v39  ;;  %v3118_v31 = vand.u32 2147483647, %v2883_v39 }
 0x33f   :  { %v3096_v33 = vsub.f32 1.0, %v3095_v30  ;;  %vm3114_vm4 = vweird.f32 %v2883_v39 }
 0x340   :  { %v3087_v49 = vsel %vm3086_vm13, %v3285_v29, %v3083_v7  ;;  %v3121_v16 = vor.u32 1.1754944e-38, %v3120_v18  ;;  %vm3119_vm6 = vcmp.eq.f32.partialorder %v3118_v31, 8.507059e+37 }
 0x341   :  { %v3092_v20 = vsel %vm3089_vm14, %v3091_v17, %v3087_v49  ;;  %v3097_v59 = vmul.f32 %v3289_v61, %v3096_v33 }
 0x342   :  { %3138 = vst.msk [vmem:[%s5705_s4 + $0x68] sm:$0xff] %vm3124_vm12, %v3092_v20 }
 0x343   :  { %v3098_v28 = vadd.f32 %v3289_v61, %v3097_v59 }
 0x344   :  { %v3291_v23 = vpop.eup %3290 }
 0x345   :  { %v3110_v22 = vmul.f32 %v3291_v23, %v2883_v39  ;;  %v3102_v19 = vsel %vm3101_vm1, %v3289_v61, %v3098_v28  ;;  %vm3115_vm3 = vweird.f32 %v3291_v23 }
 0x346   :  { %v3107_v37 = vsel %vm3104_vm2, %v3106_v6, %v3102_v19  ;;  %vm3116_vm5 = vmor %vm3114_vm4, %vm3115_vm3 }
 0x347   :  { %v3111_v34 = vsub.f32 1.0, %v3110_v22  ;;  %3139 = vst.msk [vmem:[%s5705_s4 + $0x70] sm:$0xff] %vm3124_vm12, %v3107_v37 }
 0x349   :  { %v3112_v5 = vmul.f32 %v3291_v23, %v3111_v34 }
 0x34b   :  { %v3113_v15 = vadd.f32 %v3291_v23, %v3112_v5 }
 0x34d   :  { %v3117_v32 = vsel %vm3116_vm5, %v3291_v23, %v3113_v15 }
 0x34e   :  { %v3122_v11 = vsel %vm3119_vm6, %v3121_v16, %v3117_v32 }
 0x34f   :  { %3140 = vst.msk [vmem:[%s5705_s4 + $0x78] sm:$0xff] %vm3124_vm12, %v3122_v11 }
 0x350   :  { %3145 = vsyncpa [#allocation3], 1 }

</bundles_post_ra>
